<compile_context>
chip_gen: v6e
topology: v6e:2x2x1
jax: 0.10.0
libtpu: 0.0.40
codegen_flags: <defaults>
</compile_context>

<pallas_src>
import jax
import jax.numpy as jnp
from jax import lax
from jax.experimental import pallas as pl
from jax.experimental.pallas import tpu as pltpu

# ------------------------- model config -------------------------
B = 2            # batch
L = 8            # sequence_length
C = 3            # frame channels
H = W = 16
D_MODEL = 32     # cnn_out_size == rnn_input_size (needed so norm_f broadcasts)
HIDDEN = 8       # hidden_size -> n_state == dt_rank
D_INNER = 2 * D_MODEL
N_STATE = HIDDEN
DT_RANK = HIDDEN
N_LAYERS = 2     # CONF_RNN_LAYER
NUM_CLASSES = 5
EPS = 1e-5
F32 = jnp.float32


def _sigmoid(x):
    return 1.0 / (1.0 + jnp.exp(-x))


def _softplus(x):
    # matches torch.nn.functional.softplus (threshold=20)
    return jnp.where(x > 20.0, x, jnp.log(1.0 + jnp.exp(jnp.minimum(x, 20.0))))


# ------------------------- fused forward kernel -------------------------
def _lrcn_fused_kernel(
        # cnn stand-in + constants
        x_ref, w_feat_ref, b_feat_ref, s1_ref, s2_ref, sel_ref,
        # per-layer (stacked along leading N_LAYERS dim)
        norm_w_ref, w_in_x_ref, b_in_x_ref, w_in_r_ref, b_in_r_ref,
        conv_w_ref, conv_b_ref, w_dt_lo_ref, w_bt_ref, w_ct_ref,
        w_dt_ref, b_dt_ref, a_t_ref, w_out_ref, b_out_ref,
        # final norm + classifier head
        norm_f_ref, w_a_ref, b_a_ref, g_a_ref, be_a_ref,
        w_b_ref, b_b_ref, g_b_ref, be_b_ref, w_f_ref, b_f_ref,
        # output + scratch
        out_ref, ys_ref):

    # ---- CNN backbone stand-in: global-average-pool + linear (all in VMEM) ----
    pooled = jnp.mean(x_ref[...], axis=-1)                                 # (B*L, C)
    h = (jnp.dot(pooled, w_feat_ref[...], preferred_element_type=F32)
         + b_feat_ref[...])                                                # (B*L, D_MODEL)

    s1 = s1_ref[...]                                                       # (B*L, B*L)
    s2 = s2_ref[...]

    for li in range(N_LAYERS):                                             # ResidualBlocks
        # ----- RMSNorm -----
        ms = jnp.mean(h * h, axis=-1, keepdims=True)
        hn = h * lax.rsqrt(ms + EPS) * norm_w_ref[li]                      # (16, 32)

        # ----- in_proj (x branch + res branch) -----
        x_in = (jnp.dot(hn, w_in_x_ref[li], preferred_element_type=F32)
                + b_in_x_ref[li])                                          # (16, 64)
        res = (jnp.dot(hn, w_in_r_ref[li], preferred_element_type=F32)
               + b_in_r_ref[li])                                           # (16, 64)

        # ----- causal depthwise conv1d (k=3, pad=2, truncate to L) -----
        # block-diagonal shift matrices keep causality within each sequence.
        xs1 = jnp.dot(s1, x_in, preferred_element_type=F32)                # x[t-1]
        xs2 = jnp.dot(s2, x_in, preferred_element_type=F32)                # x[t-2]
        cw = conv_w_ref[li]                                                # (3, 64)
        xc = (cw[0:1, :] * xs2 + cw[1:2, :] * xs1 + cw[2:3, :] * x_in
              + conv_b_ref[li])
        u = xc * _sigmoid(xc)                                              # SiLU, (16, 64)

        # ----- x_proj / dt_proj -----
        dt_low = jnp.dot(u, w_dt_lo_ref[li], preferred_element_type=F32)   # (16, 8)
        delta = _softplus(jnp.dot(dt_low, w_dt_ref[li],
                                  preferred_element_type=F32) + b_dt_ref[li])  # (16, 64)

        # B^T, C^T directly in (n_state, B*L) layout via trans-B matmuls.
        cdims = (((1,), (1,)), ((), ()))
        BmT = lax.dot_general(w_bt_ref[li], u, cdims,
                              preferred_element_type=F32)                  # (8, 16)
        CmT = lax.dot_general(w_ct_ref[li], u, cdims,
                              preferred_element_type=F32)                  # (8, 16)

        a_t = a_t_ref[li]                                                  # (8, 64) = A^T
        du = delta * u                                                     # (16, 64)

        # ----- selective scan: state is lane-dense (n_state=8, d_inner=64) -----
        st = None
        for b in range(B):
            for t in range(L):
                row = b * L + t
                du_row = du[row:row + 1, :]                                # (1, 64)
                dBu = BmT[:, row:row + 1] * du_row                         # (8, 64)
                if t == 0:                                                 # state starts at 0
                    st = dBu
                else:
                    dA = jnp.exp(delta[row:row + 1, :] * a_t)              # (8, 64)
                    st = dA * st + dBu
                y_row = jnp.sum(st * CmT[:, row:row + 1], axis=0,
                                keepdims=True)                             # (1, 64)
                ys_ref[row:row + 1, :] = y_row

        # ----- gate + out_proj + residual -----
        y = ys_ref[...]                                                    # (16, 64)
        gated = y * (res * _sigmoid(res))                                  # y * SiLU(res)
        h = h + (jnp.dot(gated, w_out_ref[li], preferred_element_type=F32)
                 + b_out_ref[li])                                          # (16, 32)

    # ----- final RMSNorm + select last timestep per sequence -----
    ms = jnp.mean(h * h, axis=-1, keepdims=True)
    hf = h * lax.rsqrt(ms + EPS) * norm_f_ref[...]                         # (16, 32)
    r = jnp.dot(sel_ref[...], hf, preferred_element_type=F32)              # (B, 32)

    # ----- classifier head: fca -> LN -> fcb -> LN -> final -----
    def layernorm(v, g, be):
        mu = jnp.mean(v, axis=-1, keepdims=True)
        var = jnp.mean((v - mu) ** 2, axis=-1, keepdims=True)
        return (v - mu) * lax.rsqrt(var + EPS) * g + be

    h1 = layernorm(jnp.dot(r, w_a_ref[...], preferred_element_type=F32)
                   + b_a_ref[...], g_a_ref[...], be_a_ref[...])
    h2 = layernorm(jnp.dot(h1, w_b_ref[...], preferred_element_type=F32)
                   + b_b_ref[...], g_b_ref[...], be_b_ref[...])
    out_ref[...] = (jnp.dot(h2, w_f_ref[...], preferred_element_type=F32)
                    + b_f_ref[...])


# ------------------------- wrapper -------------------------
@jax.jit
def lrcn_forward(x, params):
    frames = x.reshape(B * L, C, H * W).astype(F32)

    ly = params['layers']
    stack = lambda name: jnp.stack([lp[name] for lp in ly])
    # pre-transposed operands so the kernel never transposes in-flight
    w_bt = jnp.stack([lp['w_xp_B'].T for lp in ly])     # (NL, N_STATE, D_INNER)
    w_ct = jnp.stack([lp['w_xp_C'].T for lp in ly])     # (NL, N_STATE, D_INNER)
    a_t = jnp.stack([lp['A'].T for lp in ly])           # (NL, N_STATE, D_INNER)

    # block-diagonal causal shift matrices (built once, outside the kernel)
    ridx = jnp.arange(B * L)
    same_seq = (ridx[:, None] // L) == (ridx[None, :] // L)
    s1 = (same_seq & (ridx[None, :] == ridx[:, None] - 1)).astype(F32)
    s2 = (same_seq & (ridx[None, :] == ridx[:, None] - 2)).astype(F32)
    # last-timestep selection matrix (CONF_RNN_OUT == 'last')
    sel = (ridx[None, :] == (jnp.arange(B)[:, None] * L + (L - 1))).astype(F32)

    return pl.pallas_call(
        _lrcn_fused_kernel,
        out_shape=jax.ShapeDtypeStruct((B, NUM_CLASSES), F32),
        scratch_shapes=[pltpu.VMEM((B * L, D_INNER), F32)],   # scan outputs
    )(frames, params['w_feat'], params['b_feat'], s1, s2, sel,
      stack('norm_w'), stack('w_in_x'), stack('b_in_x'),
      stack('w_in_res'), stack('b_in_res'),
      stack('conv_w'), stack('conv_b'), stack('w_xp_dt'),
      w_bt, w_ct, stack('w_dt'), stack('b_dt'), a_t,
      stack('w_out'), stack('b_out'),
      params['norm_f_w'],
      params['w_a'], params['b_a'], params['g_a'], params['be_a'],
      params['w_b'], params['b_b'], params['g_b'], params['be_b'],
      params['w_f'], params['b_f'])


# ------------------------- deterministic parameter init -------------------------
def init_params(key):
    keys = iter(jax.random.split(key, 64))

    def nrm(shape, scale=0.1):
        return scale * jax.random.normal(next(keys), shape, dtype=F32)

    params = {
        'w_feat': nrm((C, D_MODEL)),
        'b_feat': nrm((1, D_MODEL)),
        'norm_f_w': jnp.ones((1, D_MODEL), F32),
    }
    layers = []
    for _ in range(N_LAYERS):
        A_log = jax.random.normal(next(keys), (D_INNER, N_STATE), dtype=F32)
        layers.append({
            'norm_w': jnp.ones((1, D_MODEL), F32),
            'w_in_x': nrm((D_MODEL, D_INNER)), 'b_in_x': nrm((1, D_INNER)),
            'w_in_res': nrm((D_MODEL, D_INNER)), 'b_in_res': nrm((1, D_INNER)),
            'conv_w': nrm((3, D_INNER), 0.3), 'conv_b': nrm((1, D_INNER)),
            'w_xp_dt': nrm((D_INNER, DT_RANK)),
            'w_xp_B': nrm((D_INNER, N_STATE)),
            'w_xp_C': nrm((D_INNER, N_STATE)),
            'w_dt': nrm((DT_RANK, D_INNER)), 'b_dt': nrm((1, D_INNER)),
            'A': -jnp.exp(A_log),
            # note: ParallelMamba.D is a parameter but unused by its forward
            'w_out': nrm((D_INNER, D_MODEL)), 'b_out': nrm((1, D_MODEL)),
        })
    params['layers'] = layers
    fcin = D_MODEL
    h1, h2 = fcin // 2, fcin // 4
    params.update({
        'w_a': nrm((fcin, h1)), 'b_a': nrm((1, h1)),
        'g_a': jnp.ones((1, h1), F32), 'be_a': jnp.zeros((1, h1), F32),
        'w_b': nrm((h1, h2)), 'b_b': nrm((1, h2)),
        'g_b': jnp.ones((1, h2), F32), 'be_b': jnp.zeros((1, h2), F32),
        'w_f': nrm((h2, NUM_CLASSES)), 'b_f': nrm((1, NUM_CLASSES)),
    })
    return params


if __name__ == "__main__":
    root = jax.random.PRNGKey(0)
    pkey, xkey = jax.random.split(root)
    params = init_params(pkey)
    x = jax.random.normal(xkey, (B, L, C, H, W), dtype=F32)
    out = lrcn_forward(x, params)
    out = jax.block_until_ready(out)
    assert out.shape == (B, NUM_CLASSES)
    assert bool(jnp.all(jnp.isfinite(out)))
    print("KERNEL_OK")
</pallas_src>

<mosaic_0001>
module attributes {stable_mosaic.version = 11 : i64} {
  func.func @_lrcn_fused_kernel(%arg0: memref<16x3x256xf32, #tpu.memory_space<vmem>>, %arg1: memref<3x32xf32, #tpu.memory_space<vmem>>, %arg2: memref<1x32xf32, #tpu.memory_space<vmem>>, %arg3: memref<16x16xf32, #tpu.memory_space<vmem>>, %arg4: memref<16x16xf32, #tpu.memory_space<vmem>>, %arg5: memref<2x16xf32, #tpu.memory_space<vmem>>, %arg6: memref<2x1x32xf32, #tpu.memory_space<vmem>>, %arg7: memref<2x32x64xf32, #tpu.memory_space<vmem>>, %arg8: memref<2x1x64xf32, #tpu.memory_space<vmem>>, %arg9: memref<2x32x64xf32, #tpu.memory_space<vmem>>, %arg10: memref<2x1x64xf32, #tpu.memory_space<vmem>>, %arg11: memref<2x3x64xf32, #tpu.memory_space<vmem>>, %arg12: memref<2x1x64xf32, #tpu.memory_space<vmem>>, %arg13: memref<2x64x8xf32, #tpu.memory_space<vmem>>, %arg14: memref<2x8x64xf32, #tpu.memory_space<vmem>>, %arg15: memref<2x8x64xf32, #tpu.memory_space<vmem>>, %arg16: memref<2x8x64xf32, #tpu.memory_space<vmem>>, %arg17: memref<2x1x64xf32, #tpu.memory_space<vmem>>, %arg18: memref<2x8x64xf32, #tpu.memory_space<vmem>>, %arg19: memref<2x64x32xf32, #tpu.memory_space<vmem>>, %arg20: memref<2x1x32xf32, #tpu.memory_space<vmem>>, %arg21: memref<1x32xf32, #tpu.memory_space<vmem>>, %arg22: memref<32x16xf32, #tpu.memory_space<vmem>>, %arg23: memref<1x16xf32, #tpu.memory_space<vmem>>, %arg24: memref<1x16xf32, #tpu.memory_space<vmem>>, %arg25: memref<1x16xf32, #tpu.memory_space<vmem>>, %arg26: memref<16x8xf32, #tpu.memory_space<vmem>>, %arg27: memref<1x8xf32, #tpu.memory_space<vmem>>, %arg28: memref<1x8xf32, #tpu.memory_space<vmem>>, %arg29: memref<1x8xf32, #tpu.memory_space<vmem>>, %arg30: memref<8x5xf32, #tpu.memory_space<vmem>>, %arg31: memref<1x5xf32, #tpu.memory_space<vmem>>, %arg32: memref<2x5xf32, #tpu.memory_space<vmem>>, %arg33: memref<16x64xf32, #tpu.memory_space<vmem>>) attributes {dimension_semantics = [], scalar_prefetch = 0 : i64, scratch_operands = 1 : i64, tpu.core_type = #tpu.core_type<tc>} {
    %c0 = arith.constant 0 : index
    %c0_0 = arith.constant 0 : index
    %c0_1 = arith.constant 0 : index
    %0 = vector.load %arg0[%c0, %c0_0, %c0_1] : memref<16x3x256xf32, #tpu.memory_space<vmem>>, vector<16x3x256xf32>
    %cst = arith.constant dense<0.000000e+00> : vector<16x3xf32>
    %1 = vector.multi_reduction <add>, %0, %cst [2] : vector<16x3x256xf32> to vector<16x3xf32>
    %cst_2 = arith.constant 2.560000e+02 : f32
    %2 = vector.broadcast %cst_2 : f32 to vector<16x3xf32>
    %3 = arith.divf %1, %2 : vector<16x3xf32>
    %c0_3 = arith.constant 0 : index
    %c0_4 = arith.constant 0 : index
    %4 = vector.load %arg1[%c0_3, %c0_4] : memref<3x32xf32, #tpu.memory_space<vmem>>, vector<3x32xf32>
    %cst_5 = arith.constant dense<0.000000e+00> : vector<16x32xf32>
    %5 = tpu.matmul %3, %4, %cst_5 {dimension_numbers = #tpu.dot_dimension_numbers<[1], [0], [0], [1], [0, 0, 1, 1], [], []>} : vector<16x3xf32>, vector<3x32xf32>, vector<16x32xf32> -> vector<16x32xf32>
    %c0_6 = arith.constant 0 : index
    %c0_7 = arith.constant 0 : index
    %6 = vector.load %arg2[%c0_6, %c0_7] : memref<1x32xf32, #tpu.memory_space<vmem>>, vector<1x32xf32>
    %7 = vector.broadcast %6 : vector<1x32xf32> to vector<16x32xf32>
    %8 = arith.addf %5, %7 : vector<16x32xf32>
    %c0_8 = arith.constant 0 : index
    %c0_9 = arith.constant 0 : index
    %9 = vector.load %arg3[%c0_8, %c0_9] : memref<16x16xf32, #tpu.memory_space<vmem>>, vector<16x16xf32>
    %c0_10 = arith.constant 0 : index
    %c0_11 = arith.constant 0 : index
    %10 = vector.load %arg4[%c0_10, %c0_11] : memref<16x16xf32, #tpu.memory_space<vmem>>, vector<16x16xf32>
    %11 = arith.mulf %8, %8 : vector<16x32xf32>
    %cst_12 = arith.constant dense<0.000000e+00> : vector<16xf32>
    %12 = vector.multi_reduction <add>, %11, %cst_12 [1] : vector<16x32xf32> to vector<16xf32>
    %13 = vector.shape_cast %12 : vector<16xf32> to vector<16x1xf32>
    %cst_13 = arith.constant 3.200000e+01 : f32
    %14 = vector.broadcast %cst_13 : f32 to vector<16x1xf32>
    %15 = arith.divf %13, %14 : vector<16x1xf32>
    %cst_14 = arith.constant 9.99999974E-6 : f32
    %16 = vector.broadcast %cst_14 : f32 to vector<16x1xf32>
    %17 = arith.addf %15, %16 : vector<16x1xf32>
    %18 = math.rsqrt %17 : vector<16x1xf32>
    %19 = vector.broadcast %18 : vector<16x1xf32> to vector<16x32xf32>
    %20 = arith.mulf %8, %19 : vector<16x32xf32>
    %c0_15 = arith.constant 0 : index
    %c0_16 = arith.constant 0 : index
    %c0_17 = arith.constant 0 : index
    %21 = vector.load %arg6[%c0_15, %c0_16, %c0_17] : memref<2x1x32xf32, #tpu.memory_space<vmem>>, vector<1x1x32xf32>
    %22 = vector.shape_cast %21 : vector<1x1x32xf32> to vector<1x32xf32>
    %23 = vector.broadcast %22 : vector<1x32xf32> to vector<16x32xf32>
    %24 = arith.mulf %20, %23 : vector<16x32xf32>
    %c0_18 = arith.constant 0 : index
    %c0_19 = arith.constant 0 : index
    %c0_20 = arith.constant 0 : index
    %25 = vector.load %arg7[%c0_18, %c0_19, %c0_20] : memref<2x32x64xf32, #tpu.memory_space<vmem>>, vector<1x32x64xf32>
    %26 = vector.shape_cast %25 : vector<1x32x64xf32> to vector<32x64xf32>
    %cst_21 = arith.constant dense<0.000000e+00> : vector<16x64xf32>
    %27 = tpu.matmul %24, %26, %cst_21 {dimension_numbers = #tpu.dot_dimension_numbers<[1], [0], [0], [1], [0, 0, 1, 1], [], []>} : vector<16x32xf32>, vector<32x64xf32>, vector<16x64xf32> -> vector<16x64xf32>
    %c0_22 = arith.constant 0 : index
    %c0_23 = arith.constant 0 : index
    %c0_24 = arith.constant 0 : index
    %28 = vector.load %arg8[%c0_22, %c0_23, %c0_24] : memref<2x1x64xf32, #tpu.memory_space<vmem>>, vector<1x1x64xf32>
    %29 = vector.shape_cast %28 : vector<1x1x64xf32> to vector<1x64xf32>
    %30 = vector.broadcast %29 : vector<1x64xf32> to vector<16x64xf32>
    %31 = arith.addf %27, %30 : vector<16x64xf32>
    %c0_25 = arith.constant 0 : index
    %c0_26 = arith.constant 0 : index
    %c0_27 = arith.constant 0 : index
    %32 = vector.load %arg9[%c0_25, %c0_26, %c0_27] : memref<2x32x64xf32, #tpu.memory_space<vmem>>, vector<1x32x64xf32>
    %33 = vector.shape_cast %32 : vector<1x32x64xf32> to vector<32x64xf32>
    %cst_28 = arith.constant dense<0.000000e+00> : vector<16x64xf32>
    %34 = tpu.matmul %24, %33, %cst_28 {dimension_numbers = #tpu.dot_dimension_numbers<[1], [0], [0], [1], [0, 0, 1, 1], [], []>} : vector<16x32xf32>, vector<32x64xf32>, vector<16x64xf32> -> vector<16x64xf32>
    %c0_29 = arith.constant 0 : index
    %c0_30 = arith.constant 0 : index
    %c0_31 = arith.constant 0 : index
    %35 = vector.load %arg10[%c0_29, %c0_30, %c0_31] : memref<2x1x64xf32, #tpu.memory_space<vmem>>, vector<1x1x64xf32>
    %36 = vector.shape_cast %35 : vector<1x1x64xf32> to vector<1x64xf32>
    %37 = vector.broadcast %36 : vector<1x64xf32> to vector<16x64xf32>
    %38 = arith.addf %34, %37 : vector<16x64xf32>
    %cst_32 = arith.constant dense<0.000000e+00> : vector<16x64xf32>
    %39 = tpu.matmul %9, %31, %cst_32 {dimension_numbers = #tpu.dot_dimension_numbers<[1], [0], [0], [1], [0, 0, 1, 1], [], []>} : vector<16x16xf32>, vector<16x64xf32>, vector<16x64xf32> -> vector<16x64xf32>
    %cst_33 = arith.constant dense<0.000000e+00> : vector<16x64xf32>
    %40 = tpu.matmul %10, %31, %cst_33 {dimension_numbers = #tpu.dot_dimension_numbers<[1], [0], [0], [1], [0, 0, 1, 1], [], []>} : vector<16x16xf32>, vector<16x64xf32>, vector<16x64xf32> -> vector<16x64xf32>
    %c0_34 = arith.constant 0 : index
    %c0_35 = arith.constant 0 : index
    %c0_36 = arith.constant 0 : index
    %41 = vector.load %arg11[%c0_34, %c0_35, %c0_36] : memref<2x3x64xf32, #tpu.memory_space<vmem>>, vector<1x3x64xf32>
    %42 = vector.shape_cast %41 : vector<1x3x64xf32> to vector<3x64xf32>
    %43 = vector.extract_strided_slice %42 {offsets = [0, 0], sizes = [1, 64], strides = [1, 1]} : vector<3x64xf32> to vector<1x64xf32>
    %44 = vector.broadcast %43 : vector<1x64xf32> to vector<16x64xf32>
    %45 = arith.mulf %44, %40 : vector<16x64xf32>
    %46 = vector.extract_strided_slice %42 {offsets = [1, 0], sizes = [1, 64], strides = [1, 1]} : vector<3x64xf32> to vector<1x64xf32>
    %47 = vector.broadcast %46 : vector<1x64xf32> to vector<16x64xf32>
    %48 = arith.mulf %47, %39 : vector<16x64xf32>
    %49 = arith.addf %45, %48 : vector<16x64xf32>
    %50 = vector.extract_strided_slice %42 {offsets = [2, 0], sizes = [1, 64], strides = [1, 1]} : vector<3x64xf32> to vector<1x64xf32>
    %51 = vector.broadcast %50 : vector<1x64xf32> to vector<16x64xf32>
    %52 = arith.mulf %51, %31 : vector<16x64xf32>
    %53 = arith.addf %49, %52 : vector<16x64xf32>
    %c0_37 = arith.constant 0 : index
    %c0_38 = arith.constant 0 : index
    %c0_39 = arith.constant 0 : index
    %54 = vector.load %arg12[%c0_37, %c0_38, %c0_39] : memref<2x1x64xf32, #tpu.memory_space<vmem>>, vector<1x1x64xf32>
    %55 = vector.shape_cast %54 : vector<1x1x64xf32> to vector<1x64xf32>
    %56 = vector.broadcast %55 : vector<1x64xf32> to vector<16x64xf32>
    %57 = arith.addf %53, %56 : vector<16x64xf32>
    %cst_40 = arith.constant 0.000000e+00 : f32
    %58 = vector.broadcast %cst_40 : f32 to vector<16x64xf32>
    %59 = arith.subf %58, %57 : vector<16x64xf32>
    %60 = math.exp %59 : vector<16x64xf32>
    %cst_41 = arith.constant 1.000000e+00 : f32
    %61 = vector.broadcast %cst_41 : f32 to vector<16x64xf32>
    %62 = arith.addf %61, %60 : vector<16x64xf32>
    %cst_42 = arith.constant 1.000000e+00 : f32
    %63 = vector.broadcast %cst_42 : f32 to vector<16x64xf32>
    %64 = arith.divf %63, %62 : vector<16x64xf32>
    %65 = arith.mulf %57, %64 : vector<16x64xf32>
    %c0_43 = arith.constant 0 : index
    %c0_44 = arith.constant 0 : index
    %c0_45 = arith.constant 0 : index
    %66 = vector.load %arg13[%c0_43, %c0_44, %c0_45] : memref<2x64x8xf32, #tpu.memory_space<vmem>>, vector<1x64x8xf32>
    %67 = vector.shape_cast %66 : vector<1x64x8xf32> to vector<64x8xf32>
    %cst_46 = arith.constant dense<0.000000e+00> : vector<16x8xf32>
    %68 = tpu.matmul %65, %67, %cst_46 {dimension_numbers = #tpu.dot_dimension_numbers<[1], [0], [0], [1], [0, 0, 1, 1], [], []>} : vector<16x64xf32>, vector<64x8xf32>, vector<16x8xf32> -> vector<16x8xf32>
    %c0_47 = arith.constant 0 : index
    %c0_48 = arith.constant 0 : index
    %c0_49 = arith.constant 0 : index
    %69 = vector.load %arg16[%c0_47, %c0_48, %c0_49] : memref<2x8x64xf32, #tpu.memory_space<vmem>>, vector<1x8x64xf32>
    %70 = vector.shape_cast %69 : vector<1x8x64xf32> to vector<8x64xf32>
    %cst_50 = arith.constant dense<0.000000e+00> : vector<16x64xf32>
    %71 = tpu.matmul %68, %70, %cst_50 {dimension_numbers = #tpu.dot_dimension_numbers<[1], [0], [0], [1], [0, 0, 1, 1], [], []>} : vector<16x8xf32>, vector<8x64xf32>, vector<16x64xf32> -> vector<16x64xf32>
    %c0_51 = arith.constant 0 : index
    %c0_52 = arith.constant 0 : index
    %c0_53 = arith.constant 0 : index
    %72 = vector.load %arg17[%c0_51, %c0_52, %c0_53] : memref<2x1x64xf32, #tpu.memory_space<vmem>>, vector<1x1x64xf32>
    %73 = vector.shape_cast %72 : vector<1x1x64xf32> to vector<1x64xf32>
    %74 = vector.broadcast %73 : vector<1x64xf32> to vector<16x64xf32>
    %75 = arith.addf %71, %74 : vector<16x64xf32>
    %cst_54 = arith.constant 2.000000e+01 : f32
    %76 = vector.broadcast %cst_54 : f32 to vector<16x64xf32>
    %77 = arith.cmpf ogt, %75, %76 : vector<16x64xf32>
    %cst_55 = arith.constant 2.000000e+01 : f32
    %78 = vector.broadcast %cst_55 : f32 to vector<16x64xf32>
    %79 = arith.minimumf %75, %78 : vector<16x64xf32>
    %80 = math.exp %79 : vector<16x64xf32>
    %cst_56 = arith.constant 1.000000e+00 : f32
    %81 = vector.broadcast %cst_56 : f32 to vector<16x64xf32>
    %82 = arith.addf %81, %80 : vector<16x64xf32>
    %83 = math.log %82 : vector<16x64xf32>
    %84 = arith.select %77, %75, %83 : vector<16x64xi1>, vector<16x64xf32>
    %c0_57 = arith.constant 0 : index
    %c0_58 = arith.constant 0 : index
    %c0_59 = arith.constant 0 : index
    %85 = vector.load %arg14[%c0_57, %c0_58, %c0_59] : memref<2x8x64xf32, #tpu.memory_space<vmem>>, vector<1x8x64xf32>
    %86 = vector.shape_cast %85 : vector<1x8x64xf32> to vector<8x64xf32>
    %cst_60 = arith.constant dense<0.000000e+00> : vector<8x16xf32>
    %87 = tpu.matmul %86, %65, %cst_60 {dimension_numbers = #tpu.dot_dimension_numbers<[1], [1], [0], [0], [0, 0, 1, 0], [], []>} : vector<8x64xf32>, vector<16x64xf32>, vector<8x16xf32> -> vector<8x16xf32>
    %c0_61 = arith.constant 0 : index
    %c0_62 = arith.constant 0 : index
    %c0_63 = arith.constant 0 : index
    %88 = vector.load %arg15[%c0_61, %c0_62, %c0_63] : memref<2x8x64xf32, #tpu.memory_space<vmem>>, vector<1x8x64xf32>
    %89 = vector.shape_cast %88 : vector<1x8x64xf32> to vector<8x64xf32>
    %cst_64 = arith.constant dense<0.000000e+00> : vector<8x16xf32>
    %90 = tpu.matmul %89, %65, %cst_64 {dimension_numbers = #tpu.dot_dimension_numbers<[1], [1], [0], [0], [0, 0, 1, 0], [], []>} : vector<8x64xf32>, vector<16x64xf32>, vector<8x16xf32> -> vector<8x16xf32>
    %c0_65 = arith.constant 0 : index
    %c0_66 = arith.constant 0 : index
    %c0_67 = arith.constant 0 : index
    %91 = vector.load %arg18[%c0_65, %c0_66, %c0_67] : memref<2x8x64xf32, #tpu.memory_space<vmem>>, vector<1x8x64xf32>
    %92 = vector.shape_cast %91 : vector<1x8x64xf32> to vector<8x64xf32>
    %93 = arith.mulf %84, %65 : vector<16x64xf32>
    %94 = vector.extract_strided_slice %93 {offsets = [0, 0], sizes = [1, 64], strides = [1, 1]} : vector<16x64xf32> to vector<1x64xf32>
    %95 = vector.extract_strided_slice %87 {offsets = [0, 0], sizes = [8, 1], strides = [1, 1]} : vector<8x16xf32> to vector<8x1xf32>
    %96 = vector.broadcast %95 : vector<8x1xf32> to vector<8x64xf32>
    %97 = vector.broadcast %94 : vector<1x64xf32> to vector<8x64xf32>
    %98 = arith.mulf %96, %97 : vector<8x64xf32>
    %99 = vector.extract_strided_slice %90 {offsets = [0, 0], sizes = [8, 1], strides = [1, 1]} : vector<8x16xf32> to vector<8x1xf32>
    %100 = vector.broadcast %99 : vector<8x1xf32> to vector<8x64xf32>
    %101 = arith.mulf %98, %100 : vector<8x64xf32>
    %cst_68 = arith.constant dense<0.000000e+00> : vector<64xf32>
    %102 = vector.multi_reduction <add>, %101, %cst_68 [0] : vector<8x64xf32> to vector<64xf32>
    %103 = vector.shape_cast %102 : vector<64xf32> to vector<1x64xf32>
    %c0_69 = arith.constant 0 : index
    %c0_70 = arith.constant 0 : index
    %104 = vector.load %arg33[%c0_69, %c0_70] : memref<16x64xf32, #tpu.memory_space<vmem>>, vector<1x64xf32>
    tpu.vector_store %arg33[%c0_69, %c0_70], %103 {strides = array<i32>} : memref<16x64xf32, #tpu.memory_space<vmem>>, vector<1x64xf32>,
    %105 = vector.extract_strided_slice %93 {offsets = [1, 0], sizes = [1, 64], strides = [1, 1]} : vector<16x64xf32> to vector<1x64xf32>
    %106 = vector.extract_strided_slice %87 {offsets = [0, 1], sizes = [8, 1], strides = [1, 1]} : vector<8x16xf32> to vector<8x1xf32>
    %107 = vector.broadcast %106 : vector<8x1xf32> to vector<8x64xf32>
    %108 = vector.broadcast %105 : vector<1x64xf32> to vector<8x64xf32>
    %109 = arith.mulf %107, %108 : vector<8x64xf32>
    %110 = vector.extract_strided_slice %84 {offsets = [1, 0], sizes = [1, 64], strides = [1, 1]} : vector<16x64xf32> to vector<1x64xf32>
    %111 = vector.broadcast %110 : vector<1x64xf32> to vector<8x64xf32>
    %112 = arith.mulf %111, %92 : vector<8x64xf32>
    %113 = math.exp %112 : vector<8x64xf32>
    %114 = arith.mulf %113, %98 : vector<8x64xf32>
    %115 = arith.addf %114, %109 : vector<8x64xf32>
    %116 = vector.extract_strided_slice %90 {offsets = [0, 1], sizes = [8, 1], strides = [1, 1]} : vector<8x16xf32> to vector<8x1xf32>
    %117 = vector.broadcast %116 : vector<8x1xf32> to vector<8x64xf32>
    %118 = arith.mulf %115, %117 : vector<8x64xf32>
    %cst_71 = arith.constant dense<0.000000e+00> : vector<64xf32>
    %119 = vector.multi_reduction <add>, %118, %cst_71 [0] : vector<8x64xf32> to vector<64xf32>
    %120 = vector.shape_cast %119 : vector<64xf32> to vector<1x64xf32>
    %c1 = arith.constant 1 : index
    %c0_72 = arith.constant 0 : index
    %121 = vector.load %arg33[%c1, %c0_72] : memref<16x64xf32, #tpu.memory_space<vmem>>, vector<1x64xf32>
    tpu.vector_store %arg33[%c1, %c0_72], %120 {strides = array<i32>} : memref<16x64xf32, #tpu.memory_space<vmem>>, vector<1x64xf32>,
    %122 = vector.extract_strided_slice %93 {offsets = [2, 0], sizes = [1, 64], strides = [1, 1]} : vector<16x64xf32> to vector<1x64xf32>
    %123 = vector.extract_strided_slice %87 {offsets = [0, 2], sizes = [8, 1], strides = [1, 1]} : vector<8x16xf32> to vector<8x1xf32>
    %124 = vector.broadcast %123 : vector<8x1xf32> to vector<8x64xf32>
    %125 = vector.broadcast %122 : vector<1x64xf32> to vector<8x64xf32>
    %126 = arith.mulf %124, %125 : vector<8x64xf32>
    %127 = vector.extract_strided_slice %84 {offsets = [2, 0], sizes = [1, 64], strides = [1, 1]} : vector<16x64xf32> to vector<1x64xf32>
    %128 = vector.broadcast %127 : vector<1x64xf32> to vector<8x64xf32>
    %129 = arith.mulf %128, %92 : vector<8x64xf32>
    %130 = math.exp %129 : vector<8x64xf32>
    %131 = arith.mulf %130, %115 : vector<8x64xf32>
    %132 = arith.addf %131, %126 : vector<8x64xf32>
    %133 = vector.extract_strided_slice %90 {offsets = [0, 2], sizes = [8, 1], strides = [1, 1]} : vector<8x16xf32> to vector<8x1xf32>
    %134 = vector.broadcast %133 : vector<8x1xf32> to vector<8x64xf32>
    %135 = arith.mulf %132, %134 : vector<8x64xf32>
    %cst_73 = arith.constant dense<0.000000e+00> : vector<64xf32>
    %136 = vector.multi_reduction <add>, %135, %cst_73 [0] : vector<8x64xf32> to vector<64xf32>
    %137 = vector.shape_cast %136 : vector<64xf32> to vector<1x64xf32>
    %c2 = arith.constant 2 : index
    %c0_74 = arith.constant 0 : index
    %138 = vector.load %arg33[%c2, %c0_74] : memref<16x64xf32, #tpu.memory_space<vmem>>, vector<1x64xf32>
    tpu.vector_store %arg33[%c2, %c0_74], %137 {strides = array<i32>} : memref<16x64xf32, #tpu.memory_space<vmem>>, vector<1x64xf32>,
    %139 = vector.extract_strided_slice %93 {offsets = [3, 0], sizes = [1, 64], strides = [1, 1]} : vector<16x64xf32> to vector<1x64xf32>
    %140 = vector.extract_strided_slice %87 {offsets = [0, 3], sizes = [8, 1], strides = [1, 1]} : vector<8x16xf32> to vector<8x1xf32>
    %141 = vector.broadcast %140 : vector<8x1xf32> to vector<8x64xf32>
    %142 = vector.broadcast %139 : vector<1x64xf32> to vector<8x64xf32>
    %143 = arith.mulf %141, %142 : vector<8x64xf32>
    %144 = vector.extract_strided_slice %84 {offsets = [3, 0], sizes = [1, 64], strides = [1, 1]} : vector<16x64xf32> to vector<1x64xf32>
    %145 = vector.broadcast %144 : vector<1x64xf32> to vector<8x64xf32>
    %146 = arith.mulf %145, %92 : vector<8x64xf32>
    %147 = math.exp %146 : vector<8x64xf32>
    %148 = arith.mulf %147, %132 : vector<8x64xf32>
    %149 = arith.addf %148, %143 : vector<8x64xf32>
    %150 = vector.extract_strided_slice %90 {offsets = [0, 3], sizes = [8, 1], strides = [1, 1]} : vector<8x16xf32> to vector<8x1xf32>
    %151 = vector.broadcast %150 : vector<8x1xf32> to vector<8x64xf32>
    %152 = arith.mulf %149, %151 : vector<8x64xf32>
    %cst_75 = arith.constant dense<0.000000e+00> : vector<64xf32>
    %153 = vector.multi_reduction <add>, %152, %cst_75 [0] : vector<8x64xf32> to vector<64xf32>
    %154 = vector.shape_cast %153 : vector<64xf32> to vector<1x64xf32>
    %c3 = arith.constant 3 : index
    %c0_76 = arith.constant 0 : index
    %155 = vector.load %arg33[%c3, %c0_76] : memref<16x64xf32, #tpu.memory_space<vmem>>, vector<1x64xf32>
    tpu.vector_store %arg33[%c3, %c0_76], %154 {strides = array<i32>} : memref<16x64xf32, #tpu.memory_space<vmem>>, vector<1x64xf32>,
    %156 = vector.extract_strided_slice %93 {offsets = [4, 0], sizes = [1, 64], strides = [1, 1]} : vector<16x64xf32> to vector<1x64xf32>
    %157 = vector.extract_strided_slice %87 {offsets = [0, 4], sizes = [8, 1], strides = [1, 1]} : vector<8x16xf32> to vector<8x1xf32>
    %158 = vector.broadcast %157 : vector<8x1xf32> to vector<8x64xf32>
    %159 = vector.broadcast %156 : vector<1x64xf32> to vector<8x64xf32>
    %160 = arith.mulf %158, %159 : vector<8x64xf32>
    %161 = vector.extract_strided_slice %84 {offsets = [4, 0], sizes = [1, 64], strides = [1, 1]} : vector<16x64xf32> to vector<1x64xf32>
    %162 = vector.broadcast %161 : vector<1x64xf32> to vector<8x64xf32>
    %163 = arith.mulf %162, %92 : vector<8x64xf32>
    %164 = math.exp %163 : vector<8x64xf32>
    %165 = arith.mulf %164, %149 : vector<8x64xf32>
    %166 = arith.addf %165, %160 : vector<8x64xf32>
    %167 = vector.extract_strided_slice %90 {offsets = [0, 4], sizes = [8, 1], strides = [1, 1]} : vector<8x16xf32> to vector<8x1xf32>
    %168 = vector.broadcast %167 : vector<8x1xf32> to vector<8x64xf32>
    %169 = arith.mulf %166, %168 : vector<8x64xf32>
    %cst_77 = arith.constant dense<0.000000e+00> : vector<64xf32>
    %170 = vector.multi_reduction <add>, %169, %cst_77 [0] : vector<8x64xf32> to vector<64xf32>
    %171 = vector.shape_cast %170 : vector<64xf32> to vector<1x64xf32>
    %c4 = arith.constant 4 : index
    %c0_78 = arith.constant 0 : index
    %172 = vector.load %arg33[%c4, %c0_78] : memref<16x64xf32, #tpu.memory_space<vmem>>, vector<1x64xf32>
    tpu.vector_store %arg33[%c4, %c0_78], %171 {strides = array<i32>} : memref<16x64xf32, #tpu.memory_space<vmem>>, vector<1x64xf32>,
    %173 = vector.extract_strided_slice %93 {offsets = [5, 0], sizes = [1, 64], strides = [1, 1]} : vector<16x64xf32> to vector<1x64xf32>
    %174 = vector.extract_strided_slice %87 {offsets = [0, 5], sizes = [8, 1], strides = [1, 1]} : vector<8x16xf32> to vector<8x1xf32>
    %175 = vector.broadcast %174 : vector<8x1xf32> to vector<8x64xf32>
    %176 = vector.broadcast %173 : vector<1x64xf32> to vector<8x64xf32>
    %177 = arith.mulf %175, %176 : vector<8x64xf32>
    %178 = vector.extract_strided_slice %84 {offsets = [5, 0], sizes = [1, 64], strides = [1, 1]} : vector<16x64xf32> to vector<1x64xf32>
    %179 = vector.broadcast %178 : vector<1x64xf32> to vector<8x64xf32>
    %180 = arith.mulf %179, %92 : vector<8x64xf32>
    %181 = math.exp %180 : vector<8x64xf32>
    %182 = arith.mulf %181, %166 : vector<8x64xf32>
    %183 = arith.addf %182, %177 : vector<8x64xf32>
    %184 = vector.extract_strided_slice %90 {offsets = [0, 5], sizes = [8, 1], strides = [1, 1]} : vector<8x16xf32> to vector<8x1xf32>
    %185 = vector.broadcast %184 : vector<8x1xf32> to vector<8x64xf32>
    %186 = arith.mulf %183, %185 : vector<8x64xf32>
    %cst_79 = arith.constant dense<0.000000e+00> : vector<64xf32>
    %187 = vector.multi_reduction <add>, %186, %cst_79 [0] : vector<8x64xf32> to vector<64xf32>
    %188 = vector.shape_cast %187 : vector<64xf32> to vector<1x64xf32>
    %c5 = arith.constant 5 : index
    %c0_80 = arith.constant 0 : index
    %189 = vector.load %arg33[%c5, %c0_80] : memref<16x64xf32, #tpu.memory_space<vmem>>, vector<1x64xf32>
    tpu.vector_store %arg33[%c5, %c0_80], %188 {strides = array<i32>} : memref<16x64xf32, #tpu.memory_space<vmem>>, vector<1x64xf32>,
    %190 = vector.extract_strided_slice %93 {offsets = [6, 0], sizes = [1, 64], strides = [1, 1]} : vector<16x64xf32> to vector<1x64xf32>
    %191 = vector.extract_strided_slice %87 {offsets = [0, 6], sizes = [8, 1], strides = [1, 1]} : vector<8x16xf32> to vector<8x1xf32>
    %192 = vector.broadcast %191 : vector<8x1xf32> to vector<8x64xf32>
    %193 = vector.broadcast %190 : vector<1x64xf32> to vector<8x64xf32>
    %194 = arith.mulf %192, %193 : vector<8x64xf32>
    %195 = vector.extract_strided_slice %84 {offsets = [6, 0], sizes = [1, 64], strides = [1, 1]} : vector<16x64xf32> to vector<1x64xf32>
    %196 = vector.broadcast %195 : vector<1x64xf32> to vector<8x64xf32>
    %197 = arith.mulf %196, %92 : vector<8x64xf32>
    %198 = math.exp %197 : vector<8x64xf32>
    %199 = arith.mulf %198, %183 : vector<8x64xf32>
    %200 = arith.addf %199, %194 : vector<8x64xf32>
    %201 = vector.extract_strided_slice %90 {offsets = [0, 6], sizes = [8, 1], strides = [1, 1]} : vector<8x16xf32> to vector<8x1xf32>
    %202 = vector.broadcast %201 : vector<8x1xf32> to vector<8x64xf32>
    %203 = arith.mulf %200, %202 : vector<8x64xf32>
    %cst_81 = arith.constant dense<0.000000e+00> : vector<64xf32>
    %204 = vector.multi_reduction <add>, %203, %cst_81 [0] : vector<8x64xf32> to vector<64xf32>
    %205 = vector.shape_cast %204 : vector<64xf32> to vector<1x64xf32>
    %c6 = arith.constant 6 : index
    %c0_82 = arith.constant 0 : index
    %206 = vector.load %arg33[%c6, %c0_82] : memref<16x64xf32, #tpu.memory_space<vmem>>, vector<1x64xf32>
    tpu.vector_store %arg33[%c6, %c0_82], %205 {strides = array<i32>} : memref<16x64xf32, #tpu.memory_space<vmem>>, vector<1x64xf32>,
    %207 = vector.extract_strided_slice %93 {offsets = [7, 0], sizes = [1, 64], strides = [1, 1]} : vector<16x64xf32> to vector<1x64xf32>
    %208 = vector.extract_strided_slice %87 {offsets = [0, 7], sizes = [8, 1], strides = [1, 1]} : vector<8x16xf32> to vector<8x1xf32>
    %209 = vector.broadcast %208 : vector<8x1xf32> to vector<8x64xf32>
    %210 = vector.broadcast %207 : vector<1x64xf32> to vector<8x64xf32>
    %211 = arith.mulf %209, %210 : vector<8x64xf32>
    %212 = vector.extract_strided_slice %84 {offsets = [7, 0], sizes = [1, 64], strides = [1, 1]} : vector<16x64xf32> to vector<1x64xf32>
    %213 = vector.broadcast %212 : vector<1x64xf32> to vector<8x64xf32>
    %214 = arith.mulf %213, %92 : vector<8x64xf32>
    %215 = math.exp %214 : vector<8x64xf32>
    %216 = arith.mulf %215, %200 : vector<8x64xf32>
    %217 = arith.addf %216, %211 : vector<8x64xf32>
    %218 = vector.extract_strided_slice %90 {offsets = [0, 7], sizes = [8, 1], strides = [1, 1]} : vector<8x16xf32> to vector<8x1xf32>
    %219 = vector.broadcast %218 : vector<8x1xf32> to vector<8x64xf32>
    %220 = arith.mulf %217, %219 : vector<8x64xf32>
    %cst_83 = arith.constant dense<0.000000e+00> : vector<64xf32>
    %221 = vector.multi_reduction <add>, %220, %cst_83 [0] : vector<8x64xf32> to vector<64xf32>
    %222 = vector.shape_cast %221 : vector<64xf32> to vector<1x64xf32>
    %c7 = arith.constant 7 : index
    %c0_84 = arith.constant 0 : index
    %223 = vector.load %arg33[%c7, %c0_84] : memref<16x64xf32, #tpu.memory_space<vmem>>, vector<1x64xf32>
    tpu.vector_store %arg33[%c7, %c0_84], %222 {strides = array<i32>} : memref<16x64xf32, #tpu.memory_space<vmem>>, vector<1x64xf32>,
    %224 = vector.extract_strided_slice %93 {offsets = [8, 0], sizes = [1, 64], strides = [1, 1]} : vector<16x64xf32> to vector<1x64xf32>
    %225 = vector.extract_strided_slice %87 {offsets = [0, 8], sizes = [8, 1], strides = [1, 1]} : vector<8x16xf32> to vector<8x1xf32>
    %226 = vector.broadcast %225 : vector<8x1xf32> to vector<8x64xf32>
    %227 = vector.broadcast %224 : vector<1x64xf32> to vector<8x64xf32>
    %228 = arith.mulf %226, %227 : vector<8x64xf32>
    %229 = vector.extract_strided_slice %90 {offsets = [0, 8], sizes = [8, 1], strides = [1, 1]} : vector<8x16xf32> to vector<8x1xf32>
    %230 = vector.broadcast %229 : vector<8x1xf32> to vector<8x64xf32>
    %231 = arith.mulf %228, %230 : vector<8x64xf32>
    %cst_85 = arith.constant dense<0.000000e+00> : vector<64xf32>
    %232 = vector.multi_reduction <add>, %231, %cst_85 [0] : vector<8x64xf32> to vector<64xf32>
    %233 = vector.shape_cast %232 : vector<64xf32> to vector<1x64xf32>
    %c8 = arith.constant 8 : index
    %c0_86 = arith.constant 0 : index
    %234 = vector.load %arg33[%c8, %c0_86] : memref<16x64xf32, #tpu.memory_space<vmem>>, vector<1x64xf32>
    tpu.vector_store %arg33[%c8, %c0_86], %233 {strides = array<i32>} : memref<16x64xf32, #tpu.memory_space<vmem>>, vector<1x64xf32>,
    %235 = vector.extract_strided_slice %93 {offsets = [9, 0], sizes = [1, 64], strides = [1, 1]} : vector<16x64xf32> to vector<1x64xf32>
    %236 = vector.extract_strided_slice %87 {offsets = [0, 9], sizes = [8, 1], strides = [1, 1]} : vector<8x16xf32> to vector<8x1xf32>
    %237 = vector.broadcast %236 : vector<8x1xf32> to vector<8x64xf32>
    %238 = vector.broadcast %235 : vector<1x64xf32> to vector<8x64xf32>
    %239 = arith.mulf %237, %238 : vector<8x64xf32>
    %240 = vector.extract_strided_slice %84 {offsets = [9, 0], sizes = [1, 64], strides = [1, 1]} : vector<16x64xf32> to vector<1x64xf32>
    %241 = vector.broadcast %240 : vector<1x64xf32> to vector<8x64xf32>
    %242 = arith.mulf %241, %92 : vector<8x64xf32>
    %243 = math.exp %242 : vector<8x64xf32>
    %244 = arith.mulf %243, %228 : vector<8x64xf32>
    %245 = arith.addf %244, %239 : vector<8x64xf32>
    %246 = vector.extract_strided_slice %90 {offsets = [0, 9], sizes = [8, 1], strides = [1, 1]} : vector<8x16xf32> to vector<8x1xf32>
    %247 = vector.broadcast %246 : vector<8x1xf32> to vector<8x64xf32>
    %248 = arith.mulf %245, %247 : vector<8x64xf32>
    %cst_87 = arith.constant dense<0.000000e+00> : vector<64xf32>
    %249 = vector.multi_reduction <add>, %248, %cst_87 [0] : vector<8x64xf32> to vector<64xf32>
    %250 = vector.shape_cast %249 : vector<64xf32> to vector<1x64xf32>
    %c9 = arith.constant 9 : index
    %c0_88 = arith.constant 0 : index
    %251 = vector.load %arg33[%c9, %c0_88] : memref<16x64xf32, #tpu.memory_space<vmem>>, vector<1x64xf32>
    tpu.vector_store %arg33[%c9, %c0_88], %250 {strides = array<i32>} : memref<16x64xf32, #tpu.memory_space<vmem>>, vector<1x64xf32>,
    %252 = vector.extract_strided_slice %93 {offsets = [10, 0], sizes = [1, 64], strides = [1, 1]} : vector<16x64xf32> to vector<1x64xf32>
    %253 = vector.extract_strided_slice %87 {offsets = [0, 10], sizes = [8, 1], strides = [1, 1]} : vector<8x16xf32> to vector<8x1xf32>
    %254 = vector.broadcast %253 : vector<8x1xf32> to vector<8x64xf32>
    %255 = vector.broadcast %252 : vector<1x64xf32> to vector<8x64xf32>
    %256 = arith.mulf %254, %255 : vector<8x64xf32>
    %257 = vector.extract_strided_slice %84 {offsets = [10, 0], sizes = [1, 64], strides = [1, 1]} : vector<16x64xf32> to vector<1x64xf32>
    %258 = vector.broadcast %257 : vector<1x64xf32> to vector<8x64xf32>
    %259 = arith.mulf %258, %92 : vector<8x64xf32>
    %260 = math.exp %259 : vector<8x64xf32>
    %261 = arith.mulf %260, %245 : vector<8x64xf32>
    %262 = arith.addf %261, %256 : vector<8x64xf32>
    %263 = vector.extract_strided_slice %90 {offsets = [0, 10], sizes = [8, 1], strides = [1, 1]} : vector<8x16xf32> to vector<8x1xf32>
    %264 = vector.broadcast %263 : vector<8x1xf32> to vector<8x64xf32>
    %265 = arith.mulf %262, %264 : vector<8x64xf32>
    %cst_89 = arith.constant dense<0.000000e+00> : vector<64xf32>
    %266 = vector.multi_reduction <add>, %265, %cst_89 [0] : vector<8x64xf32> to vector<64xf32>
    %267 = vector.shape_cast %266 : vector<64xf32> to vector<1x64xf32>
    %c10 = arith.constant 10 : index
    %c0_90 = arith.constant 0 : index
    %268 = vector.load %arg33[%c10, %c0_90] : memref<16x64xf32, #tpu.memory_space<vmem>>, vector<1x64xf32>
    tpu.vector_store %arg33[%c10, %c0_90], %267 {strides = array<i32>} : memref<16x64xf32, #tpu.memory_space<vmem>>, vector<1x64xf32>,
    %269 = vector.extract_strided_slice %93 {offsets = [11, 0], sizes = [1, 64], strides = [1, 1]} : vector<16x64xf32> to vector<1x64xf32>
    %270 = vector.extract_strided_slice %87 {offsets = [0, 11], sizes = [8, 1], strides = [1, 1]} : vector<8x16xf32> to vector<8x1xf32>
    %271 = vector.broadcast %270 : vector<8x1xf32> to vector<8x64xf32>
    %272 = vector.broadcast %269 : vector<1x64xf32> to vector<8x64xf32>
    %273 = arith.mulf %271, %272 : vector<8x64xf32>
    %274 = vector.extract_strided_slice %84 {offsets = [11, 0], sizes = [1, 64], strides = [1, 1]} : vector<16x64xf32> to vector<1x64xf32>
    %275 = vector.broadcast %274 : vector<1x64xf32> to vector<8x64xf32>
    %276 = arith.mulf %275, %92 : vector<8x64xf32>
    %277 = math.exp %276 : vector<8x64xf32>
    %278 = arith.mulf %277, %262 : vector<8x64xf32>
    %279 = arith.addf %278, %273 : vector<8x64xf32>
    %280 = vector.extract_strided_slice %90 {offsets = [0, 11], sizes = [8, 1], strides = [1, 1]} : vector<8x16xf32> to vector<8x1xf32>
    %281 = vector.broadcast %280 : vector<8x1xf32> to vector<8x64xf32>
    %282 = arith.mulf %279, %281 : vector<8x64xf32>
    %cst_91 = arith.constant dense<0.000000e+00> : vector<64xf32>
    %283 = vector.multi_reduction <add>, %282, %cst_91 [0] : vector<8x64xf32> to vector<64xf32>
    %284 = vector.shape_cast %283 : vector<64xf32> to vector<1x64xf32>
    %c11 = arith.constant 11 : index
    %c0_92 = arith.constant 0 : index
    %285 = vector.load %arg33[%c11, %c0_92] : memref<16x64xf32, #tpu.memory_space<vmem>>, vector<1x64xf32>
    tpu.vector_store %arg33[%c11, %c0_92], %284 {strides = array<i32>} : memref<16x64xf32, #tpu.memory_space<vmem>>, vector<1x64xf32>,
    %286 = vector.extract_strided_slice %93 {offsets = [12, 0], sizes = [1, 64], strides = [1, 1]} : vector<16x64xf32> to vector<1x64xf32>
    %287 = vector.extract_strided_slice %87 {offsets = [0, 12], sizes = [8, 1], strides = [1, 1]} : vector<8x16xf32> to vector<8x1xf32>
    %288 = vector.broadcast %287 : vector<8x1xf32> to vector<8x64xf32>
    %289 = vector.broadcast %286 : vector<1x64xf32> to vector<8x64xf32>
    %290 = arith.mulf %288, %289 : vector<8x64xf32>
    %291 = vector.extract_strided_slice %84 {offsets = [12, 0], sizes = [1, 64], strides = [1, 1]} : vector<16x64xf32> to vector<1x64xf32>
    %292 = vector.broadcast %291 : vector<1x64xf32> to vector<8x64xf32>
    %293 = arith.mulf %292, %92 : vector<8x64xf32>
    %294 = math.exp %293 : vector<8x64xf32>
    %295 = arith.mulf %294, %279 : vector<8x64xf32>
    %296 = arith.addf %295, %290 : vector<8x64xf32>
    %297 = vector.extract_strided_slice %90 {offsets = [0, 12], sizes = [8, 1], strides = [1, 1]} : vector<8x16xf32> to vector<8x1xf32>
    %298 = vector.broadcast %297 : vector<8x1xf32> to vector<8x64xf32>
    %299 = arith.mulf %296, %298 : vector<8x64xf32>
    %cst_93 = arith.constant dense<0.000000e+00> : vector<64xf32>
    %300 = vector.multi_reduction <add>, %299, %cst_93 [0] : vector<8x64xf32> to vector<64xf32>
    %301 = vector.shape_cast %300 : vector<64xf32> to vector<1x64xf32>
    %c12 = arith.constant 12 : index
    %c0_94 = arith.constant 0 : index
    %302 = vector.load %arg33[%c12, %c0_94] : memref<16x64xf32, #tpu.memory_space<vmem>>, vector<1x64xf32>
    tpu.vector_store %arg33[%c12, %c0_94], %301 {strides = array<i32>} : memref<16x64xf32, #tpu.memory_space<vmem>>, vector<1x64xf32>,
    %303 = vector.extract_strided_slice %93 {offsets = [13, 0], sizes = [1, 64], strides = [1, 1]} : vector<16x64xf32> to vector<1x64xf32>
    %304 = vector.extract_strided_slice %87 {offsets = [0, 13], sizes = [8, 1], strides = [1, 1]} : vector<8x16xf32> to vector<8x1xf32>
    %305 = vector.broadcast %304 : vector<8x1xf32> to vector<8x64xf32>
    %306 = vector.broadcast %303 : vector<1x64xf32> to vector<8x64xf32>
    %307 = arith.mulf %305, %306 : vector<8x64xf32>
    %308 = vector.extract_strided_slice %84 {offsets = [13, 0], sizes = [1, 64], strides = [1, 1]} : vector<16x64xf32> to vector<1x64xf32>
    %309 = vector.broadcast %308 : vector<1x64xf32> to vector<8x64xf32>
    %310 = arith.mulf %309, %92 : vector<8x64xf32>
    %311 = math.exp %310 : vector<8x64xf32>
    %312 = arith.mulf %311, %296 : vector<8x64xf32>
    %313 = arith.addf %312, %307 : vector<8x64xf32>
    %314 = vector.extract_strided_slice %90 {offsets = [0, 13], sizes = [8, 1], strides = [1, 1]} : vector<8x16xf32> to vector<8x1xf32>
    %315 = vector.broadcast %314 : vector<8x1xf32> to vector<8x64xf32>
    %316 = arith.mulf %313, %315 : vector<8x64xf32>
    %cst_95 = arith.constant dense<0.000000e+00> : vector<64xf32>
    %317 = vector.multi_reduction <add>, %316, %cst_95 [0] : vector<8x64xf32> to vector<64xf32>
    %318 = vector.shape_cast %317 : vector<64xf32> to vector<1x64xf32>
    %c13 = arith.constant 13 : index
    %c0_96 = arith.constant 0 : index
    %319 = vector.load %arg33[%c13, %c0_96] : memref<16x64xf32, #tpu.memory_space<vmem>>, vector<1x64xf32>
    tpu.vector_store %arg33[%c13, %c0_96], %318 {strides = array<i32>} : memref<16x64xf32, #tpu.memory_space<vmem>>, vector<1x64xf32>,
    %320 = vector.extract_strided_slice %93 {offsets = [14, 0], sizes = [1, 64], strides = [1, 1]} : vector<16x64xf32> to vector<1x64xf32>
    %321 = vector.extract_strided_slice %87 {offsets = [0, 14], sizes = [8, 1], strides = [1, 1]} : vector<8x16xf32> to vector<8x1xf32>
    %322 = vector.broadcast %321 : vector<8x1xf32> to vector<8x64xf32>
    %323 = vector.broadcast %320 : vector<1x64xf32> to vector<8x64xf32>
    %324 = arith.mulf %322, %323 : vector<8x64xf32>
    %325 = vector.extract_strided_slice %84 {offsets = [14, 0], sizes = [1, 64], strides = [1, 1]} : vector<16x64xf32> to vector<1x64xf32>
    %326 = vector.broadcast %325 : vector<1x64xf32> to vector<8x64xf32>
    %327 = arith.mulf %326, %92 : vector<8x64xf32>
    %328 = math.exp %327 : vector<8x64xf32>
    %329 = arith.mulf %328, %313 : vector<8x64xf32>
    %330 = arith.addf %329, %324 : vector<8x64xf32>
    %331 = vector.extract_strided_slice %90 {offsets = [0, 14], sizes = [8, 1], strides = [1, 1]} : vector<8x16xf32> to vector<8x1xf32>
    %332 = vector.broadcast %331 : vector<8x1xf32> to vector<8x64xf32>
    %333 = arith.mulf %330, %332 : vector<8x64xf32>
    %cst_97 = arith.constant dense<0.000000e+00> : vector<64xf32>
    %334 = vector.multi_reduction <add>, %333, %cst_97 [0] : vector<8x64xf32> to vector<64xf32>
    %335 = vector.shape_cast %334 : vector<64xf32> to vector<1x64xf32>
    %c14 = arith.constant 14 : index
    %c0_98 = arith.constant 0 : index
    %336 = vector.load %arg33[%c14, %c0_98] : memref<16x64xf32, #tpu.memory_space<vmem>>, vector<1x64xf32>
    tpu.vector_store %arg33[%c14, %c0_98], %335 {strides = array<i32>} : memref<16x64xf32, #tpu.memory_space<vmem>>, vector<1x64xf32>,
    %337 = vector.extract_strided_slice %93 {offsets = [15, 0], sizes = [1, 64], strides = [1, 1]} : vector<16x64xf32> to vector<1x64xf32>
    %338 = vector.extract_strided_slice %87 {offsets = [0, 15], sizes = [8, 1], strides = [1, 1]} : vector<8x16xf32> to vector<8x1xf32>
    %339 = vector.broadcast %338 : vector<8x1xf32> to vector<8x64xf32>
    %340 = vector.broadcast %337 : vector<1x64xf32> to vector<8x64xf32>
    %341 = arith.mulf %339, %340 : vector<8x64xf32>
    %342 = vector.extract_strided_slice %84 {offsets = [15, 0], sizes = [1, 64], strides = [1, 1]} : vector<16x64xf32> to vector<1x64xf32>
    %343 = vector.broadcast %342 : vector<1x64xf32> to vector<8x64xf32>
    %344 = arith.mulf %343, %92 : vector<8x64xf32>
    %345 = math.exp %344 : vector<8x64xf32>
    %346 = arith.mulf %345, %330 : vector<8x64xf32>
    %347 = arith.addf %346, %341 : vector<8x64xf32>
    %348 = vector.extract_strided_slice %90 {offsets = [0, 15], sizes = [8, 1], strides = [1, 1]} : vector<8x16xf32> to vector<8x1xf32>
    %349 = vector.broadcast %348 : vector<8x1xf32> to vector<8x64xf32>
    %350 = arith.mulf %347, %349 : vector<8x64xf32>
    %cst_99 = arith.constant dense<0.000000e+00> : vector<64xf32>
    %351 = vector.multi_reduction <add>, %350, %cst_99 [0] : vector<8x64xf32> to vector<64xf32>
    %352 = vector.shape_cast %351 : vector<64xf32> to vector<1x64xf32>
    %c15 = arith.constant 15 : index
    %c0_100 = arith.constant 0 : index
    %353 = vector.load %arg33[%c15, %c0_100] : memref<16x64xf32, #tpu.memory_space<vmem>>, vector<1x64xf32>
    tpu.vector_store %arg33[%c15, %c0_100], %352 {strides = array<i32>} : memref<16x64xf32, #tpu.memory_space<vmem>>, vector<1x64xf32>,
    %c0_101 = arith.constant 0 : index
    %c0_102 = arith.constant 0 : index
    %354 = vector.load %arg33[%c0_101, %c0_102] : memref<16x64xf32, #tpu.memory_space<vmem>>, vector<16x64xf32>
    %cst_103 = arith.constant 0.000000e+00 : f32
    %355 = vector.broadcast %cst_103 : f32 to vector<16x64xf32>
    %356 = arith.subf %355, %38 : vector<16x64xf32>
    %357 = math.exp %356 : vector<16x64xf32>
    %cst_104 = arith.constant 1.000000e+00 : f32
    %358 = vector.broadcast %cst_104 : f32 to vector<16x64xf32>
    %359 = arith.addf %358, %357 : vector<16x64xf32>
    %cst_105 = arith.constant 1.000000e+00 : f32
    %360 = vector.broadcast %cst_105 : f32 to vector<16x64xf32>
    %361 = arith.divf %360, %359 : vector<16x64xf32>
    %362 = arith.mulf %38, %361 : vector<16x64xf32>
    %363 = arith.mulf %354, %362 : vector<16x64xf32>
    %c0_106 = arith.constant 0 : index
    %c0_107 = arith.constant 0 : index
    %c0_108 = arith.constant 0 : index
    %364 = vector.load %arg19[%c0_106, %c0_107, %c0_108] : memref<2x64x32xf32, #tpu.memory_space<vmem>>, vector<1x64x32xf32>
    %365 = vector.shape_cast %364 : vector<1x64x32xf32> to vector<64x32xf32>
    %cst_109 = arith.constant dense<0.000000e+00> : vector<16x32xf32>
    %366 = tpu.matmul %363, %365, %cst_109 {dimension_numbers = #tpu.dot_dimension_numbers<[1], [0], [0], [1], [0, 0, 1, 1], [], []>} : vector<16x64xf32>, vector<64x32xf32>, vector<16x32xf32> -> vector<16x32xf32>
    %c0_110 = arith.constant 0 : index
    %c0_111 = arith.constant 0 : index
    %c0_112 = arith.constant 0 : index
    %367 = vector.load %arg20[%c0_110, %c0_111, %c0_112] : memref<2x1x32xf32, #tpu.memory_space<vmem>>, vector<1x1x32xf32>
    %368 = vector.shape_cast %367 : vector<1x1x32xf32> to vector<1x32xf32>
    %369 = vector.broadcast %368 : vector<1x32xf32> to vector<16x32xf32>
    %370 = arith.addf %366, %369 : vector<16x32xf32>
    %371 = arith.addf %8, %370 : vector<16x32xf32>
    %372 = arith.mulf %371, %371 : vector<16x32xf32>
    %cst_113 = arith.constant dense<0.000000e+00> : vector<16xf32>
    %373 = vector.multi_reduction <add>, %372, %cst_113 [1] : vector<16x32xf32> to vector<16xf32>
    %374 = vector.shape_cast %373 : vector<16xf32> to vector<16x1xf32>
    %cst_114 = arith.constant 3.200000e+01 : f32
    %375 = vector.broadcast %cst_114 : f32 to vector<16x1xf32>
    %376 = arith.divf %374, %375 : vector<16x1xf32>
    %cst_115 = arith.constant 9.99999974E-6 : f32
    %377 = vector.broadcast %cst_115 : f32 to vector<16x1xf32>
    %378 = arith.addf %376, %377 : vector<16x1xf32>
    %379 = math.rsqrt %378 : vector<16x1xf32>
    %380 = vector.broadcast %379 : vector<16x1xf32> to vector<16x32xf32>
    %381 = arith.mulf %371, %380 : vector<16x32xf32>
    %c1_116 = arith.constant 1 : index
    %c0_117 = arith.constant 0 : index
    %c0_118 = arith.constant 0 : index
    %382 = vector.load %arg6[%c1_116, %c0_117, %c0_118] : memref<2x1x32xf32, #tpu.memory_space<vmem>>, vector<1x1x32xf32>
    %383 = vector.shape_cast %382 : vector<1x1x32xf32> to vector<1x32xf32>
    %384 = vector.broadcast %383 : vector<1x32xf32> to vector<16x32xf32>
    %385 = arith.mulf %381, %384 : vector<16x32xf32>
    %c1_119 = arith.constant 1 : index
    %c0_120 = arith.constant 0 : index
    %c0_121 = arith.constant 0 : index
    %386 = vector.load %arg7[%c1_119, %c0_120, %c0_121] : memref<2x32x64xf32, #tpu.memory_space<vmem>>, vector<1x32x64xf32>
    %387 = vector.shape_cast %386 : vector<1x32x64xf32> to vector<32x64xf32>
    %cst_122 = arith.constant dense<0.000000e+00> : vector<16x64xf32>
    %388 = tpu.matmul %385, %387, %cst_122 {dimension_numbers = #tpu.dot_dimension_numbers<[1], [0], [0], [1], [0, 0, 1, 1], [], []>} : vector<16x32xf32>, vector<32x64xf32>, vector<16x64xf32> -> vector<16x64xf32>
    %c1_123 = arith.constant 1 : index
    %c0_124 = arith.constant 0 : index
    %c0_125 = arith.constant 0 : index
    %389 = vector.load %arg8[%c1_123, %c0_124, %c0_125] : memref<2x1x64xf32, #tpu.memory_space<vmem>>, vector<1x1x64xf32>
    %390 = vector.shape_cast %389 : vector<1x1x64xf32> to vector<1x64xf32>
    %391 = vector.broadcast %390 : vector<1x64xf32> to vector<16x64xf32>
    %392 = arith.addf %388, %391 : vector<16x64xf32>
    %c1_126 = arith.constant 1 : index
    %c0_127 = arith.constant 0 : index
    %c0_128 = arith.constant 0 : index
    %393 = vector.load %arg9[%c1_126, %c0_127, %c0_128] : memref<2x32x64xf32, #tpu.memory_space<vmem>>, vector<1x32x64xf32>
    %394 = vector.shape_cast %393 : vector<1x32x64xf32> to vector<32x64xf32>
    %cst_129 = arith.constant dense<0.000000e+00> : vector<16x64xf32>
    %395 = tpu.matmul %385, %394, %cst_129 {dimension_numbers = #tpu.dot_dimension_numbers<[1], [0], [0], [1], [0, 0, 1, 1], [], []>} : vector<16x32xf32>, vector<32x64xf32>, vector<16x64xf32> -> vector<16x64xf32>
    %c1_130 = arith.constant 1 : index
    %c0_131 = arith.constant 0 : index
    %c0_132 = arith.constant 0 : index
    %396 = vector.load %arg10[%c1_130, %c0_131, %c0_132] : memref<2x1x64xf32, #tpu.memory_space<vmem>>, vector<1x1x64xf32>
    %397 = vector.shape_cast %396 : vector<1x1x64xf32> to vector<1x64xf32>
    %398 = vector.broadcast %397 : vector<1x64xf32> to vector<16x64xf32>
    %399 = arith.addf %395, %398 : vector<16x64xf32>
    %cst_133 = arith.constant dense<0.000000e+00> : vector<16x64xf32>
    %400 = tpu.matmul %9, %392, %cst_133 {dimension_numbers = #tpu.dot_dimension_numbers<[1], [0], [0], [1], [0, 0, 1, 1], [], []>} : vector<16x16xf32>, vector<16x64xf32>, vector<16x64xf32> -> vector<16x64xf32>
    %cst_134 = arith.constant dense<0.000000e+00> : vector<16x64xf32>
    %401 = tpu.matmul %10, %392, %cst_134 {dimension_numbers = #tpu.dot_dimension_numbers<[1], [0], [0], [1], [0, 0, 1, 1], [], []>} : vector<16x16xf32>, vector<16x64xf32>, vector<16x64xf32> -> vector<16x64xf32>
    %c1_135 = arith.constant 1 : index
    %c0_136 = arith.constant 0 : index
    %c0_137 = arith.constant 0 : index
    %402 = vector.load %arg11[%c1_135, %c0_136, %c0_137] : memref<2x3x64xf32, #tpu.memory_space<vmem>>, vector<1x3x64xf32>
    %403 = vector.shape_cast %402 : vector<1x3x64xf32> to vector<3x64xf32>
    %404 = vector.extract_strided_slice %403 {offsets = [0, 0], sizes = [1, 64], strides = [1, 1]} : vector<3x64xf32> to vector<1x64xf32>
    %405 = vector.broadcast %404 : vector<1x64xf32> to vector<16x64xf32>
    %406 = arith.mulf %405, %401 : vector<16x64xf32>
    %407 = vector.extract_strided_slice %403 {offsets = [1, 0], sizes = [1, 64], strides = [1, 1]} : vector<3x64xf32> to vector<1x64xf32>
    %408 = vector.broadcast %407 : vector<1x64xf32> to vector<16x64xf32>
    %409 = arith.mulf %408, %400 : vector<16x64xf32>
    %410 = arith.addf %406, %409 : vector<16x64xf32>
    %411 = vector.extract_strided_slice %403 {offsets = [2, 0], sizes = [1, 64], strides = [1, 1]} : vector<3x64xf32> to vector<1x64xf32>
    %412 = vector.broadcast %411 : vector<1x64xf32> to vector<16x64xf32>
    %413 = arith.mulf %412, %392 : vector<16x64xf32>
    %414 = arith.addf %410, %413 : vector<16x64xf32>
    %c1_138 = arith.constant 1 : index
    %c0_139 = arith.constant 0 : index
    %c0_140 = arith.constant 0 : index
    %415 = vector.load %arg12[%c1_138, %c0_139, %c0_140] : memref<2x1x64xf32, #tpu.memory_space<vmem>>, vector<1x1x64xf32>
    %416 = vector.shape_cast %415 : vector<1x1x64xf32> to vector<1x64xf32>
    %417 = vector.broadcast %416 : vector<1x64xf32> to vector<16x64xf32>
    %418 = arith.addf %414, %417 : vector<16x64xf32>
    %cst_141 = arith.constant 0.000000e+00 : f32
    %419 = vector.broadcast %cst_141 : f32 to vector<16x64xf32>
    %420 = arith.subf %419, %418 : vector<16x64xf32>
    %421 = math.exp %420 : vector<16x64xf32>
    %cst_142 = arith.constant 1.000000e+00 : f32
    %422 = vector.broadcast %cst_142 : f32 to vector<16x64xf32>
    %423 = arith.addf %422, %421 : vector<16x64xf32>
    %cst_143 = arith.constant 1.000000e+00 : f32
    %424 = vector.broadcast %cst_143 : f32 to vector<16x64xf32>
    %425 = arith.divf %424, %423 : vector<16x64xf32>
    %426 = arith.mulf %418, %425 : vector<16x64xf32>
    %c1_144 = arith.constant 1 : index
    %c0_145 = arith.constant 0 : index
    %c0_146 = arith.constant 0 : index
    %427 = vector.load %arg13[%c1_144, %c0_145, %c0_146] : memref<2x64x8xf32, #tpu.memory_space<vmem>>, vector<1x64x8xf32>
    %428 = vector.shape_cast %427 : vector<1x64x8xf32> to vector<64x8xf32>
    %cst_147 = arith.constant dense<0.000000e+00> : vector<16x8xf32>
    %429 = tpu.matmul %426, %428, %cst_147 {dimension_numbers = #tpu.dot_dimension_numbers<[1], [0], [0], [1], [0, 0, 1, 1], [], []>} : vector<16x64xf32>, vector<64x8xf32>, vector<16x8xf32> -> vector<16x8xf32>
    %c1_148 = arith.constant 1 : index
    %c0_149 = arith.constant 0 : index
    %c0_150 = arith.constant 0 : index
    %430 = vector.load %arg16[%c1_148, %c0_149, %c0_150] : memref<2x8x64xf32, #tpu.memory_space<vmem>>, vector<1x8x64xf32>
    %431 = vector.shape_cast %430 : vector<1x8x64xf32> to vector<8x64xf32>
    %cst_151 = arith.constant dense<0.000000e+00> : vector<16x64xf32>
    %432 = tpu.matmul %429, %431, %cst_151 {dimension_numbers = #tpu.dot_dimension_numbers<[1], [0], [0], [1], [0, 0, 1, 1], [], []>} : vector<16x8xf32>, vector<8x64xf32>, vector<16x64xf32> -> vector<16x64xf32>
    %c1_152 = arith.constant 1 : index
    %c0_153 = arith.constant 0 : index
    %c0_154 = arith.constant 0 : index
    %433 = vector.load %arg17[%c1_152, %c0_153, %c0_154] : memref<2x1x64xf32, #tpu.memory_space<vmem>>, vector<1x1x64xf32>
    %434 = vector.shape_cast %433 : vector<1x1x64xf32> to vector<1x64xf32>
    %435 = vector.broadcast %434 : vector<1x64xf32> to vector<16x64xf32>
    %436 = arith.addf %432, %435 : vector<16x64xf32>
    %cst_155 = arith.constant 2.000000e+01 : f32
    %437 = vector.broadcast %cst_155 : f32 to vector<16x64xf32>
    %438 = arith.cmpf ogt, %436, %437 : vector<16x64xf32>
    %cst_156 = arith.constant 2.000000e+01 : f32
    %439 = vector.broadcast %cst_156 : f32 to vector<16x64xf32>
    %440 = arith.minimumf %436, %439 : vector<16x64xf32>
    %441 = math.exp %440 : vector<16x64xf32>
    %cst_157 = arith.constant 1.000000e+00 : f32
    %442 = vector.broadcast %cst_157 : f32 to vector<16x64xf32>
    %443 = arith.addf %442, %441 : vector<16x64xf32>
    %444 = math.log %443 : vector<16x64xf32>
    %445 = arith.select %438, %436, %444 : vector<16x64xi1>, vector<16x64xf32>
    %c1_158 = arith.constant 1 : index
    %c0_159 = arith.constant 0 : index
    %c0_160 = arith.constant 0 : index
    %446 = vector.load %arg14[%c1_158, %c0_159, %c0_160] : memref<2x8x64xf32, #tpu.memory_space<vmem>>, vector<1x8x64xf32>
    %447 = vector.shape_cast %446 : vector<1x8x64xf32> to vector<8x64xf32>
    %cst_161 = arith.constant dense<0.000000e+00> : vector<8x16xf32>
    %448 = tpu.matmul %447, %426, %cst_161 {dimension_numbers = #tpu.dot_dimension_numbers<[1], [1], [0], [0], [0, 0, 1, 0], [], []>} : vector<8x64xf32>, vector<16x64xf32>, vector<8x16xf32> -> vector<8x16xf32>
    %c1_162 = arith.constant 1 : index
    %c0_163 = arith.constant 0 : index
    %c0_164 = arith.constant 0 : index
    %449 = vector.load %arg15[%c1_162, %c0_163, %c0_164] : memref<2x8x64xf32, #tpu.memory_space<vmem>>, vector<1x8x64xf32>
    %450 = vector.shape_cast %449 : vector<1x8x64xf32> to vector<8x64xf32>
    %cst_165 = arith.constant dense<0.000000e+00> : vector<8x16xf32>
    %451 = tpu.matmul %450, %426, %cst_165 {dimension_numbers = #tpu.dot_dimension_numbers<[1], [1], [0], [0], [0, 0, 1, 0], [], []>} : vector<8x64xf32>, vector<16x64xf32>, vector<8x16xf32> -> vector<8x16xf32>
    %c1_166 = arith.constant 1 : index
    %c0_167 = arith.constant 0 : index
    %c0_168 = arith.constant 0 : index
    %452 = vector.load %arg18[%c1_166, %c0_167, %c0_168] : memref<2x8x64xf32, #tpu.memory_space<vmem>>, vector<1x8x64xf32>
    %453 = vector.shape_cast %452 : vector<1x8x64xf32> to vector<8x64xf32>
    %454 = arith.mulf %445, %426 : vector<16x64xf32>
    %455 = vector.extract_strided_slice %454 {offsets = [0, 0], sizes = [1, 64], strides = [1, 1]} : vector<16x64xf32> to vector<1x64xf32>
    %456 = vector.extract_strided_slice %448 {offsets = [0, 0], sizes = [8, 1], strides = [1, 1]} : vector<8x16xf32> to vector<8x1xf32>
    %457 = vector.broadcast %456 : vector<8x1xf32> to vector<8x64xf32>
    %458 = vector.broadcast %455 : vector<1x64xf32> to vector<8x64xf32>
    %459 = arith.mulf %457, %458 : vector<8x64xf32>
    %460 = vector.extract_strided_slice %451 {offsets = [0, 0], sizes = [8, 1], strides = [1, 1]} : vector<8x16xf32> to vector<8x1xf32>
    %461 = vector.broadcast %460 : vector<8x1xf32> to vector<8x64xf32>
    %462 = arith.mulf %459, %461 : vector<8x64xf32>
    %cst_169 = arith.constant dense<0.000000e+00> : vector<64xf32>
    %463 = vector.multi_reduction <add>, %462, %cst_169 [0] : vector<8x64xf32> to vector<64xf32>
    %464 = vector.shape_cast %463 : vector<64xf32> to vector<1x64xf32>
    %c0_170 = arith.constant 0 : index
    %c0_171 = arith.constant 0 : index
    %465 = vector.load %arg33[%c0_170, %c0_171] : memref<16x64xf32, #tpu.memory_space<vmem>>, vector<1x64xf32>
    tpu.vector_store %arg33[%c0_170, %c0_171], %464 {strides = array<i32>} : memref<16x64xf32, #tpu.memory_space<vmem>>, vector<1x64xf32>,
    %466 = vector.extract_strided_slice %454 {offsets = [1, 0], sizes = [1, 64], strides = [1, 1]} : vector<16x64xf32> to vector<1x64xf32>
    %467 = vector.extract_strided_slice %448 {offsets = [0, 1], sizes = [8, 1], strides = [1, 1]} : vector<8x16xf32> to vector<8x1xf32>
    %468 = vector.broadcast %467 : vector<8x1xf32> to vector<8x64xf32>
    %469 = vector.broadcast %466 : vector<1x64xf32> to vector<8x64xf32>
    %470 = arith.mulf %468, %469 : vector<8x64xf32>
    %471 = vector.extract_strided_slice %445 {offsets = [1, 0], sizes = [1, 64], strides = [1, 1]} : vector<16x64xf32> to vector<1x64xf32>
    %472 = vector.broadcast %471 : vector<1x64xf32> to vector<8x64xf32>
    %473 = arith.mulf %472, %453 : vector<8x64xf32>
    %474 = math.exp %473 : vector<8x64xf32>
    %475 = arith.mulf %474, %459 : vector<8x64xf32>
    %476 = arith.addf %475, %470 : vector<8x64xf32>
    %477 = vector.extract_strided_slice %451 {offsets = [0, 1], sizes = [8, 1], strides = [1, 1]} : vector<8x16xf32> to vector<8x1xf32>
    %478 = vector.broadcast %477 : vector<8x1xf32> to vector<8x64xf32>
    %479 = arith.mulf %476, %478 : vector<8x64xf32>
    %cst_172 = arith.constant dense<0.000000e+00> : vector<64xf32>
    %480 = vector.multi_reduction <add>, %479, %cst_172 [0] : vector<8x64xf32> to vector<64xf32>
    %481 = vector.shape_cast %480 : vector<64xf32> to vector<1x64xf32>
    %c1_173 = arith.constant 1 : index
    %c0_174 = arith.constant 0 : index
    %482 = vector.load %arg33[%c1_173, %c0_174] : memref<16x64xf32, #tpu.memory_space<vmem>>, vector<1x64xf32>
    tpu.vector_store %arg33[%c1_173, %c0_174], %481 {strides = array<i32>} : memref<16x64xf32, #tpu.memory_space<vmem>>, vector<1x64xf32>,
    %483 = vector.extract_strided_slice %454 {offsets = [2, 0], sizes = [1, 64], strides = [1, 1]} : vector<16x64xf32> to vector<1x64xf32>
    %484 = vector.extract_strided_slice %448 {offsets = [0, 2], sizes = [8, 1], strides = [1, 1]} : vector<8x16xf32> to vector<8x1xf32>
    %485 = vector.broadcast %484 : vector<8x1xf32> to vector<8x64xf32>
    %486 = vector.broadcast %483 : vector<1x64xf32> to vector<8x64xf32>
    %487 = arith.mulf %485, %486 : vector<8x64xf32>
    %488 = vector.extract_strided_slice %445 {offsets = [2, 0], sizes = [1, 64], strides = [1, 1]} : vector<16x64xf32> to vector<1x64xf32>
    %489 = vector.broadcast %488 : vector<1x64xf32> to vector<8x64xf32>
    %490 = arith.mulf %489, %453 : vector<8x64xf32>
    %491 = math.exp %490 : vector<8x64xf32>
    %492 = arith.mulf %491, %476 : vector<8x64xf32>
    %493 = arith.addf %492, %487 : vector<8x64xf32>
    %494 = vector.extract_strided_slice %451 {offsets = [0, 2], sizes = [8, 1], strides = [1, 1]} : vector<8x16xf32> to vector<8x1xf32>
    %495 = vector.broadcast %494 : vector<8x1xf32> to vector<8x64xf32>
    %496 = arith.mulf %493, %495 : vector<8x64xf32>
    %cst_175 = arith.constant dense<0.000000e+00> : vector<64xf32>
    %497 = vector.multi_reduction <add>, %496, %cst_175 [0] : vector<8x64xf32> to vector<64xf32>
    %498 = vector.shape_cast %497 : vector<64xf32> to vector<1x64xf32>
    %c2_176 = arith.constant 2 : index
    %c0_177 = arith.constant 0 : index
    %499 = vector.load %arg33[%c2_176, %c0_177] : memref<16x64xf32, #tpu.memory_space<vmem>>, vector<1x64xf32>
    tpu.vector_store %arg33[%c2_176, %c0_177], %498 {strides = array<i32>} : memref<16x64xf32, #tpu.memory_space<vmem>>, vector<1x64xf32>,
    %500 = vector.extract_strided_slice %454 {offsets = [3, 0], sizes = [1, 64], strides = [1, 1]} : vector<16x64xf32> to vector<1x64xf32>
    %501 = vector.extract_strided_slice %448 {offsets = [0, 3], sizes = [8, 1], strides = [1, 1]} : vector<8x16xf32> to vector<8x1xf32>
    %502 = vector.broadcast %501 : vector<8x1xf32> to vector<8x64xf32>
    %503 = vector.broadcast %500 : vector<1x64xf32> to vector<8x64xf32>
    %504 = arith.mulf %502, %503 : vector<8x64xf32>
    %505 = vector.extract_strided_slice %445 {offsets = [3, 0], sizes = [1, 64], strides = [1, 1]} : vector<16x64xf32> to vector<1x64xf32>
    %506 = vector.broadcast %505 : vector<1x64xf32> to vector<8x64xf32>
    %507 = arith.mulf %506, %453 : vector<8x64xf32>
    %508 = math.exp %507 : vector<8x64xf32>
    %509 = arith.mulf %508, %493 : vector<8x64xf32>
    %510 = arith.addf %509, %504 : vector<8x64xf32>
    %511 = vector.extract_strided_slice %451 {offsets = [0, 3], sizes = [8, 1], strides = [1, 1]} : vector<8x16xf32> to vector<8x1xf32>
    %512 = vector.broadcast %511 : vector<8x1xf32> to vector<8x64xf32>
    %513 = arith.mulf %510, %512 : vector<8x64xf32>
    %cst_178 = arith.constant dense<0.000000e+00> : vector<64xf32>
    %514 = vector.multi_reduction <add>, %513, %cst_178 [0] : vector<8x64xf32> to vector<64xf32>
    %515 = vector.shape_cast %514 : vector<64xf32> to vector<1x64xf32>
    %c3_179 = arith.constant 3 : index
    %c0_180 = arith.constant 0 : index
    %516 = vector.load %arg33[%c3_179, %c0_180] : memref<16x64xf32, #tpu.memory_space<vmem>>, vector<1x64xf32>
    tpu.vector_store %arg33[%c3_179, %c0_180], %515 {strides = array<i32>} : memref<16x64xf32, #tpu.memory_space<vmem>>, vector<1x64xf32>,
    %517 = vector.extract_strided_slice %454 {offsets = [4, 0], sizes = [1, 64], strides = [1, 1]} : vector<16x64xf32> to vector<1x64xf32>
    %518 = vector.extract_strided_slice %448 {offsets = [0, 4], sizes = [8, 1], strides = [1, 1]} : vector<8x16xf32> to vector<8x1xf32>
    %519 = vector.broadcast %518 : vector<8x1xf32> to vector<8x64xf32>
    %520 = vector.broadcast %517 : vector<1x64xf32> to vector<8x64xf32>
    %521 = arith.mulf %519, %520 : vector<8x64xf32>
    %522 = vector.extract_strided_slice %445 {offsets = [4, 0], sizes = [1, 64], strides = [1, 1]} : vector<16x64xf32> to vector<1x64xf32>
    %523 = vector.broadcast %522 : vector<1x64xf32> to vector<8x64xf32>
    %524 = arith.mulf %523, %453 : vector<8x64xf32>
    %525 = math.exp %524 : vector<8x64xf32>
    %526 = arith.mulf %525, %510 : vector<8x64xf32>
    %527 = arith.addf %526, %521 : vector<8x64xf32>
    %528 = vector.extract_strided_slice %451 {offsets = [0, 4], sizes = [8, 1], strides = [1, 1]} : vector<8x16xf32> to vector<8x1xf32>
    %529 = vector.broadcast %528 : vector<8x1xf32> to vector<8x64xf32>
    %530 = arith.mulf %527, %529 : vector<8x64xf32>
    %cst_181 = arith.constant dense<0.000000e+00> : vector<64xf32>
    %531 = vector.multi_reduction <add>, %530, %cst_181 [0] : vector<8x64xf32> to vector<64xf32>
    %532 = vector.shape_cast %531 : vector<64xf32> to vector<1x64xf32>
    %c4_182 = arith.constant 4 : index
    %c0_183 = arith.constant 0 : index
    %533 = vector.load %arg33[%c4_182, %c0_183] : memref<16x64xf32, #tpu.memory_space<vmem>>, vector<1x64xf32>
    tpu.vector_store %arg33[%c4_182, %c0_183], %532 {strides = array<i32>} : memref<16x64xf32, #tpu.memory_space<vmem>>, vector<1x64xf32>,
    %534 = vector.extract_strided_slice %454 {offsets = [5, 0], sizes = [1, 64], strides = [1, 1]} : vector<16x64xf32> to vector<1x64xf32>
    %535 = vector.extract_strided_slice %448 {offsets = [0, 5], sizes = [8, 1], strides = [1, 1]} : vector<8x16xf32> to vector<8x1xf32>
    %536 = vector.broadcast %535 : vector<8x1xf32> to vector<8x64xf32>
    %537 = vector.broadcast %534 : vector<1x64xf32> to vector<8x64xf32>
    %538 = arith.mulf %536, %537 : vector<8x64xf32>
    %539 = vector.extract_strided_slice %445 {offsets = [5, 0], sizes = [1, 64], strides = [1, 1]} : vector<16x64xf32> to vector<1x64xf32>
    %540 = vector.broadcast %539 : vector<1x64xf32> to vector<8x64xf32>
    %541 = arith.mulf %540, %453 : vector<8x64xf32>
    %542 = math.exp %541 : vector<8x64xf32>
    %543 = arith.mulf %542, %527 : vector<8x64xf32>
    %544 = arith.addf %543, %538 : vector<8x64xf32>
    %545 = vector.extract_strided_slice %451 {offsets = [0, 5], sizes = [8, 1], strides = [1, 1]} : vector<8x16xf32> to vector<8x1xf32>
    %546 = vector.broadcast %545 : vector<8x1xf32> to vector<8x64xf32>
    %547 = arith.mulf %544, %546 : vector<8x64xf32>
    %cst_184 = arith.constant dense<0.000000e+00> : vector<64xf32>
    %548 = vector.multi_reduction <add>, %547, %cst_184 [0] : vector<8x64xf32> to vector<64xf32>
    %549 = vector.shape_cast %548 : vector<64xf32> to vector<1x64xf32>
    %c5_185 = arith.constant 5 : index
    %c0_186 = arith.constant 0 : index
    %550 = vector.load %arg33[%c5_185, %c0_186] : memref<16x64xf32, #tpu.memory_space<vmem>>, vector<1x64xf32>
    tpu.vector_store %arg33[%c5_185, %c0_186], %549 {strides = array<i32>} : memref<16x64xf32, #tpu.memory_space<vmem>>, vector<1x64xf32>,
    %551 = vector.extract_strided_slice %454 {offsets = [6, 0], sizes = [1, 64], strides = [1, 1]} : vector<16x64xf32> to vector<1x64xf32>
    %552 = vector.extract_strided_slice %448 {offsets = [0, 6], sizes = [8, 1], strides = [1, 1]} : vector<8x16xf32> to vector<8x1xf32>
    %553 = vector.broadcast %552 : vector<8x1xf32> to vector<8x64xf32>
    %554 = vector.broadcast %551 : vector<1x64xf32> to vector<8x64xf32>
    %555 = arith.mulf %553, %554 : vector<8x64xf32>
    %556 = vector.extract_strided_slice %445 {offsets = [6, 0], sizes = [1, 64], strides = [1, 1]} : vector<16x64xf32> to vector<1x64xf32>
    %557 = vector.broadcast %556 : vector<1x64xf32> to vector<8x64xf32>
    %558 = arith.mulf %557, %453 : vector<8x64xf32>
    %559 = math.exp %558 : vector<8x64xf32>
    %560 = arith.mulf %559, %544 : vector<8x64xf32>
    %561 = arith.addf %560, %555 : vector<8x64xf32>
    %562 = vector.extract_strided_slice %451 {offsets = [0, 6], sizes = [8, 1], strides = [1, 1]} : vector<8x16xf32> to vector<8x1xf32>
    %563 = vector.broadcast %562 : vector<8x1xf32> to vector<8x64xf32>
    %564 = arith.mulf %561, %563 : vector<8x64xf32>
    %cst_187 = arith.constant dense<0.000000e+00> : vector<64xf32>
    %565 = vector.multi_reduction <add>, %564, %cst_187 [0] : vector<8x64xf32> to vector<64xf32>
    %566 = vector.shape_cast %565 : vector<64xf32> to vector<1x64xf32>
    %c6_188 = arith.constant 6 : index
    %c0_189 = arith.constant 0 : index
    %567 = vector.load %arg33[%c6_188, %c0_189] : memref<16x64xf32, #tpu.memory_space<vmem>>, vector<1x64xf32>
    tpu.vector_store %arg33[%c6_188, %c0_189], %566 {strides = array<i32>} : memref<16x64xf32, #tpu.memory_space<vmem>>, vector<1x64xf32>,
    %568 = vector.extract_strided_slice %454 {offsets = [7, 0], sizes = [1, 64], strides = [1, 1]} : vector<16x64xf32> to vector<1x64xf32>
    %569 = vector.extract_strided_slice %448 {offsets = [0, 7], sizes = [8, 1], strides = [1, 1]} : vector<8x16xf32> to vector<8x1xf32>
    %570 = vector.broadcast %569 : vector<8x1xf32> to vector<8x64xf32>
    %571 = vector.broadcast %568 : vector<1x64xf32> to vector<8x64xf32>
    %572 = arith.mulf %570, %571 : vector<8x64xf32>
    %573 = vector.extract_strided_slice %445 {offsets = [7, 0], sizes = [1, 64], strides = [1, 1]} : vector<16x64xf32> to vector<1x64xf32>
    %574 = vector.broadcast %573 : vector<1x64xf32> to vector<8x64xf32>
    %575 = arith.mulf %574, %453 : vector<8x64xf32>
    %576 = math.exp %575 : vector<8x64xf32>
    %577 = arith.mulf %576, %561 : vector<8x64xf32>
    %578 = arith.addf %577, %572 : vector<8x64xf32>
    %579 = vector.extract_strided_slice %451 {offsets = [0, 7], sizes = [8, 1], strides = [1, 1]} : vector<8x16xf32> to vector<8x1xf32>
    %580 = vector.broadcast %579 : vector<8x1xf32> to vector<8x64xf32>
    %581 = arith.mulf %578, %580 : vector<8x64xf32>
    %cst_190 = arith.constant dense<0.000000e+00> : vector<64xf32>
    %582 = vector.multi_reduction <add>, %581, %cst_190 [0] : vector<8x64xf32> to vector<64xf32>
    %583 = vector.shape_cast %582 : vector<64xf32> to vector<1x64xf32>
    %c7_191 = arith.constant 7 : index
    %c0_192 = arith.constant 0 : index
    %584 = vector.load %arg33[%c7_191, %c0_192] : memref<16x64xf32, #tpu.memory_space<vmem>>, vector<1x64xf32>
    tpu.vector_store %arg33[%c7_191, %c0_192], %583 {strides = array<i32>} : memref<16x64xf32, #tpu.memory_space<vmem>>, vector<1x64xf32>,
    %585 = vector.extract_strided_slice %454 {offsets = [8, 0], sizes = [1, 64], strides = [1, 1]} : vector<16x64xf32> to vector<1x64xf32>
    %586 = vector.extract_strided_slice %448 {offsets = [0, 8], sizes = [8, 1], strides = [1, 1]} : vector<8x16xf32> to vector<8x1xf32>
    %587 = vector.broadcast %586 : vector<8x1xf32> to vector<8x64xf32>
    %588 = vector.broadcast %585 : vector<1x64xf32> to vector<8x64xf32>
    %589 = arith.mulf %587, %588 : vector<8x64xf32>
    %590 = vector.extract_strided_slice %451 {offsets = [0, 8], sizes = [8, 1], strides = [1, 1]} : vector<8x16xf32> to vector<8x1xf32>
    %591 = vector.broadcast %590 : vector<8x1xf32> to vector<8x64xf32>
    %592 = arith.mulf %589, %591 : vector<8x64xf32>
    %cst_193 = arith.constant dense<0.000000e+00> : vector<64xf32>
    %593 = vector.multi_reduction <add>, %592, %cst_193 [0] : vector<8x64xf32> to vector<64xf32>
    %594 = vector.shape_cast %593 : vector<64xf32> to vector<1x64xf32>
    %c8_194 = arith.constant 8 : index
    %c0_195 = arith.constant 0 : index
    %595 = vector.load %arg33[%c8_194, %c0_195] : memref<16x64xf32, #tpu.memory_space<vmem>>, vector<1x64xf32>
    tpu.vector_store %arg33[%c8_194, %c0_195], %594 {strides = array<i32>} : memref<16x64xf32, #tpu.memory_space<vmem>>, vector<1x64xf32>,
    %596 = vector.extract_strided_slice %454 {offsets = [9, 0], sizes = [1, 64], strides = [1, 1]} : vector<16x64xf32> to vector<1x64xf32>
    %597 = vector.extract_strided_slice %448 {offsets = [0, 9], sizes = [8, 1], strides = [1, 1]} : vector<8x16xf32> to vector<8x1xf32>
    %598 = vector.broadcast %597 : vector<8x1xf32> to vector<8x64xf32>
    %599 = vector.broadcast %596 : vector<1x64xf32> to vector<8x64xf32>
    %600 = arith.mulf %598, %599 : vector<8x64xf32>
    %601 = vector.extract_strided_slice %445 {offsets = [9, 0], sizes = [1, 64], strides = [1, 1]} : vector<16x64xf32> to vector<1x64xf32>
    %602 = vector.broadcast %601 : vector<1x64xf32> to vector<8x64xf32>
    %603 = arith.mulf %602, %453 : vector<8x64xf32>
    %604 = math.exp %603 : vector<8x64xf32>
    %605 = arith.mulf %604, %589 : vector<8x64xf32>
    %606 = arith.addf %605, %600 : vector<8x64xf32>
    %607 = vector.extract_strided_slice %451 {offsets = [0, 9], sizes = [8, 1], strides = [1, 1]} : vector<8x16xf32> to vector<8x1xf32>
    %608 = vector.broadcast %607 : vector<8x1xf32> to vector<8x64xf32>
    %609 = arith.mulf %606, %608 : vector<8x64xf32>
    %cst_196 = arith.constant dense<0.000000e+00> : vector<64xf32>
    %610 = vector.multi_reduction <add>, %609, %cst_196 [0] : vector<8x64xf32> to vector<64xf32>
    %611 = vector.shape_cast %610 : vector<64xf32> to vector<1x64xf32>
    %c9_197 = arith.constant 9 : index
    %c0_198 = arith.constant 0 : index
    %612 = vector.load %arg33[%c9_197, %c0_198] : memref<16x64xf32, #tpu.memory_space<vmem>>, vector<1x64xf32>
    tpu.vector_store %arg33[%c9_197, %c0_198], %611 {strides = array<i32>} : memref<16x64xf32, #tpu.memory_space<vmem>>, vector<1x64xf32>,
    %613 = vector.extract_strided_slice %454 {offsets = [10, 0], sizes = [1, 64], strides = [1, 1]} : vector<16x64xf32> to vector<1x64xf32>
    %614 = vector.extract_strided_slice %448 {offsets = [0, 10], sizes = [8, 1], strides = [1, 1]} : vector<8x16xf32> to vector<8x1xf32>
    %615 = vector.broadcast %614 : vector<8x1xf32> to vector<8x64xf32>
    %616 = vector.broadcast %613 : vector<1x64xf32> to vector<8x64xf32>
    %617 = arith.mulf %615, %616 : vector<8x64xf32>
    %618 = vector.extract_strided_slice %445 {offsets = [10, 0], sizes = [1, 64], strides = [1, 1]} : vector<16x64xf32> to vector<1x64xf32>
    %619 = vector.broadcast %618 : vector<1x64xf32> to vector<8x64xf32>
    %620 = arith.mulf %619, %453 : vector<8x64xf32>
    %621 = math.exp %620 : vector<8x64xf32>
    %622 = arith.mulf %621, %606 : vector<8x64xf32>
    %623 = arith.addf %622, %617 : vector<8x64xf32>
    %624 = vector.extract_strided_slice %451 {offsets = [0, 10], sizes = [8, 1], strides = [1, 1]} : vector<8x16xf32> to vector<8x1xf32>
    %625 = vector.broadcast %624 : vector<8x1xf32> to vector<8x64xf32>
    %626 = arith.mulf %623, %625 : vector<8x64xf32>
    %cst_199 = arith.constant dense<0.000000e+00> : vector<64xf32>
    %627 = vector.multi_reduction <add>, %626, %cst_199 [0] : vector<8x64xf32> to vector<64xf32>
    %628 = vector.shape_cast %627 : vector<64xf32> to vector<1x64xf32>
    %c10_200 = arith.constant 10 : index
    %c0_201 = arith.constant 0 : index
    %629 = vector.load %arg33[%c10_200, %c0_201] : memref<16x64xf32, #tpu.memory_space<vmem>>, vector<1x64xf32>
    tpu.vector_store %arg33[%c10_200, %c0_201], %628 {strides = array<i32>} : memref<16x64xf32, #tpu.memory_space<vmem>>, vector<1x64xf32>,
    %630 = vector.extract_strided_slice %454 {offsets = [11, 0], sizes = [1, 64], strides = [1, 1]} : vector<16x64xf32> to vector<1x64xf32>
    %631 = vector.extract_strided_slice %448 {offsets = [0, 11], sizes = [8, 1], strides = [1, 1]} : vector<8x16xf32> to vector<8x1xf32>
    %632 = vector.broadcast %631 : vector<8x1xf32> to vector<8x64xf32>
    %633 = vector.broadcast %630 : vector<1x64xf32> to vector<8x64xf32>
    %634 = arith.mulf %632, %633 : vector<8x64xf32>
    %635 = vector.extract_strided_slice %445 {offsets = [11, 0], sizes = [1, 64], strides = [1, 1]} : vector<16x64xf32> to vector<1x64xf32>
    %636 = vector.broadcast %635 : vector<1x64xf32> to vector<8x64xf32>
    %637 = arith.mulf %636, %453 : vector<8x64xf32>
    %638 = math.exp %637 : vector<8x64xf32>
    %639 = arith.mulf %638, %623 : vector<8x64xf32>
    %640 = arith.addf %639, %634 : vector<8x64xf32>
    %641 = vector.extract_strided_slice %451 {offsets = [0, 11], sizes = [8, 1], strides = [1, 1]} : vector<8x16xf32> to vector<8x1xf32>
    %642 = vector.broadcast %641 : vector<8x1xf32> to vector<8x64xf32>
    %643 = arith.mulf %640, %642 : vector<8x64xf32>
    %cst_202 = arith.constant dense<0.000000e+00> : vector<64xf32>
    %644 = vector.multi_reduction <add>, %643, %cst_202 [0] : vector<8x64xf32> to vector<64xf32>
    %645 = vector.shape_cast %644 : vector<64xf32> to vector<1x64xf32>
    %c11_203 = arith.constant 11 : index
    %c0_204 = arith.constant 0 : index
    %646 = vector.load %arg33[%c11_203, %c0_204] : memref<16x64xf32, #tpu.memory_space<vmem>>, vector<1x64xf32>
    tpu.vector_store %arg33[%c11_203, %c0_204], %645 {strides = array<i32>} : memref<16x64xf32, #tpu.memory_space<vmem>>, vector<1x64xf32>,
    %647 = vector.extract_strided_slice %454 {offsets = [12, 0], sizes = [1, 64], strides = [1, 1]} : vector<16x64xf32> to vector<1x64xf32>
    %648 = vector.extract_strided_slice %448 {offsets = [0, 12], sizes = [8, 1], strides = [1, 1]} : vector<8x16xf32> to vector<8x1xf32>
    %649 = vector.broadcast %648 : vector<8x1xf32> to vector<8x64xf32>
    %650 = vector.broadcast %647 : vector<1x64xf32> to vector<8x64xf32>
    %651 = arith.mulf %649, %650 : vector<8x64xf32>
    %652 = vector.extract_strided_slice %445 {offsets = [12, 0], sizes = [1, 64], strides = [1, 1]} : vector<16x64xf32> to vector<1x64xf32>
    %653 = vector.broadcast %652 : vector<1x64xf32> to vector<8x64xf32>
    %654 = arith.mulf %653, %453 : vector<8x64xf32>
    %655 = math.exp %654 : vector<8x64xf32>
    %656 = arith.mulf %655, %640 : vector<8x64xf32>
    %657 = arith.addf %656, %651 : vector<8x64xf32>
    %658 = vector.extract_strided_slice %451 {offsets = [0, 12], sizes = [8, 1], strides = [1, 1]} : vector<8x16xf32> to vector<8x1xf32>
    %659 = vector.broadcast %658 : vector<8x1xf32> to vector<8x64xf32>
    %660 = arith.mulf %657, %659 : vector<8x64xf32>
    %cst_205 = arith.constant dense<0.000000e+00> : vector<64xf32>
    %661 = vector.multi_reduction <add>, %660, %cst_205 [0] : vector<8x64xf32> to vector<64xf32>
    %662 = vector.shape_cast %661 : vector<64xf32> to vector<1x64xf32>
    %c12_206 = arith.constant 12 : index
    %c0_207 = arith.constant 0 : index
    %663 = vector.load %arg33[%c12_206, %c0_207] : memref<16x64xf32, #tpu.memory_space<vmem>>, vector<1x64xf32>
    tpu.vector_store %arg33[%c12_206, %c0_207], %662 {strides = array<i32>} : memref<16x64xf32, #tpu.memory_space<vmem>>, vector<1x64xf32>,
    %664 = vector.extract_strided_slice %454 {offsets = [13, 0], sizes = [1, 64], strides = [1, 1]} : vector<16x64xf32> to vector<1x64xf32>
    %665 = vector.extract_strided_slice %448 {offsets = [0, 13], sizes = [8, 1], strides = [1, 1]} : vector<8x16xf32> to vector<8x1xf32>
    %666 = vector.broadcast %665 : vector<8x1xf32> to vector<8x64xf32>
    %667 = vector.broadcast %664 : vector<1x64xf32> to vector<8x64xf32>
    %668 = arith.mulf %666, %667 : vector<8x64xf32>
    %669 = vector.extract_strided_slice %445 {offsets = [13, 0], sizes = [1, 64], strides = [1, 1]} : vector<16x64xf32> to vector<1x64xf32>
    %670 = vector.broadcast %669 : vector<1x64xf32> to vector<8x64xf32>
    %671 = arith.mulf %670, %453 : vector<8x64xf32>
    %672 = math.exp %671 : vector<8x64xf32>
    %673 = arith.mulf %672, %657 : vector<8x64xf32>
    %674 = arith.addf %673, %668 : vector<8x64xf32>
    %675 = vector.extract_strided_slice %451 {offsets = [0, 13], sizes = [8, 1], strides = [1, 1]} : vector<8x16xf32> to vector<8x1xf32>
    %676 = vector.broadcast %675 : vector<8x1xf32> to vector<8x64xf32>
    %677 = arith.mulf %674, %676 : vector<8x64xf32>
    %cst_208 = arith.constant dense<0.000000e+00> : vector<64xf32>
    %678 = vector.multi_reduction <add>, %677, %cst_208 [0] : vector<8x64xf32> to vector<64xf32>
    %679 = vector.shape_cast %678 : vector<64xf32> to vector<1x64xf32>
    %c13_209 = arith.constant 13 : index
    %c0_210 = arith.constant 0 : index
    %680 = vector.load %arg33[%c13_209, %c0_210] : memref<16x64xf32, #tpu.memory_space<vmem>>, vector<1x64xf32>
    tpu.vector_store %arg33[%c13_209, %c0_210], %679 {strides = array<i32>} : memref<16x64xf32, #tpu.memory_space<vmem>>, vector<1x64xf32>,
    %681 = vector.extract_strided_slice %454 {offsets = [14, 0], sizes = [1, 64], strides = [1, 1]} : vector<16x64xf32> to vector<1x64xf32>
    %682 = vector.extract_strided_slice %448 {offsets = [0, 14], sizes = [8, 1], strides = [1, 1]} : vector<8x16xf32> to vector<8x1xf32>
    %683 = vector.broadcast %682 : vector<8x1xf32> to vector<8x64xf32>
    %684 = vector.broadcast %681 : vector<1x64xf32> to vector<8x64xf32>
    %685 = arith.mulf %683, %684 : vector<8x64xf32>
    %686 = vector.extract_strided_slice %445 {offsets = [14, 0], sizes = [1, 64], strides = [1, 1]} : vector<16x64xf32> to vector<1x64xf32>
    %687 = vector.broadcast %686 : vector<1x64xf32> to vector<8x64xf32>
    %688 = arith.mulf %687, %453 : vector<8x64xf32>
    %689 = math.exp %688 : vector<8x64xf32>
    %690 = arith.mulf %689, %674 : vector<8x64xf32>
    %691 = arith.addf %690, %685 : vector<8x64xf32>
    %692 = vector.extract_strided_slice %451 {offsets = [0, 14], sizes = [8, 1], strides = [1, 1]} : vector<8x16xf32> to vector<8x1xf32>
    %693 = vector.broadcast %692 : vector<8x1xf32> to vector<8x64xf32>
    %694 = arith.mulf %691, %693 : vector<8x64xf32>
    %cst_211 = arith.constant dense<0.000000e+00> : vector<64xf32>
    %695 = vector.multi_reduction <add>, %694, %cst_211 [0] : vector<8x64xf32> to vector<64xf32>
    %696 = vector.shape_cast %695 : vector<64xf32> to vector<1x64xf32>
    %c14_212 = arith.constant 14 : index
    %c0_213 = arith.constant 0 : index
    %697 = vector.load %arg33[%c14_212, %c0_213] : memref<16x64xf32, #tpu.memory_space<vmem>>, vector<1x64xf32>
    tpu.vector_store %arg33[%c14_212, %c0_213], %696 {strides = array<i32>} : memref<16x64xf32, #tpu.memory_space<vmem>>, vector<1x64xf32>,
    %698 = vector.extract_strided_slice %454 {offsets = [15, 0], sizes = [1, 64], strides = [1, 1]} : vector<16x64xf32> to vector<1x64xf32>
    %699 = vector.extract_strided_slice %448 {offsets = [0, 15], sizes = [8, 1], strides = [1, 1]} : vector<8x16xf32> to vector<8x1xf32>
    %700 = vector.broadcast %699 : vector<8x1xf32> to vector<8x64xf32>
    %701 = vector.broadcast %698 : vector<1x64xf32> to vector<8x64xf32>
    %702 = arith.mulf %700, %701 : vector<8x64xf32>
    %703 = vector.extract_strided_slice %445 {offsets = [15, 0], sizes = [1, 64], strides = [1, 1]} : vector<16x64xf32> to vector<1x64xf32>
    %704 = vector.broadcast %703 : vector<1x64xf32> to vector<8x64xf32>
    %705 = arith.mulf %704, %453 : vector<8x64xf32>
    %706 = math.exp %705 : vector<8x64xf32>
    %707 = arith.mulf %706, %691 : vector<8x64xf32>
    %708 = arith.addf %707, %702 : vector<8x64xf32>
    %709 = vector.extract_strided_slice %451 {offsets = [0, 15], sizes = [8, 1], strides = [1, 1]} : vector<8x16xf32> to vector<8x1xf32>
    %710 = vector.broadcast %709 : vector<8x1xf32> to vector<8x64xf32>
    %711 = arith.mulf %708, %710 : vector<8x64xf32>
    %cst_214 = arith.constant dense<0.000000e+00> : vector<64xf32>
    %712 = vector.multi_reduction <add>, %711, %cst_214 [0] : vector<8x64xf32> to vector<64xf32>
    %713 = vector.shape_cast %712 : vector<64xf32> to vector<1x64xf32>
    %c15_215 = arith.constant 15 : index
    %c0_216 = arith.constant 0 : index
    %714 = vector.load %arg33[%c15_215, %c0_216] : memref<16x64xf32, #tpu.memory_space<vmem>>, vector<1x64xf32>
    tpu.vector_store %arg33[%c15_215, %c0_216], %713 {strides = array<i32>} : memref<16x64xf32, #tpu.memory_space<vmem>>, vector<1x64xf32>,
    %c0_217 = arith.constant 0 : index
    %c0_218 = arith.constant 0 : index
    %715 = vector.load %arg33[%c0_217, %c0_218] : memref<16x64xf32, #tpu.memory_space<vmem>>, vector<16x64xf32>
    %cst_219 = arith.constant 0.000000e+00 : f32
    %716 = vector.broadcast %cst_219 : f32 to vector<16x64xf32>
    %717 = arith.subf %716, %399 : vector<16x64xf32>
    %718 = math.exp %717 : vector<16x64xf32>
    %cst_220 = arith.constant 1.000000e+00 : f32
    %719 = vector.broadcast %cst_220 : f32 to vector<16x64xf32>
    %720 = arith.addf %719, %718 : vector<16x64xf32>
    %cst_221 = arith.constant 1.000000e+00 : f32
    %721 = vector.broadcast %cst_221 : f32 to vector<16x64xf32>
    %722 = arith.divf %721, %720 : vector<16x64xf32>
    %723 = arith.mulf %399, %722 : vector<16x64xf32>
    %724 = arith.mulf %715, %723 : vector<16x64xf32>
    %c1_222 = arith.constant 1 : index
    %c0_223 = arith.constant 0 : index
    %c0_224 = arith.constant 0 : index
    %725 = vector.load %arg19[%c1_222, %c0_223, %c0_224] : memref<2x64x32xf32, #tpu.memory_space<vmem>>, vector<1x64x32xf32>
    %726 = vector.shape_cast %725 : vector<1x64x32xf32> to vector<64x32xf32>
    %cst_225 = arith.constant dense<0.000000e+00> : vector<16x32xf32>
    %727 = tpu.matmul %724, %726, %cst_225 {dimension_numbers = #tpu.dot_dimension_numbers<[1], [0], [0], [1], [0, 0, 1, 1], [], []>} : vector<16x64xf32>, vector<64x32xf32>, vector<16x32xf32> -> vector<16x32xf32>
    %c1_226 = arith.constant 1 : index
    %c0_227 = arith.constant 0 : index
    %c0_228 = arith.constant 0 : index
    %728 = vector.load %arg20[%c1_226, %c0_227, %c0_228] : memref<2x1x32xf32, #tpu.memory_space<vmem>>, vector<1x1x32xf32>
    %729 = vector.shape_cast %728 : vector<1x1x32xf32> to vector<1x32xf32>
    %730 = vector.broadcast %729 : vector<1x32xf32> to vector<16x32xf32>
    %731 = arith.addf %727, %730 : vector<16x32xf32>
    %732 = arith.addf %371, %731 : vector<16x32xf32>
    %733 = arith.mulf %732, %732 : vector<16x32xf32>
    %cst_229 = arith.constant dense<0.000000e+00> : vector<16xf32>
    %734 = vector.multi_reduction <add>, %733, %cst_229 [1] : vector<16x32xf32> to vector<16xf32>
    %735 = vector.shape_cast %734 : vector<16xf32> to vector<16x1xf32>
    %cst_230 = arith.constant 3.200000e+01 : f32
    %736 = vector.broadcast %cst_230 : f32 to vector<16x1xf32>
    %737 = arith.divf %735, %736 : vector<16x1xf32>
    %cst_231 = arith.constant 9.99999974E-6 : f32
    %738 = vector.broadcast %cst_231 : f32 to vector<16x1xf32>
    %739 = arith.addf %737, %738 : vector<16x1xf32>
    %740 = math.rsqrt %739 : vector<16x1xf32>
    %741 = vector.broadcast %740 : vector<16x1xf32> to vector<16x32xf32>
    %742 = arith.mulf %732, %741 : vector<16x32xf32>
    %c0_232 = arith.constant 0 : index
    %c0_233 = arith.constant 0 : index
    %743 = vector.load %arg21[%c0_232, %c0_233] : memref<1x32xf32, #tpu.memory_space<vmem>>, vector<1x32xf32>
    %744 = vector.broadcast %743 : vector<1x32xf32> to vector<16x32xf32>
    %745 = arith.mulf %742, %744 : vector<16x32xf32>
    %c0_234 = arith.constant 0 : index
    %c0_235 = arith.constant 0 : index
    %746 = vector.load %arg5[%c0_234, %c0_235] : memref<2x16xf32, #tpu.memory_space<vmem>>, vector<2x16xf32>
    %cst_236 = arith.constant dense<0.000000e+00> : vector<2x32xf32>
    %747 = tpu.matmul %746, %745, %cst_236 {dimension_numbers = #tpu.dot_dimension_numbers<[1], [0], [0], [1], [0, 0, 1, 1], [], []>} : vector<2x16xf32>, vector<16x32xf32>, vector<2x32xf32> -> vector<2x32xf32>
    %c0_237 = arith.constant 0 : index
    %c0_238 = arith.constant 0 : index
    %748 = vector.load %arg22[%c0_237, %c0_238] : memref<32x16xf32, #tpu.memory_space<vmem>>, vector<32x16xf32>
    %cst_239 = arith.constant dense<0.000000e+00> : vector<2x16xf32>
    %749 = tpu.matmul %747, %748, %cst_239 {dimension_numbers = #tpu.dot_dimension_numbers<[1], [0], [0], [1], [0, 0, 1, 1], [], []>} : vector<2x32xf32>, vector<32x16xf32>, vector<2x16xf32> -> vector<2x16xf32>
    %c0_240 = arith.constant 0 : index
    %c0_241 = arith.constant 0 : index
    %750 = vector.load %arg23[%c0_240, %c0_241] : memref<1x16xf32, #tpu.memory_space<vmem>>, vector<1x16xf32>
    %751 = vector.broadcast %750 : vector<1x16xf32> to vector<2x16xf32>
    %752 = arith.addf %749, %751 : vector<2x16xf32>
    %c0_242 = arith.constant 0 : index
    %c0_243 = arith.constant 0 : index
    %753 = vector.load %arg24[%c0_242, %c0_243] : memref<1x16xf32, #tpu.memory_space<vmem>>, vector<1x16xf32>
    %c0_244 = arith.constant 0 : index
    %c0_245 = arith.constant 0 : index
    %754 = vector.load %arg25[%c0_244, %c0_245] : memref<1x16xf32, #tpu.memory_space<vmem>>, vector<1x16xf32>
    %cst_246 = arith.constant dense<0.000000e+00> : vector<2xf32>
    %755 = vector.multi_reduction <add>, %752, %cst_246 [1] : vector<2x16xf32> to vector<2xf32>
    %756 = vector.shape_cast %755 : vector<2xf32> to vector<2x1xf32>
    %cst_247 = arith.constant 1.600000e+01 : f32
    %757 = vector.broadcast %cst_247 : f32 to vector<2x1xf32>
    %758 = arith.divf %756, %757 : vector<2x1xf32>
    %759 = vector.broadcast %758 : vector<2x1xf32> to vector<2x16xf32>
    %760 = arith.subf %752, %759 : vector<2x16xf32>
    %761 = arith.mulf %760, %760 : vector<2x16xf32>
    %cst_248 = arith.constant dense<0.000000e+00> : vector<2xf32>
    %762 = vector.multi_reduction <add>, %761, %cst_248 [1] : vector<2x16xf32> to vector<2xf32>
    %763 = vector.shape_cast %762 : vector<2xf32> to vector<2x1xf32>
    %cst_249 = arith.constant 1.600000e+01 : f32
    %764 = vector.broadcast %cst_249 : f32 to vector<2x1xf32>
    %765 = arith.divf %763, %764 : vector<2x1xf32>
    %766 = vector.broadcast %758 : vector<2x1xf32> to vector<2x16xf32>
    %767 = arith.subf %752, %766 : vector<2x16xf32>
    %cst_250 = arith.constant 9.99999974E-6 : f32
    %768 = vector.broadcast %cst_250 : f32 to vector<2x1xf32>
    %769 = arith.addf %765, %768 : vector<2x1xf32>
    %770 = math.rsqrt %769 : vector<2x1xf32>
    %771 = vector.broadcast %770 : vector<2x1xf32> to vector<2x16xf32>
    %772 = arith.mulf %767, %771 : vector<2x16xf32>
    %773 = vector.broadcast %753 : vector<1x16xf32> to vector<2x16xf32>
    %774 = arith.mulf %772, %773 : vector<2x16xf32>
    %775 = vector.broadcast %754 : vector<1x16xf32> to vector<2x16xf32>
    %776 = arith.addf %774, %775 : vector<2x16xf32>
    %c0_251 = arith.constant 0 : index
    %c0_252 = arith.constant 0 : index
    %777 = vector.load %arg26[%c0_251, %c0_252] : memref<16x8xf32, #tpu.memory_space<vmem>>, vector<16x8xf32>
    %cst_253 = arith.constant dense<0.000000e+00> : vector<2x8xf32>
    %778 = tpu.matmul %776, %777, %cst_253 {dimension_numbers = #tpu.dot_dimension_numbers<[1], [0], [0], [1], [0, 0, 1, 1], [], []>} : vector<2x16xf32>, vector<16x8xf32>, vector<2x8xf32> -> vector<2x8xf32>
    %c0_254 = arith.constant 0 : index
    %c0_255 = arith.constant 0 : index
    %779 = vector.load %arg27[%c0_254, %c0_255] : memref<1x8xf32, #tpu.memory_space<vmem>>, vector<1x8xf32>
    %780 = vector.broadcast %779 : vector<1x8xf32> to vector<2x8xf32>
    %781 = arith.addf %778, %780 : vector<2x8xf32>
    %c0_256 = arith.constant 0 : index
    %c0_257 = arith.constant 0 : index
    %782 = vector.load %arg28[%c0_256, %c0_257] : memref<1x8xf32, #tpu.memory_space<vmem>>, vector<1x8xf32>
    %c0_258 = arith.constant 0 : index
    %c0_259 = arith.constant 0 : index
    %783 = vector.load %arg29[%c0_258, %c0_259] : memref<1x8xf32, #tpu.memory_space<vmem>>, vector<1x8xf32>
    %cst_260 = arith.constant dense<0.000000e+00> : vector<2xf32>
    %784 = vector.multi_reduction <add>, %781, %cst_260 [1] : vector<2x8xf32> to vector<2xf32>
    %785 = vector.shape_cast %784 : vector<2xf32> to vector<2x1xf32>
    %cst_261 = arith.constant 8.000000e+00 : f32
    %786 = vector.broadcast %cst_261 : f32 to vector<2x1xf32>
    %787 = arith.divf %785, %786 : vector<2x1xf32>
    %788 = vector.broadcast %787 : vector<2x1xf32> to vector<2x8xf32>
    %789 = arith.subf %781, %788 : vector<2x8xf32>
    %790 = arith.mulf %789, %789 : vector<2x8xf32>
    %cst_262 = arith.constant dense<0.000000e+00> : vector<2xf32>
    %791 = vector.multi_reduction <add>, %790, %cst_262 [1] : vector<2x8xf32> to vector<2xf32>
    %792 = vector.shape_cast %791 : vector<2xf32> to vector<2x1xf32>
    %cst_263 = arith.constant 8.000000e+00 : f32
    %793 = vector.broadcast %cst_263 : f32 to vector<2x1xf32>
    %794 = arith.divf %792, %793 : vector<2x1xf32>
    %795 = vector.broadcast %787 : vector<2x1xf32> to vector<2x8xf32>
    %796 = arith.subf %781, %795 : vector<2x8xf32>
    %cst_264 = arith.constant 9.99999974E-6 : f32
    %797 = vector.broadcast %cst_264 : f32 to vector<2x1xf32>
    %798 = arith.addf %794, %797 : vector<2x1xf32>
    %799 = math.rsqrt %798 : vector<2x1xf32>
    %800 = vector.broadcast %799 : vector<2x1xf32> to vector<2x8xf32>
    %801 = arith.mulf %796, %800 : vector<2x8xf32>
    %802 = vector.broadcast %782 : vector<1x8xf32> to vector<2x8xf32>
    %803 = arith.mulf %801, %802 : vector<2x8xf32>
    %804 = vector.broadcast %783 : vector<1x8xf32> to vector<2x8xf32>
    %805 = arith.addf %803, %804 : vector<2x8xf32>
    %c0_265 = arith.constant 0 : index
    %c0_266 = arith.constant 0 : index
    %806 = vector.load %arg30[%c0_265, %c0_266] : memref<8x5xf32, #tpu.memory_space<vmem>>, vector<8x5xf32>
    %cst_267 = arith.constant dense<0.000000e+00> : vector<2x5xf32>
    %807 = tpu.matmul %805, %806, %cst_267 {dimension_numbers = #tpu.dot_dimension_numbers<[1], [0], [0], [1], [0, 0, 1, 1], [], []>} : vector<2x8xf32>, vector<8x5xf32>, vector<2x5xf32> -> vector<2x5xf32>
    %c0_268 = arith.constant 0 : index
    %c0_269 = arith.constant 0 : index
    %808 = vector.load %arg31[%c0_268, %c0_269] : memref<1x5xf32, #tpu.memory_space<vmem>>, vector<1x5xf32>
    %809 = vector.broadcast %808 : vector<1x5xf32> to vector<2x5xf32>
    %810 = arith.addf %807, %809 : vector<2x5xf32>
    %c0_270 = arith.constant 0 : index
    %c0_271 = arith.constant 0 : index
    %811 = vector.load %arg32[%c0_270, %c0_271] : memref<2x5xf32, #tpu.memory_space<vmem>>, vector<2x5xf32>
    tpu.vector_store %arg32[%c0_270, %c0_271], %810 {strides = array<i32>} : memref<2x5xf32, #tpu.memory_space<vmem>>, vector<2x5xf32>,
    return
  }
}

</mosaic_0001>

<bundles_post_ra>
// kernel: lrcn_forward.1
= control target key start
LH: loop header
LB: loop body
LE: loop exit
PB: predicated region body
PF: predicated region fallthrough
CT: control target
= control target key end

     0   :  { %s4380_s6 = smov 1   ;;  %s4381_s10 = smov 2   ;;  %s5477_s0 = inlined_call_operand.smem [shape: u32[33], index: -1, kind: input, shape index: {}] }
   0x1   :  { %s4439_s5 = sld [smem:[%s5477_s0]]   ;;  %s4382_s14 = smov 3  }
   0x2   :  { %s4444_s9 = sld [smem:[%s5477_s0 + %s4380_s6]]   ;;  %s4383_s18 = smov 4  }
   0x3   :  { %s4449_s13 = sld [smem:[%s5477_s0 + %s4381_s10]]   ;;  %s4384_s22 = smov 5  }
   0x4   :  { %s4454_s17 = sld [smem:[%s5477_s0 + %s4382_s14]]   ;;  %s4385_s26 = smov 6  }
   0x5   :  { %s4459_s21 = sld [smem:[%s5477_s0 + %s4383_s18]]   ;;  %s4386_s30 = smov 7  }
   0x6   :  { %s4464_s25 = sld [smem:[%s5477_s0 + %s4384_s22]]   ;;  %s4387_s4 = smov 8  }
   0x7   :  { %s4469_s29 = sld [smem:[%s5477_s0 + %s4385_s26]]   ;;  %s4388_s10 = smov 9  }
   0x8   :  { %s4474_s3 = sld [smem:[%s5477_s0 + %s4386_s30]]   ;;  %s4389_s15 = smov 10  }
   0x9   :  { %s4479_s8 = sld [smem:[%s5477_s0 + %s4387_s4]]   ;;  %s4390_s20 = smov 11  }
   0xa   :  { %s4484_s14 = sld [smem:[%s5477_s0 + %s4388_s10]]   ;;  %s4391_s26 = smov 12  }
   0xb   :  { %s4489_s19 = sld [smem:[%s5477_s0 + %s4389_s15]]   ;;  %s4392_s1 = smov 13  }
   0xc   :  { %5489 = sst [smem:[#allocation6_spill]] %s4464_s25  ;;  %s4393_s7 = smov 14  }
   0xd   :  { %s4494_s24 = sld [smem:[%s5477_s0 + %s4390_s20]]   ;;  %s4394_s15 = smov 15  }
   0xe   :  { %s4499_s30 = sld [smem:[%s5477_s0 + %s4391_s26]]   ;;  %s4395_s22 = smov 16  }
   0xf   :  { %s4504_s6 = sld [smem:[%s5477_s0 + %s4392_s1]]   ;;  %s4396_s28 = smov 17  }
  0x10   :  { %s4509_s12 = sld [smem:[%s5477_s0 + %s4393_s7]]   ;;  %s4397_s7 = smov 18  }
  0x11   :  { %5490 = sst [smem:[#allocation7_spill]] %s4489_s19 }
  0x12   :  { %s4514_s20 = sld [smem:[%s5477_s0 + %s4394_s15]]   ;;  %s4398_s15 = smov 19  }
  0x13   :  { %s4519_s27 = sld [smem:[%s5477_s0 + %s4395_s22]]   ;;  %s4399_s22 = smov 20  }
  0x14   :  { %s4524_s4 = sld [smem:[%s5477_s0 + %s4396_s28]]   ;;  %s4400_s28 = smov 21  }
  0x15   :  { %s4529_s25 = sld [smem:[%s5477_s0 + %s4397_s7]]   ;;  %s4401_s7 = smov 22  }
  0x16   :  { %s4534_s19 = sld [smem:[%s5477_s0 + %s4398_s15]]   ;;  %s4402_s15 = smov 23  }
  0x18   :  { %5491 = sst [smem:[#allocation8_spill]] %s4514_s20 }
  0x19   :  { %s4539_s20 = sld [smem:[%s5477_s0 + %s4399_s22]]   ;;  %s4403_s22 = smov 24  }
  0x1a   :  { %5492 = sst [smem:[#allocation9_spill]] %s4524_s4 }
  0x1b   :  { %5493 = sst [smem:[#allocation10_spill]] %s4529_s25 }
  0x1c   :  { %5494 = sst [smem:[#allocation11_spill]] %s4534_s19 }
  0x1d   :  { %s4544_s4 = sld [smem:[%s5477_s0 + %s4400_s28]]   ;;  %s4404_s28 = smov 25  }
  0x1e   :  { %s4549_s25 = sld [smem:[%s5477_s0 + %s4401_s7]]   ;;  %s4405_s7 = smov 26  }
  0x1f   :  { %5495 = sst [smem:[#allocation12_spill]] %s4539_s20 }
  0x20   :  { %s4554_s19 = sld [smem:[%s5477_s0 + %s4402_s15]]   ;;  %s4406_s15 = smov 27  }
  0x21   :  { %s4559_s20 = sld [smem:[%s5477_s0 + %s4403_s22]]   ;;  %s4407_s22 = smov 28  }
  0x23   :  { %5496 = sst [smem:[#allocation13_spill]] %s4544_s4 }
  0x24   :  { %5497 = sst [smem:[#allocation14_spill]] %s4549_s25 }
  0x25   :  { %s4564_s4 = sld [smem:[%s5477_s0 + %s4404_s28]]   ;;  %s4408_s28 = smov 29  }
  0x26   :  { %5498 = sst [smem:[#allocation15_spill]] %s4554_s19 }
  0x27   :  { %5499 = sst [smem:[#allocation16_spill]] %s4559_s20 }
  0x28   :  { %s4569_s25 = sld [smem:[%s5477_s0 + %s4405_s7]]   ;;  %s4409_s7 = smov 30  }
  0x29   :  { %s4574_s19 = sld [smem:[%s5477_s0 + %s4406_s15]]   ;;  %s4410_s15 = smov 31  }
  0x2a   :  { %s4579_s20 = sld [smem:[%s5477_s0 + %s4407_s22]]   ;;  %s4411_s22 = smov 32  }
  0x2b   :  { %5500 = sst [smem:[#allocation17_spill]] %s4564_s4 }
  0x2c   :  { %s4584_s4 = sld [smem:[%s5477_s0 + %s4408_s28]]  }
  0x2e   :  { %5501 = sst [smem:[#allocation18_spill]] %s4569_s25 }
  0x2f   :  { %5502 = sst [smem:[#allocation19_spill]] %s4574_s19 }
  0x30   :  { %5503 = sst [smem:[#allocation20_spill]] %s4579_s20 }
  0x31   :  { %s4589_s25 = sld [smem:[%s5477_s0 + %s4409_s7]]  }
  0x32   :  { %s4594_s19 = sld [smem:[%s5477_s0 + %s4410_s15]]  }
  0x33   :  { %s4599_s20 = sld [smem:[%s5477_s0 + %s4411_s22]]  }
  0x34   :  { %v137_v0 = vld [vmem:[%s4439_s5 + $0x10] sm:$0x77]  ;;  %vm199_vm0 = vcmask 1042432   ;;  %v135_v1 = vld [vmem:[%s4439_s5] sm:$0x77] }
  0x35   :  { %v169_v2 = vcombine.high %v137_v0, %v137_v0  ;;  %v210_v3 = vsel %vm199_vm0, %v137_v0, 0.0  ;;  %v167_v4 = vcombine.high %v135_v1, %v135_v1  ;;  %v200_v5 = vsel %vm199_vm0, %v135_v1, 0.0  ;;  %v143_v6 = vld [vmem:[%s4439_s5 + $0x40] sm:$0x77]  ;;  %v136_v7 = vld [vmem:[%s4439_s5 + $0x8] sm:$0x77] }
  0x36   :  { %v175_v8 = vcombine.high %v143_v6, %v143_v6  ;;  %v240_v9 = vsel %vm199_vm0, %v143_v6, 0.0  ;;  %v168_v10 = vcombine.high %v136_v7, %v136_v7  ;;  %v138_v11 = vld [vmem:[%s4439_s5 + $0x18] sm:$0x77]  ;;  %v144_v12 = vld [vmem:[%s4439_s5 + $0x48] sm:$0x77]  ;;  %v205_v15 = vsel %vm199_vm0, %v136_v7, 0.0 }
  0x37   :  { %v211_v13 = vsel %vm199_vm0, %v169_v2, 0.0  ;;  %v201_v14 = vsel %vm199_vm0, %v167_v4, 0.0  ;;  %v170_v16 = vcombine.high %v138_v11, %v138_v11  ;;  %v139_v21 = vld [vmem:[%s4439_s5 + $0x20] sm:$0x77]  ;;  %v145_v22 = vld [vmem:[%s4439_s5 + $0x50] sm:$0x77]  ;;  %v176_v23 = vcombine.high %v144_v12, %v144_v12 }
  0x38   :  { %v212_v17 = vadd.f32 %v211_v13, %v210_v3  ;;  %v202_v18 = vadd.f32 %v201_v14, %v200_v5  ;;  %v241_v19 = vsel %vm199_vm0, %v175_v8, 0.0  ;;  %v206_v20 = vsel %vm199_vm0, %v168_v10, 0.0  ;;  %v140_v32 = vld [vmem:[%s4439_s5 + $0x28] sm:$0x77]  ;;  %v146_v33 = vld [vmem:[%s4439_s5 + $0x58] sm:$0x77] }
  0x39   :  { %v242_v24 = vadd.f32 %v241_v19, %v240_v9  ;;  %v207_v25 = vadd.f32 %v206_v20, %v205_v15  ;;  %v215_v26 = vsel %vm199_vm0, %v138_v11, 0.0  ;;  %v216_v27 = vsel %vm199_vm0, %v170_v16, 0.0 }
  0x3a   :  { %213 = vadd.xlane.f32.xlu1 %v212_v17  ;;  %203 = vadd.xlane.f32.xlu0 %v202_v18  ;;  %v245_v28 = vsel %vm199_vm0, %v144_v12, 0.0  ;;  %v246_v29 = vsel %vm199_vm0, %v176_v23, 0.0  ;;  %v171_v30 = vcombine.high %v139_v21, %v139_v21  ;;  %v177_v31 = vcombine.high %v145_v22, %v145_v22 }
  0x3b   :  { %70 = vsyncpa [#allocation4], 0  ;;  %v217_v34 = vadd.f32 %v216_v27, %v215_v26  ;;  %v247_v35 = vadd.f32 %v246_v29, %v245_v28  ;;  %v220_v36 = vsel %vm199_vm0, %v139_v21, 0.0  ;;  %v172_v37 = vcombine.high %v140_v32, %v140_v32  ;;  %v141_v42 = vld [vmem:[%s4439_s5 + $0x30] sm:$0x77]  ;;  %s5504_s0 = sld [smem:[#allocation8_spill]] }
  0x3c   :  { %v221_v38 = vsel %vm199_vm0, %v171_v30, 0.0  ;;  %v250_v39 = vsel %vm199_vm0, %v145_v22, 0.0  ;;  %v251_v40 = vsel %vm199_vm0, %v177_v31, 0.0  ;;  %v178_v41 = vcombine.high %v146_v33, %v146_v33  ;;  %v147_v43 = vld [vmem:[%s4439_s5 + $0x60] sm:$0x77]  ;;  %s5508_s28 = sld [smem:[#allocation7_spill]] }
  0x3d   :  { %v222_v44 = vadd.f32 %v221_v38, %v220_v36  ;;  %v252_v45 = vadd.f32 %v251_v40, %v250_v39  ;;  %v225_v46 = vsel %vm199_vm0, %v140_v32, 0.0  ;;  %v226_v47 = vsel %vm199_vm0, %v172_v37, 0.0  ;;  %v142_v52 = vld [vmem:[%s4439_s5 + $0x38] sm:$0x77]  ;;  %v148_v53 = vld [vmem:[%s4439_s5 + $0x68] sm:$0x77] }
  0x3e   :  { %243 = vadd.xlane.f32.xlu1 %v242_v24  ;;  %208 = vadd.xlane.f32.xlu0 %v207_v25  ;;  %v255_v48 = vsel %vm199_vm0, %v146_v33, 0.0  ;;  %v256_v49 = vsel %vm199_vm0, %v178_v41, 0.0  ;;  %v173_v50 = vcombine.high %v141_v42, %v141_v42  ;;  %v179_v51 = vcombine.high %v147_v43, %v147_v43  ;;  %v149_v62 = vld [vmem:[%s4439_s5 + $0x70] sm:$0x77]  ;;  %v150_v63 = vld [vmem:[%s4439_s5 + $0x78] sm:$0x77] }
  0x3f   :  { %v227_v54 = vadd.f32 %v226_v47, %v225_v46  ;;  %v257_v55 = vadd.f32 %v256_v49, %v255_v48  ;;  %v230_v56 = vsel %vm199_vm0, %v141_v42, 0.0  ;;  %v260_v57 = vsel %vm199_vm0, %v147_v43, 0.0  ;;  %v297_v16 = vld [vmem:[%s4444_s9] sm:$0x7]  ;;  %s5505_s5 = sld [smem:[#allocation9_spill]] }
  0x40   :  { %v231_v58 = vsel %vm199_vm0, %v173_v50, 0.0  ;;  %v261_v59 = vsel %vm199_vm0, %v179_v51, 0.0  ;;  %v174_v60 = vcombine.high %v142_v52, %v142_v52  ;;  %v180_v61 = vcombine.high %v148_v53, %v148_v53  ;;  %3881 = vmatprep.subr.msk.mxu0 %vm199_vm0, %v297_v16  ;;  %s5506_s9 = sld [smem:[#allocation10_spill]] }
  0x41   :  { %v232_v0 = vadd.f32 %v231_v58, %v230_v56  ;;  %v262_v1 = vadd.f32 %v261_v59, %v260_v57  ;;  %v235_v2 = vsel %vm199_vm0, %v142_v52, 0.0  ;;  %v265_v3 = vsel %vm199_vm0, %v148_v53, 0.0  ;;  %3882 = vmatpush3.msk.msra.mxu0 %vm199_vm0, %v297_v16  ;;  %s5509_s1 = sld [smem:[#allocation12_spill]] }
  0x42   :  { %218 = vadd.xlane.f32.xlu1 %v217_v34  ;;  %248 = vadd.xlane.f32.xlu0 %v247_v35  ;;  %v236_v4 = vsel %vm199_vm0, %v174_v60, 0.0  ;;  %v266_v5 = vsel %vm199_vm0, %v180_v61, 0.0  ;;  %v181_v6 = vcombine.high %v149_v62, %v149_v62  ;;  %v182_v7 = vcombine.high %v150_v63, %v150_v63 }
  0x43   :  { %v237_v8 = vadd.f32 %v236_v4, %v235_v2  ;;  %v267_v9 = vadd.f32 %v266_v5, %v265_v3  ;;  %v270_v10 = vsel %vm199_vm0, %v149_v62, 0.0  ;;  %v275_v12 = vsel %vm199_vm0, %v150_v63, 0.0 }
  0x44   :  { %v271_v11 = vsel %vm199_vm0, %v181_v6, 0.0  ;;  %v276_v13 = vsel %vm199_vm0, %v182_v7, 0.0  ;;  %v321_v21 = vlaneseq  ;;  %vm387_vm1 = vcmask 1041409  }
  0x45   :  { %v272_v14 = vadd.f32 %v271_v11, %v270_v10  ;;  %v277_v15 = vadd.f32 %v276_v13, %v275_v12  ;;  %vm389_vm2 = vcmask 1042434   ;;  %vm391_vm3 = vcmask 1043459  }
  0x46   :  { %223 = vadd.xlane.f32.xlu1 %v222_v44  ;;  %253 = vadd.xlane.f32.xlu0 %v252_v45  ;;  %v322_v24 = vand.u32 127, %v321_v21  ;;  %v4652_v25 = vshrl.u32 %v321_v21, 7  ;;  %vm393_vm4 = vcmask 1044484   ;;  %vm395_vm5 = vcmask 1045509  }
  0x47   :  { %vm397_vm6 = vcmask 1046534   ;;  %vm399_vm7 = vcmask 1047559   ;;  %vm408_vm8 = vcmask 23552   ;;  %vm497_vm9 = vcmask 261120  }
  0x48   :  { %v4655_v29 = vsub.s32 %v322_v24, %v4652_v25  ;;  %vm700_vm10 = vcmask 130048   ;;  %vm917_vm11 = vcmask 523264   ;;  %vm1007_vm12 = vcmask 64512  }
  0x49   :  { %vm4413_vm13 = vmmov 0   ;;  %vm1279_vm0 = vcmask 516096  }
  0x4a   :  { %228 = vadd.xlane.f32.xlu1 %v227_v54  ;;  %258 = vadd.xlane.f32.xlu0 %v257_v55 }
  0x4e   :  { %233 = vadd.xlane.f32.xlu1 %v232_v0  ;;  %263 = vadd.xlane.f32.xlu0 %v262_v1 }
  0x52   :  { %238 = vadd.xlane.f32.xlu1 %v237_v8  ;;  %268 = vadd.xlane.f32.xlu0 %v267_v9 }
  0x56   :  { %273 = vadd.xlane.f32.xlu0 %v272_v14  ;;  %278 = vadd.xlane.f32.xlu1 %v277_v15 }
  0xc3   :  { %v214_v17 = vpop.xlane.xlu1 %213  ;;  %v204_v18 = vpop.xlane.xlu0 %203 }
  0xc4   :  { %v281_v30 = vmul.f32 0.00390625, %v204_v18  ;;  %v283_v35 = vmul.f32 0.00390625, %v214_v17 }
  0xc6   :  { %v326_v37 = vrot.slane %v281_v30, %v4655_v29  ;;  %v334_v46 = vrot.slane %v283_v35, %v4655_v29  ;;  %v617_v30 = vld [vmem:[%s4484_s14 + $0x18] sm:$0xff]  ;;  %v522_v35 = vld [vmem:[%s4474_s3] sm:$0xff] }
  0xc7   :  { %v244_v19 = vpop.xlane.xlu1 %243  ;;  %v209_v20 = vpop.xlane.xlu0 %208  ;;  %3897 = vmatprep.subr.mxu0 %v617_v30 }
  0xc8   :  { %v282_v28 = vmul.f32 0.00390625, %v209_v20  ;;  %v289_v47 = vmul.f32 0.00390625, %v244_v19  ;;  %v3664_v19 = vld [vmem:[%s4449_s13] ss:$0 sm:$0xff]  ;;  %s5507_s13 = sld [smem:[#allocation11_spill]] }
  0xca   :  { %v330_v33 = vrot.slane %v282_v28, %v4655_v29  ;;  %v358_v61 = vrot.slane %v289_v47, %v4655_v29  ;;  %v3668_v47 = vld [vmem:[%s4469_s29] ss:$0 sm:$0xff] }
  0xcb   :  { %v219_v22 = vpop.xlane.xlu1 %218  ;;  %v249_v23 = vpop.xlane.xlu0 %248 }
  0xcc   :  { %v284_v34 = vmul.f32 0.00390625, %v219_v22  ;;  %v290_v39 = vmul.f32 0.00390625, %v249_v23  ;;  %v388_v42 = vsel %vm387_vm1, %v330_v33, %v326_v37  ;;  %v523_v33 = vld [vmem:[%s4474_s3 + $0x8] sm:$0xff] }
  0xcd   :  { %v390_v52 = vsel %vm389_vm2, %v334_v46, %v388_v42 }
  0xce   :  { %v338_v43 = vrot.slane %v284_v34, %v4655_v29  ;;  %v362_v53 = vrot.slane %v290_v39, %v4655_v29  ;;  %v615_v34 = vld [vmem:[%s4484_s14 + $0x8] sm:$0xff] }
  0xcf   :  { %v224_v26 = vpop.xlane.xlu1 %223  ;;  %v254_v27 = vpop.xlane.xlu0 %253 }
  0xd0   :  { %v285_v36 = vmul.f32 0.00390625, %v224_v26  ;;  %v291_v44 = vmul.f32 0.00390625, %v254_v27  ;;  %v392_v57 = vsel %vm391_vm3, %v338_v43, %v390_v52  ;;  %v401_v3 = vsel %vm387_vm1, %v362_v53, %v358_v61  ;;  %v3669_v52 = vld [vmem:[%s4479_s8] ss:$0 sm:$0xff]  ;;  %v914_v61 = vld [vmem:[%s4504_s6 + $0x28] sm:$0xff] }
  0xd2   :  { %v342_v48 = vrot.slane %v285_v36, %v4655_v29  ;;  %v366_v58 = vrot.slane %v291_v44, %v4655_v29  ;;  %v614_v36 = vld [vmem:[%s4484_s14] sm:$0xff] }
  0xd3   :  { %v229_v31 = vpop.xlane.xlu1 %228  ;;  %v259_v32 = vpop.xlane.xlu0 %258 }
  0xd4   :  { %v286_v38 = vmul.f32 0.00390625, %v229_v31  ;;  %v292_v49 = vmul.f32 0.00390625, %v259_v32  ;;  %v394_v63 = vsel %vm393_vm4, %v342_v48, %v392_v57  ;;  %v402_v8 = vsel %vm389_vm2, %v366_v58, %v401_v3  ;;  %v524_v31 = vld [vmem:[%s4474_s3 + $0x10] sm:$0xff]  ;;  %v492_v57 = vld [vmem:[%s4454_s17 + $0x8] sm:$0xff] }
  0xd5   :  { %v616_v32 = vld [vmem:[%s4484_s14 + $0x10] sm:$0xff]  ;;  %v494_v58 = vld [vmem:[%s4459_s21 + $0x8] sm:$0xff]  ;;  %v4733_v3 = vsub.s32 1, %v4652_v25 }
  0xd6   :  { %v346_v50 = vrot.slane %v286_v38, %v4655_v29  ;;  %v370_v62 = vrot.slane %v292_v49, %v4655_v29 }
  0xd7   :  { %v234_v40 = vpop.xlane.xlu1 %233  ;;  %v264_v41 = vpop.xlane.xlu0 %263 }
  0xd8   :  { %v287_v45 = vmul.f32 0.00390625, %v234_v40  ;;  %v293_v51 = vmul.f32 0.00390625, %v264_v41  ;;  %v396_v2 = vsel %vm395_vm5, %v346_v50, %v394_v63  ;;  %v403_v12 = vsel %vm391_vm3, %v370_v62, %v402_v8  ;;  %v491_v50 = vld [vmem:[%s4454_s17] sm:$0xff]  ;;  %v912_v63 = vld [vmem:[%s4504_s6 + $0x18] sm:$0xff] }
  0xd9   :  { %v913_v62 = vld [vmem:[%s4504_s6 + $0x20] sm:$0xff]  ;;  %vm3393_vm3 = vcmask 123904  }
  0xda   :  { %v350_v54 = vrot.slane %v287_v45, %v4655_v29  ;;  %v374_v0 = vrot.slane %v293_v51, %v4655_v29  ;;  %v493_v51 = vld [vmem:[%s4459_s21] sm:$0xff] }
  0xdb   :  { %v239_v55 = vpop.xlane.xlu1 %238  ;;  %v269_v56 = vpop.xlane.xlu0 %268 }
  0xdc   :  { %v288_v59 = vmul.f32 0.00390625, %v239_v55  ;;  %v294_v60 = vmul.f32 0.00390625, %v269_v56  ;;  %v398_v7 = vsel %vm397_vm6, %v350_v54, %v396_v2  ;;  %v404_v13 = vsel %vm393_vm4, %v374_v0, %v403_v12  ;;  %v911_v0 = vld [vmem:[%s4504_s6 + $0x10] sm:$0xff]  ;;  %v909_v2 = vld [vmem:[%s4504_s6] sm:$0xff] }
  0xdd   :  { %vm3506_vm4 = vcmask 58368  }
  0xde   :  { %v354_v1 = vrot.slane %v288_v59, %v4655_v29  ;;  %v378_v4 = vrot.slane %v294_v60, %v4655_v29  ;;  %v916_v59 = vld [vmem:[%s4504_s6 + $0x38] sm:$0xff]  ;;  %v915_v60 = vld [vmem:[%s4504_s6 + $0x30] sm:$0xff] }
  0xdf   :  { %v274_v5 = vpop.xlane.xlu0 %273  ;;  %v279_v6 = vpop.xlane.xlu1 %278 }
  0xe0   :  { %v295_v9 = vmul.f32 0.00390625, %v274_v5  ;;  %v296_v10 = vmul.f32 0.00390625, %v279_v6  ;;  %v400_v11 = vsel %vm399_vm7, %v354_v1, %v398_v7  ;;  %v405_v16 = vsel %vm395_vm5, %v378_v4, %v404_v13  ;;  %v910_v1 = vld [vmem:[%s4504_s6 + $0x8] sm:$0xff]  ;;  %v863_v7 = vld [vmem:[%s4494_s24] sm:$0x7] }
  0xe1   :  { %3883 = vmatprep.mubr.msk.f32.mxu0 %vm408_vm8, %v400_v11  ;;  %v4736_v4 = vsub.s32 0, %v4652_v25  ;;  %v4741_v6 = vsub.s32 2, %v4652_v25  ;;  %v873_v8 = vrot.slane %v863_v7, %v4733_v3  ;;  %vm3616_vm5 = vcmask 33792  }
  0xe2   :  { %v382_v14 = vrot.slane %v295_v9, %v4655_v29  ;;  %v386_v15 = vrot.slane %v296_v10, %v4655_v29  ;;  %v525_v29 = vld [vmem:[%s4474_s3 + $0x18] sm:$0xff] }
  0xe3   :  { %3886 = vmatprep.subr.mxu1 %v525_v29  ;;  %v867_v9 = vrot.slane %v863_v7, %v4736_v4  ;;  %v881_v11 = vrot.slane %v863_v7, %v4741_v6  ;;  %v4419_v7 = vmov 6  }
  0xe4   :  { %v406_v17 = vsel %vm397_vm6, %v382_v14, %v405_v16  ;;  %3887 = vmatpush3.msra.mxu1 %v525_v29 }
  0xe5   :  { %v407_v18 = vsel %vm399_vm7, %v386_v15, %v406_v17  ;;  %3888 = vmatprep.subr.mxu1 %v524_v31 }
  0xe6   :  { %3884 = vmatmul.mubr.msk.f32.vlgmr.msra.gmra.mxu0 %vm408_vm8, %v407_v18  ;;  %3889 = vmatpush3.msra.mxu1 %v524_v31 }
  0xe7   :  { %3898 = vmatpush3.msra.mxu0 %v617_v30  ;;  %3890 = vmatprep.subr.mxu1 %v523_v33 }
  0xe8   :  { %3899 = vmatprep.subr.mxu0 %v616_v32  ;;  %3891 = vmatpush3.msra.mxu1 %v523_v33 }
  0xe9   :  { %3900 = vmatpush3.msra.mxu0 %v616_v32  ;;  %3892 = vmatprep.subr.mxu1 %v522_v35 }
  0xea   :  { %3901 = vmatprep.subr.mxu0 %v615_v34  ;;  %3893 = vmatpush3.msra.mxu1 %v522_v35 }
  0xeb   :  { %3902 = vmatpush3.msra.mxu0 %v615_v34 }
  0xec   :  { %3903 = vmatprep.subr.mxu0 %v614_v36 }
  0xed   :  { %3904 = vmatpush3.msra.mxu0 %v614_v36 }
 0x1a6   :  { %v3885_v20 = vpop.f32.mrf.mxu0 }
 0x1a7   :  { %v4690_v21 = vadd.f32 %v3885_v20, %v3664_v19 }
 0x1a8   :  { %v482_v22 = vpop.f32.mrf.mxu0 }
 0x1a9   :  { %v4692_v23 = vadd.f32 %v3664_v19, %v482_v22  ;;  %v496_v24 = vmul.f32 %v4690_v21, %v4690_v21 }
 0x1ab   :  { %v501_v26 = vsel %vm497_vm9, %v496_v24, 0.0  ;;  %v495_v27 = vmul.f32 %v4692_v23, %v4692_v23  ;;  %v3679_v24 = vld [vmem:[%s4499_s30] ss:$0 sm:$0xff] }
 0x1ac   :  { %502 = vadd.xlane.f32.xlu1 %v501_v26 }
 0x1ad   :  { %v498_v28 = vsel %vm497_vm9, %v495_v27, 0.0 }
 0x1ae   :  { %499 = vadd.xlane.f32.xlu0 %v498_v28 }
 0x235   :  { %v503_v37 = vpop.xlane.xlu1 %502 }
 0x236   :  { %v506_v38 = vmul.f32 0.03125, %v503_v37 }
 0x237   :  { %v500_v39 = vpop.xlane.xlu0 %499 }
 0x238   :  { %v508_v40 = vadd.f32 1e-05, %v506_v38  ;;  %v505_v41 = vmul.f32 0.03125, %v500_v39 }
 0x23a   :  { %4234 = vrsqrt.f32 %v508_v40  ;;  %v507_v42 = vadd.f32 1e-05, %v505_v41 }
 0x23c   :  { %4236 = vrsqrt.f32 %v507_v42 }
 0x247   :  { %v4235_v43 = vpop.eup %4234 }
 0x248   :  { %v512_v45 = vmul.f32 %v4235_v43, %v4690_v21 }
 0x249   :  { %v4237_v44 = vpop.eup %4236 }
 0x24a   :  { %v511_v46 = vmul.f32 %v4237_v44, %v4692_v23  ;;  %v521_v49 = vmul.f32 %v3668_v47, %v512_v45  ;;  %v999_v44 = vld [vmem:[%s4519_s27] sm:$0xff]  ;;  %v4412_v45 = vmov 0.0  }
 0x24c   :  { %v520_v48 = vmul.f32 %v3668_v47, %v511_v46 }
 0x24e   :  { %3894 = vmatprep.mubr.msk.f32.mxu1 %vm497_vm9, %v520_v48  ;;  %3905 = vmatprep.mubr.msk.f32.mxu0 %vm497_vm9, %v520_v48  ;;  %v1105_v48 = vld [vmem:[%s4509_s12] sm:$0xff] }
 0x24f   :  { %3895 = vmatmul.mubr.msk.f32.vlgmr.msra.gmra.mxu1 %vm497_vm9, %v521_v49  ;;  %3906 = vmatmul.mubr.msk.f32.vlgmr.msra.gmra.mxu0 %vm497_vm9, %v521_v49  ;;  %v1179_v49 = vld [vmem:[%s5504_s0] sm:$0xff] }
 0x250   :  { %3912 = vmatprep.mubr.msk.f32.mxu1 %vm700_vm10, %v491_v50  ;;  %3919 = vmatprep.mubr.msk.f32.mxu0 %vm700_vm10, %v493_v51  ;;  %v4414_v50 = vmov 8   ;;  %v5486_v51 = vmov 0  }
 0x251   :  { %4154 = vset.pattern.permute.xlu1 %v4414_v50  ;;  %4153 = vset.pattern.permute.xlu0 %v5486_v51 }
 0x30f   :  { %v3896_v53 = vpop.f32.mrf.mxu1  ;;  %v4738_v5 = vpop.f32.mrf.mxu0 }
 0x310   :  { %v611_v54 = vadd.f32 %v3896_v53, %v3669_v52 }
 0x311   :  { %v605_v55 = vpop.f32.mrf.mxu1  ;;  %v4746_v10 = vpop.f32.mrf.mxu0 }
 0x312   :  { %v606_v56 = vadd.f32 %v3669_v52, %v605_v55  ;;  %3908 = vmatprep.subr.mxu1 %v611_v54  ;;  %3915 = vmatprep.subr.mxu0 %v611_v54  ;;  %v883_v19 = vmul.f32 %v881_v11, %v611_v54  ;;  %v3682_v52 = vld [vmem:[%s5505_s5] ss:$0 sm:$0xff] }
 0x313   :  { %3909 = vmatpush3.msra.mxu1 %v611_v54  ;;  %3916 = vmatpush3.msra.mxu0 %v611_v54 }
 0x314   :  { %3910 = vmatprep.subr.mxu1 %v606_v56  ;;  %3917 = vmatprep.subr.mxu0 %v606_v56  ;;  %v882_v28 = vmul.f32 %v881_v11, %v606_v56 }
 0x315   :  { %3911 = vmatpush3.msra.mxu1 %v606_v56  ;;  %3918 = vmatpush3.msra.mxu0 %v606_v56 }
 0x316   :  { %3913 = vmatmul.mubr.msk.f32.vlgmr.msra.gmra.mxu1 %vm700_vm10, %v492_v57  ;;  %3920 = vmatmul.mubr.msk.f32.vlgmr.msra.gmra.mxu0 %vm700_vm10, %v494_v58 }
 0x317   :  { %3922 = vmatprep.subr.mxu1 %v916_v59  ;;  %3941 = vmatprep.subr.mxu0 %v999_v44 }
 0x318   :  { %3923 = vmatpush3.msra.mxu1 %v916_v59  ;;  %3942 = vmatpush3.msra.mxu0 %v999_v44 }
 0x319   :  { %3924 = vmatprep.subr.mxu1 %v915_v60  ;;  %3946 = vmatprep.subr.mxu0 %v4412_v45 }
 0x31a   :  { %3925 = vmatpush3.msra.mxu1 %v915_v60 }
 0x31b   :  { %3926 = vmatprep.subr.mxu1 %v914_v61 }
 0x31c   :  { %3927 = vmatpush3.msra.mxu1 %v914_v61 }
 0x31d   :  { %3928 = vmatprep.subr.mxu1 %v913_v62 }
 0x31e   :  { %3929 = vmatpush3.msra.mxu1 %v913_v62 }
 0x31f   :  { %3930 = vmatprep.subr.mxu1 %v912_v63 }
 0x320   :  { %3931 = vmatpush3.msra.mxu1 %v912_v63  ;;  %v4416_v63 = vmov 1  }
 0x321   :  { %3932 = vmatprep.subr.mxu1 %v911_v0 }
 0x322   :  { %3933 = vmatpush3.msra.mxu1 %v911_v0  ;;  %v4417_v0 = vmov 12  }
 0x323   :  { %3934 = vmatprep.subr.mxu1 %v910_v1 }
 0x324   :  { %3935 = vmatpush3.msra.mxu1 %v910_v1 }
 0x325   :  { %3936 = vmatprep.subr.mxu1 %v909_v2 }
 0x326   :  { %3937 = vmatpush3.msra.mxu1 %v909_v2  ;;  %v4418_v2 = vmov 9  }
 0x3d6   :  { %v3914_v12 = vpop.f32.mrf.mxu1  ;;  %v3921_v13 = vpop.f32.mrf.mxu0 }
 0x3d7   :  { %v875_v14 = vmul.f32 %v3914_v12, %v873_v8  ;;  %v869_v15 = vmul.f32 %v3921_v13, %v867_v9  ;;  %v4420_v12 = vmov 2   ;;  %v4421_v13 = vmov 15  }
 0x3d8   :  { %v773_v16 = vpop.f32.mrf.mxu1  ;;  %v854_v17 = vpop.f32.mrf.mxu0 }
 0x3d9   :  { %v877_v18 = vadd.f32 %v875_v14, %v869_v15  ;;  %v874_v20 = vmul.f32 %v873_v8, %v773_v16  ;;  %v868_v22 = vmul.f32 %v867_v9, %v854_v17  ;;  %v4422_v16 = vmov 10  }
 0x3da   :  { %v4423_v17 = vmov 3  }
 0x3db   :  { %v885_v26 = vadd.f32 %v883_v19, %v877_v18  ;;  %v876_v27 = vadd.f32 %v874_v20, %v868_v22  ;;  %v4424_v18 = vmov 5   ;;  %v4425_v19 = vmov 11  }
 0x3dd   :  { %v894_v29 = vadd.f32 %v3679_v24, %v885_v26  ;;  %v884_v30 = vadd.f32 %v882_v28, %v876_v27  ;;  %v4827_v28 = vsub.s32 7, %v4652_v25 }
 0x3df   :  { %v896_v31 = vsub.f32 0.0, %v894_v29  ;;  %v893_v32 = vadd.f32 %v3679_v24, %v884_v30  ;;  %v4426_v24 = vmov 4   ;;  %v4427_v30 = vmov 14  }
 0x3e1   :  { %v899_v33 = vmul.f32 1.442695, %v896_v31  ;;  %v895_v34 = vsub.f32 0.0, %v893_v32 }
 0x3e3   :  { %4238 = vpow2.f32 %v899_v33  ;;  %v897_v35 = vmul.f32 1.442695, %v895_v34 }
 0x3e5   :  { %4240 = vpow2.f32 %v897_v35 }
 0x3f0   :  { %v4239_v36 = vpop.eup %4238 }
 0x3f1   :  { %v902_v37 = vadd.f32 1.0, %v4239_v36  ;;  %v4428_v36 = vmov 13  }
 0x3f2   :  { %v4241_v38 = vpop.eup %4240 }
 0x3f3   :  { %v901_v39 = vadd.f32 1.0, %v4241_v38  ;;  %4242 = vrcp.f32 %v902_v37  ;;  %v4850_v37 = vld [vmem:[%s5506_s9] sm:$0xff] }
 0x3f5   :  { %4244 = vrcp.f32 %v901_v39 }
 0x400   :  { %v4243_v40 = vpop.eup %4242 }
 0x401   :  { %v4752_v43 = vmul.f32 %v4243_v40, %v894_v29 }
 0x402   :  { %v4245_v41 = vpop.eup %4244 }
 0x403   :  { %v4750_v42 = vmul.f32 %v4245_v41, %v893_v32  ;;  %v4838_v32 = vsub.s32 6, %v4652_v25  ;;  %v5487_v41 = vmov 7  }
 0x405   :  { %3938 = vmatprep.mubr.msk.f32.mxu1 %vm917_vm11, %v4750_v42 }
 0x406   :  { %3939 = vmatmul.mubr.msk.f32.vlgmr.msra.gmra.mxu1 %vm917_vm11, %v4752_v43 }
 0x4c6   :  { %v3940_v46 = vpop.f32.mrf.mxu1 }
 0x4c8   :  { %v990_v47 = vpop.f32.mrf.mxu1 }
 0x4c9   :  { %3943 = vmatprep.mubr.msk.f32.mxu0 %vm1007_vm12, %v990_v47 }
 0x4ca   :  { %3944 = vmatmul.mubr.msk.f32.vlgmr.msra.gmra.mxu0 %vm1007_vm12, %v3940_v46 }
 0x4cb   :  { %3947 = vmatpush3.xpose.msk.msra.mxu0 %vm917_vm11, %v4752_v43  ;;  %3950 = vmatprep.mubr.msk.f32.mxu0 %vm4413_vm13, %v4412_v45 }
 0x4cc   :  { %3948 = vmatprep.subr.mxu0 %v4412_v45 }
 0x4cf   :  { %3949 = vmatpush3.xpose.msk.msra.mxu0 %vm917_vm11, %v4750_v42 }
 0x4d0   :  { %3953 = vmatprep.subr.mxu0 %v4412_v45 }
 0x4d2   :  { %3951 = vmatmul.mubr.msk.f32.vlgmr.msra.gmra.mxu0 %vm917_vm11, %v1105_v48 }
 0x4d3   :  { %3954 = vmatpush3.xpose.msk.msra.mxu0 %vm917_vm11, %v4752_v43  ;;  %3957 = vmatprep.mubr.msk.f32.mxu0 %vm4413_vm13, %v4412_v45 }
 0x4d4   :  { %3955 = vmatprep.subr.mxu0 %v4412_v45 }
 0x4d7   :  { %3956 = vmatpush3.xpose.msk.msra.mxu0 %vm917_vm11, %v4750_v42 }
 0x4da   :  { %3958 = vmatmul.mubr.msk.f32.vlgmr.msra.gmra.mxu0 %vm917_vm11, %v1179_v49 }
 0x58a   :  { %v3945_v53 = vpop.f32.mrf.mxu0 }
 0x58b   :  { %v4784_v54 = vadd.f32 %v3945_v53, %v3682_v52 }
 0x58c   :  { %v1080_v55 = vpop.f32.mrf.mxu0 }
 0x58d   :  { %v1092_v56 = vmin.f32 %v4784_v54, 20.0  ;;  %v4787_v57 = vadd.f32 %v3682_v52, %v1080_v55  ;;  %vm1090_vm15 = vcmp.gt.f32.partialorder %v4784_v54, 20.0  ;;  %v1762_v55 = vld [vmem:[%s5507_s13 + $0x38] sm:$0xff] }
 0x58e   :  { %3960 = vmatprep.subr.mxu1 %v1762_v55 }
 0x58f   :  { %v1095_v58 = vmul.f32 1.442695, %v1092_v56  ;;  %v1091_v59 = vmin.f32 %v4787_v57, 20.0  ;;  %vm1089_vm14 = vcmp.gt.f32.partialorder %v4787_v57, 20.0  ;;  %v1761_v56 = vld [vmem:[%s5507_s13 + $0x30] sm:$0xff]  ;;  %3961 = vmatpush3.msra.mxu1 %v1762_v55 }
 0x590   :  { %3962 = vmatprep.subr.mxu1 %v1761_v56 }
 0x591   :  { %v1093_v60 = vmul.f32 1.442695, %v1091_v59  ;;  %4246 = vpow2.f32 %v1095_v58  ;;  %3963 = vmatpush3.msra.mxu1 %v1761_v56 }
 0x592   :  { %v4790_v61 = vpop.f32.mrf.mxu0 }
 0x593   :  { %4248 = vpow2.f32 %v1093_v60  ;;  %1499 = vperm.xlu1 %4154, %v4790_v61   ;;  %1258 = vperm.xlu0 %4153, %v4790_v61  }
 0x594   :  { %v3952_v62 = vpop.f32.mrf.mxu0 }
 0x595   :  { %v4909_v62 = vsub.s32 3, %v4652_v25 }
 0x597   :  { %4155 = vset.pattern.permute.xlu1 %v4416_v63  ;;  %4162 = vset.pattern.permute.xlu0 %v4417_v0 }
 0x598   :  { %1282 = vperm.xlu1 %4155, %v4790_v61   ;;  %1614 = vperm.xlu0 %4162, %v4790_v61  }
 0x59a   :  { %v4798_v1 = vpop.f32.mrf.mxu0 }
 0x59c   :  { %4156 = vset.pattern.permute.xlu1 %v4418_v2  ;;  %4165 = vset.pattern.permute.xlu0 %v4419_v7  ;;  %v3959_v8 = vpop.f32.mrf.mxu0 }
 0x59d   :  { %1521 = vperm.xlu1 %4156, %v4790_v61   ;;  %1437 = vperm.xlu0 %4165, %v4790_v61   ;;  %v1759_v8 = vld [vmem:[%s5507_s13 + $0x20] sm:$0xff] }
 0x59e   :  { %v4247_v9 = vpop.eup %4246 }
 0x59f   :  { %v1098_v15 = vadd.f32 1.0, %v4247_v9 }
 0x5a0   :  { %v4249_v11 = vpop.eup %4248 }
 0x5a1   :  { %4157 = vset.pattern.permute.xlu1 %v4420_v12  ;;  %4168 = vset.pattern.permute.xlu0 %v4421_v13  ;;  %v1097_v14 = vadd.f32 1.0, %v4249_v11 }
 0x5a2   :  { %1313 = vperm.xlu1 %4157, %v4790_v61   ;;  %1707 = vperm.xlu0 %4168, %v4790_v61  }
 0x5a3   :  { %4250 = vlog2.f32 %v1097_v14  ;;  %v1758_v14 = vld [vmem:[%s5507_s13 + $0x18] sm:$0xff] }
 0x5a4   :  { %4252 = vlog2.f32 %v1098_v15 }
 0x5a6   :  { %4158 = vset.pattern.permute.xlu1 %v4422_v16  ;;  %4171 = vset.pattern.permute.xlu0 %v4420_v12 }
 0x5a7   :  { %1552 = vperm.xlu1 %4158, %v4790_v61   ;;  %1331 = vperm.xlu0 %4171, %v4798_v1  }
 0x5ab   :  { %4159 = vset.pattern.permute.xlu1 %v4423_v17  ;;  %4174 = vset.pattern.permute.xlu0 %v4424_v18 }
 0x5ac   :  { %1344 = vperm.xlu1 %4159, %v4790_v61   ;;  %1424 = vperm.xlu0 %4174, %v4798_v1  }
 0x5b0   :  { %4160 = vset.pattern.permute.xlu1 %v4425_v19  ;;  %4177 = vset.pattern.permute.xlu0 %v4414_v50  ;;  %v4251_v20 = vpop.eup %4250 }
 0x5b1   :  { %1583 = vperm.xlu1 %4160, %v4790_v61   ;;  %1508 = vperm.xlu0 %4177, %v4798_v1   ;;  %v4253_v22 = vpop.eup %4252  ;;  %v1100_v26 = vmul.f32 0.6931472, %v4251_v20 }
 0x5b2   :  { %v1102_v27 = vmul.f32 0.6931472, %v4253_v22 }
 0x5b3   :  { %v4830_v29 = vsel %vm1089_vm14, %v4787_v57, %v1100_v26 }
 0x5b4   :  { %v4835_v31 = vsel %vm1090_vm15, %v4784_v54, %v1102_v27  ;;  %v1448_v33 = vrot.slane %v4830_v29, %v4838_v32  ;;  %v1479_v34 = vrot.slane %v4830_v29, %v4827_v28  ;;  %v1293_v44 = vrot.slane %v4830_v29, %v4733_v3 }
 0x5b5   :  { %4161 = vset.pattern.permute.xlu1 %v4426_v24  ;;  %4180 = vset.pattern.permute.xlu0 %v4425_v19  ;;  %v1718_v35 = vrot.slane %v4835_v31, %v4827_v28  ;;  %v1324_v47 = vrot.slane %v4830_v29, %v4741_v6  ;;  %v1532_v49 = vrot.slane %v4835_v31, %v4733_v3 }
 0x5b6   :  { %1375 = vperm.xlu1 %4161, %v4790_v61   ;;  %1601 = vperm.xlu0 %4180, %v4798_v1   ;;  %v4855_v38 = vmul.f32 %v1448_v33, %v4850_v37  ;;  %v4858_v39 = vmul.f32 %v1479_v34, %v4850_v37  ;;  %v1294_v46 = vmul.f32 %v1293_v44, %v4850_v37  ;;  %v1757_v33 = vld [vmem:[%s5507_s13 + $0x10] sm:$0xff]  ;;  %v4928_v34 = vsub.s32 4, %v4652_v25 }
 0x5b7   :  { %v4861_v40 = vmul.f32 %v1718_v35, %v4850_v37  ;;  %v1325_v52 = vmul.f32 %v1324_v47, %v4850_v37  ;;  %v1533_v53 = vmul.f32 %v1532_v49, %v4850_v37  ;;  %v1563_v57 = vrot.slane %v4835_v31, %v4741_v6  ;;  %v1756_v47 = vld [vmem:[%s5507_s13 + $0x8] sm:$0xff] }
 0x5b8   :  { %v1295_v48 = vmul.f32 1.442695, %v1294_v46  ;;  %v4905_v58 = vmul.f32 %v4830_v29, %v4750_v42  ;;  %v1355_v42 = vrot.slane %v4830_v29, %v4909_v62  ;;  %v1594_v15 = vrot.slane %v4835_v31, %v4909_v62 }
 0x5b9   :  { %v1326_v54 = vmul.f32 1.442695, %v1325_v52  ;;  %v1564_v9 = vmul.f32 %v1563_v57, %v4850_v37  ;;  %v4934_v49 = vmul.f32 %v4835_v31, %v4752_v43 }
 0x5ba   :  { %4163 = vset.pattern.permute.xlu1 %v4424_v18  ;;  %4183 = vset.pattern.permute.xlu0 %v4427_v30  ;;  %4254 = vpow2.f32 %v1295_v48  ;;  %v1264_v11 = vrot.slane %v4905_v58, %v4736_v4  ;;  %v1288_v27 = vrot.slane %v4905_v58, %v4733_v3  ;;  %v1356_v46 = vmul.f32 %v1355_v42, %v4850_v37 }
 0x5bb   :  { %1406 = vperm.xlu1 %4163, %v4790_v61   ;;  %1694 = vperm.xlu0 %4183, %v4798_v1   ;;  %4256 = vpow2.f32 %v1326_v54  ;;  %v1565_v35 = vmul.f32 1.442695, %v1564_v9  ;;  %v1443_v52 = vrot.slane %v4905_v58, %v4838_v32  ;;  %v1386_v54 = vrot.slane %v4830_v29, %v4928_v34 }
 0x5bc   :  { %v1357_v9 = vmul.f32 1.442695, %v1356_v46  ;;  %v1505_v42 = vrot.slane %v4934_v49, %v4736_v4 }
 0x5bf   :  { %4164 = vset.pattern.permute.xlu1 %v4428_v36  ;;  %4185 = vset.pattern.permute.xlu0 %v5486_v51 }
 0x5c0   :  { %1645 = vperm.xlu1 %4164, %v4790_v61  }
 0x5c4   :  { %4166 = vset.pattern.permute.xlu1 %v4427_v30 }
 0x5c5   :  { %1676 = vperm.xlu1 %4166, %v4790_v61  }
 0x5c7   :  { %v4255_v48 = vpop.eup %4254 }
 0x5c9   :  { %4167 = vset.pattern.permute.xlu1 %v5487_v41 }
 0x5ca   :  { %1468 = vperm.xlu1 %4167, %v4790_v61   ;;  %v1760_v61 = vld [vmem:[%s5507_s13 + $0x28] sm:$0xff] }
 0x5cb   :  { %3964 = vmatprep.subr.mxu1 %v1760_v61 }
 0x5cc   :  { %3965 = vmatpush3.msra.mxu1 %v1760_v61  ;;  %v1625_v61 = vrot.slane %v4835_v31, %v4928_v34 }
 0x5cd   :  { %3966 = vmatprep.subr.mxu1 %v1759_v8 }
 0x5ce   :  { %4169 = vset.pattern.permute.xlu1 %v5486_v51  ;;  %3967 = vmatpush3.msra.mxu1 %v1759_v8 }
 0x5cf   :  { %1268 = vperm.xlu1 %4169, %v4798_v1   ;;  %3968 = vmatprep.subr.mxu1 %v1758_v14 }
 0x5d0   :  { %3969 = vmatpush3.msra.mxu1 %v1758_v14 }
 0x5d1   :  { %3970 = vmatprep.subr.mxu1 %v1757_v33 }
 0x5d2   :  { %3971 = vmatpush3.msra.mxu1 %v1757_v33 }
 0x5d3   :  { %4170 = vset.pattern.permute.xlu1 %v4416_v63  ;;  %3972 = vmatprep.subr.mxu1 %v1756_v47 }
 0x5d4   :  { %1300 = vperm.xlu1 %4170, %v4798_v1   ;;  %3973 = vmatpush3.msra.mxu1 %v1756_v47  ;;  %v1626_v47 = vmul.f32 %v1625_v61, %v4850_v37 }
 0x5d6   :  { %v1627_v61 = vmul.f32 1.442695, %v1626_v47 }
 0x5d8   :  { %4172 = vset.pattern.permute.xlu1 %v4423_v17 }
 0x5d9   :  { %1362 = vperm.xlu1 %4172, %v4798_v1  }
 0x5dd   :  { %4173 = vset.pattern.permute.xlu1 %v4426_v24 }
 0x5de   :  { %1393 = vperm.xlu1 %4173, %v4798_v1  }
 0x5e2   :  { %4175 = vset.pattern.permute.xlu1 %v4419_v7 }
 0x5e3   :  { %1455 = vperm.xlu1 %4175, %v4798_v1  }
 0x5e7   :  { %4176 = vset.pattern.permute.xlu1 %v5487_v41 }
 0x5e8   :  { %1486 = vperm.xlu1 %4176, %v4798_v1  }
 0x5ec   :  { %4178 = vset.pattern.permute.xlu1 %v4418_v2 }
 0x5ed   :  { %1539 = vperm.xlu1 %4178, %v4798_v1  }
 0x5f1   :  { %4179 = vset.pattern.permute.xlu1 %v4422_v16 }
 0x5f2   :  { %1570 = vperm.xlu1 %4179, %v4798_v1  }
 0x5f6   :  { %4181 = vset.pattern.permute.xlu1 %v4417_v0 }
 0x5f7   :  { %1632 = vperm.xlu1 %4181, %v4798_v1  }
 0x5fb   :  { %4182 = vset.pattern.permute.xlu1 %v4428_v36 }
 0x5fc   :  { %1663 = vperm.xlu1 %4182, %v4798_v1  }
 0x600   :  { %4184 = vset.pattern.permute.xlu1 %v4421_v13 }
 0x601   :  { %1725 = vperm.xlu1 %4184, %v4798_v1   ;;  %v1534_v1 = vmul.f32 1.442695, %v1533_v53  ;;  %v1595_v53 = vmul.f32 %v1594_v15, %v4850_v37  ;;  %v1319_v15 = vrot.slane %v4905_v58, %v4741_v6 }
 0x603   :  { %4258 = vpow2.f32 %v1534_v1  ;;  %v4948_v1 = vsub.s32 5, %v4652_v25  ;;  %v1387_v25 = vmul.f32 %v1386_v54, %v4850_v37 }
 0x604   :  { %4260 = vpow2.f32 %v1565_v35  ;;  %v1527_v35 = vrot.slane %v4934_v49, %v4733_v3 }
 0x605   :  { %4186 = vset.pattern.permute.xlu1 %v4414_v50  ;;  %v1417_v14 = vrot.slane %v4830_v29, %v4948_v1  ;;  %4262 = vpow2.f32 %v1357_v9 }
 0x60e   :  { %v1500_v59 = vpop.permute.xlu1 %1499  ;;  %v1259_v60 = vpop.permute.xlu0 %1258 }
 0x60f   :  { %v4922_v26 = vmul.f32 %v1264_v11, %v1259_v60  ;;  %v1755_v60 = vld [vmem:[%s5507_s13] sm:$0xff]  ;;  %v1596_v11 = vmul.f32 1.442695, %v1595_v53  ;;  %v1506_v33 = vmul.f32 %v1505_v42, %v1500_v59  ;;  %v1418_v59 = vmul.f32 %v1417_v14, %v4850_v37 }
 0x610   :  { %3974 = vmatprep.subr.mxu1 %v1755_v60  ;;  %v1656_v42 = vrot.slane %v4835_v31, %v4948_v1 }
 0x611   :  { %v1297_v55 = vmul.f32 %v4255_v48, %v4922_v26  ;;  %3975 = vmatpush3.msra.mxu1 %v1755_v60  ;;  %4264 = vpow2.f32 %v1596_v11  ;;  %v1419_v11 = vmul.f32 1.442695, %v1418_v59 }
 0x613   :  { %v1283_v20 = vpop.permute.xlu1 %1282  ;;  %v4920_v22 = vpop.permute.xlu0 %1614 }
 0x614   :  { %v1289_v44 = vmul.f32 %v1288_v27, %v1283_v20  ;;  %v1713_v20 = vrot.slane %v4934_v49, %v4827_v28  ;;  %v4257_v27 = vpop.eup %4256 }
 0x616   :  { %v4950_v8 = vadd.f32 %v1297_v55, %v1289_v44  ;;  %v4259_v55 = vpop.eup %4258 }
 0x617   :  { %v1536_v60 = vmul.f32 %v4259_v55, %v1506_v33 }
 0x618   :  { %v1522_v56 = vpop.permute.xlu1 %1521  ;;  %v1438_v57 = vpop.permute.xlu0 %1437 }
 0x619   :  { %v4945_v43 = vmul.f32 %v1443_v52, %v1438_v57  ;;  %v1328_v52 = vmul.f32 %v4257_v27, %v4950_v8  ;;  %v1528_v53 = vmul.f32 %v1527_v35, %v1522_v56  ;;  %v1388_v57 = vmul.f32 1.442695, %v1387_v25  ;;  %v4261_v27 = vpop.eup %4260 }
 0x61a   :  { %v1687_v56 = vrot.slane %v4835_v31, %v4838_v32 }
 0x61b   :  { %4266 = vpow2.f32 %v1388_v57 }
 0x61c   :  { %4268 = vpow2.f32 %v1627_v61  ;;  %v1688_v31 = vmul.f32 %v1687_v56, %v4850_v37 }
 0x61d   :  { %v1314_v44 = vpop.permute.xlu1 %1313  ;;  %v1708_v46 = vpop.permute.xlu0 %1707  ;;  %4270 = vpow2.f32 %v1419_v11  ;;  %v1481_v11 = vmul.f32 1.442695, %v4858_v39 }
 0x61e   :  { %v1320_v48 = vmul.f32 %v1319_v15, %v1314_v44  ;;  %v4964_v29 = vmul.f32 %v1713_v20, %v1708_v46  ;;  %v4970_v15 = vadd.f32 %v1536_v60, %v1528_v53  ;;  %v1558_v20 = vrot.slane %v4934_v49, %v4741_v6  ;;  %v4263_v60 = vpop.eup %4262 }
 0x61f   :  { %v1657_v44 = vmul.f32 %v1656_v42, %v4850_v37  ;;  %v1450_v53 = vmul.f32 1.442695, %v4855_v38  ;;  %v1589_v42 = vrot.slane %v4934_v49, %v4909_v62  ;;  %v4265_v61 = vpop.eup %4264 }
 0x620   :  { %v1329_v54 = vadd.f32 %v1328_v52, %v1320_v48  ;;  %v1567_v46 = vmul.f32 %v4261_v27, %v4970_v15 }
 0x621   :  { %v1658_v59 = vmul.f32 1.442695, %v1657_v44  ;;  %4272 = vpow2.f32 %v1450_v53 }
 0x622   :  { %v1553_v51 = vpop.permute.xlu1 %1552  ;;  %v1332_v41 = vpop.permute.xlu0 %1331 }
 0x623   :  { %v1334_v9 = vmul.f32 %v1332_v41, %v1329_v54  ;;  %v1559_v25 = vmul.f32 %v1558_v20, %v1553_v51  ;;  %v1350_v41 = vrot.slane %v4905_v58, %v4909_v62  ;;  %4274 = vpow2.f32 %v1658_v59 }
 0x625   :  { %v1335_v14 = vsel %vm917_vm11, %v1334_v9, 0.0  ;;  %v4984_v51 = vadd.f32 %v1567_v46, %v1559_v25  ;;  %v1359_v9 = vmul.f32 %v4263_v60, %v1329_v54 }
 0x626   :  { %v1336_v35 = vrot.slane %v1335_v14, 4 }
 0x627   :  { %v1345_v47 = vpop.permute.xlu1 %1344  ;;  %v4979_v48 = vpop.permute.xlu0 %1424  ;;  %v1598_v25 = vmul.f32 %v4265_v61, %v4984_v51  ;;  %v1720_v61 = vmul.f32 1.442695, %v4861_v40 }
 0x628   :  { %v1337_v52 = vadd.f32 %v1336_v35, %v1335_v14  ;;  %v1351_v57 = vmul.f32 %v1350_v41, %v1345_v47  ;;  %v1689_v35 = vmul.f32 1.442695, %v1688_v31  ;;  %v1381_v41 = vrot.slane %v4905_v58, %v4928_v34  ;;  %v4267_v39 = vpop.eup %4266 }
 0x629   :  { %v4269_v60 = vpop.eup %4268 }
 0x62a   :  { %v1338_v55 = vrot.slane %v1337_v52, 2  ;;  %v4991_v46 = vadd.f32 %v1359_v9, %v1351_v57  ;;  %4276 = vpow2.f32 %v1689_v35  ;;  %v4271_v35 = vpop.eup %4270 }
 0x62b   :  { %4278 = vpow2.f32 %v1481_v11 }
 0x62c   :  { %v1339_v20 = vadd.f32 %v1338_v55, %v1337_v52  ;;  %v1584_v14 = vpop.permute.xlu1 %1583  ;;  %v1509_v27 = vpop.permute.xlu0 %1508  ;;  %v1390_v57 = vmul.f32 %v4267_v39, %v4991_v46  ;;  %4280 = vpow2.f32 %v1720_v61 }
 0x62d   :  { %v1590_v37 = vmul.f32 %v1589_v42, %v1584_v14  ;;  %v1511_v56 = vmul.f32 %v1509_v27, %v1506_v33  ;;  %v1620_v42 = vrot.slane %v4934_v49, %v4928_v34 }
 0x62e   :  { %v1340_v38 = vrot.slane %v1339_v20, 1 }
 0x62f   :  { %v1512_v44 = vsel %vm917_vm11, %v1511_v56, 0.0  ;;  %v1599_v47 = vadd.f32 %v1598_v25, %v1590_v37  ;;  %v1412_v37 = vrot.slane %v4905_v58, %v4948_v1  ;;  %v1621_v56 = vmul.f32 %v1620_v42, %v4920_v22 }
 0x630   :  { %v1341_v52 = vadd.f32 %v1340_v38, %v1339_v20  ;;  %v1513_v54 = vrot.slane %v1512_v44, 4 }
 0x631   :  { %v1376_v31 = vpop.permute.xlu1 %1375  ;;  %v1602_v33 = vpop.permute.xlu0 %1601  ;;  %v1629_v14 = vmul.f32 %v4269_v60, %v1599_v47 }
 0x632   :  { %1342 = vst.msk [vmem:[#allocation2 + $0x2] sm:$0x1] %vm1279_vm0, %v1341_v52  ;;  %v1514_v53 = vadd.f32 %v1513_v54, %v1512_v44  ;;  %v1382_v55 = vmul.f32 %v1381_v41, %v1376_v31  ;;  %v1604_v59 = vmul.f32 %v1602_v33, %v1599_v47  ;;  %v4273_v31 = vpop.eup %4272 }
 0x633   :  { %v5008_v41 = vadd.f32 %v1629_v14, %v1621_v56 }
 0x634   :  { %v1515_v20 = vrot.slane %v1514_v53, 2  ;;  %v5001_v9 = vadd.f32 %v1390_v57, %v1382_v55  ;;  %v1605_v27 = vsel %vm917_vm11, %v1604_v59, 0.0  ;;  %v1651_v55 = vrot.slane %v4934_v49, %v4948_v1  ;;  %v4275_v57 = vpop.eup %4274 }
 0x635   :  { %v1606_v11 = vrot.slane %v1605_v27, 4  ;;  %v1660_v61 = vmul.f32 %v4275_v57, %v5008_v41 }
 0x636   :  { %v1516_v25 = vadd.f32 %v1515_v20, %v1514_v53  ;;  %v1407_v38 = vpop.permute.xlu1 %1406  ;;  %v1421_v44 = vmul.f32 %v4271_v35, %v5001_v9 }
 0x637   :  { %v1607_v52 = vadd.f32 %v1606_v11, %v1605_v27  ;;  %v1413_v54 = vmul.f32 %v1412_v37, %v1407_v38  ;;  %v4277_v20 = vpop.eup %4276 }
 0x638   :  { %v1517_v40 = vrot.slane %v1516_v25, 1  ;;  %v4279_v11 = vpop.eup %4278 }
 0x639   :  { %v1608_v47 = vrot.slane %v1607_v52, 2  ;;  %v1422_v39 = vadd.f32 %v1421_v44, %v1413_v54 }
 0x63a   :  { %v1518_v33 = vadd.f32 %v1517_v40, %v1516_v25 }
 0x63b   :  { %v1609_v59 = vadd.f32 %v1608_v47, %v1607_v52  ;;  %v1427_v22 = vmul.f32 %v4979_v48, %v1422_v39  ;;  %v1646_v53 = vpop.permute.xlu1 %1645  ;;  %v1452_v60 = vmul.f32 %v4273_v31, %v1422_v39  ;;  %v1682_v48 = vrot.slane %v4934_v49, %v4838_v32  ;;  %v1695_v47 = vpop.permute.xlu0 %1694 }
 0x63c   :  { %1519 = vst.msk [vmem:[#allocation2 + $0x8] sm:$0x1] %vm1279_vm0, %v1518_v33  ;;  %v1652_v42 = vmul.f32 %v1651_v55, %v1646_v53  ;;  %v4281_v31 = vpop.eup %4280  ;;  %v1474_v55 = vrot.slane %v4905_v58, %v4827_v28 }
 0x63d   :  { %v1610_v14 = vrot.slane %v1609_v59, 1  ;;  %v1428_v27 = vsel %vm917_vm11, %v1427_v22, 0.0  ;;  %v5017_v35 = vadd.f32 %v1452_v60, %v4945_v43 }
 0x63e   :  { %v1429_v37 = vrot.slane %v1428_v27, 4  ;;  %v5019_v56 = vadd.f32 %v1660_v61, %v1652_v42  ;;  %v3672_v61 = vld [vmem:[%s5508_s28] ss:$0 sm:$0xff] }
 0x63f   :  { %v1611_v25 = vadd.f32 %v1610_v14, %v1609_v59  ;;  %v1483_v38 = vmul.f32 %v4279_v11, %v5017_v35  ;;  %v5034_v11 = vadd.f32 %v3672_v61, %v4746_v10 }
 0x640   :  { %v1430_v44 = vadd.f32 %v1429_v37, %v1428_v27  ;;  %v1677_v52 = vpop.permute.xlu1 %1676  ;;  %v1691_v54 = vmul.f32 %v4277_v20, %v5019_v56 }
 0x641   :  { %1612 = vst.msk [vmem:[#allocation2 + $0xb] sm:$0x1] %vm1279_vm0, %v1611_v25  ;;  %v1683_v40 = vmul.f32 %v1682_v48, %v1677_v52 }
 0x642   :  { %v1431_v43 = vrot.slane %v1430_v44, 2 }
 0x643   :  { %v1692_v39 = vadd.f32 %v1691_v54, %v1683_v40 }
 0x644   :  { %v1432_v33 = vadd.f32 %v1431_v43, %v1430_v44  ;;  %v1739_v44 = vsub.f32 0.0, %v5034_v11 }
 0x645   :  { %v1697_v57 = vmul.f32 %v1695_v47, %v1692_v39  ;;  %v1469_v49 = vpop.permute.xlu1 %1468  ;;  %v1722_v59 = vmul.f32 %v4281_v31, %v1692_v39 }
 0x646   :  { %v1433_v22 = vrot.slane %v1432_v33, 1  ;;  %v1475_v53 = vmul.f32 %v1474_v55, %v1469_v49  ;;  %v1741_v10 = vmul.f32 1.442695, %v1739_v44 }
 0x647   :  { %v1698_v60 = vsel %vm917_vm11, %v1697_v57, 0.0  ;;  %v5030_v42 = vadd.f32 %v1722_v59, %v4964_v29 }
 0x648   :  { %v1434_v20 = vadd.f32 %v1433_v22, %v1432_v33  ;;  %v1699_v14 = vrot.slane %v1698_v60, 4  ;;  %v1484_v27 = vadd.f32 %v1483_v38, %v1475_v53  ;;  %4282 = vpow2.f32 %v1741_v10 }
 0x64a   :  { %1435 = vst.msk [vmem:[#allocation2 + $0x5] sm:$0x1] %vm1279_vm0, %v1434_v20  ;;  %v1700_v58 = vadd.f32 %v1699_v14, %v1698_v60  ;;  %v1269_v37 = vpop.permute.xlu1 %1268 }
 0x64b   :  { %v1271_v25 = vmul.f32 %v1269_v37, %v4922_v26 }
 0x64c   :  { %v1701_v48 = vrot.slane %v1700_v58, 2 }
 0x64d   :  { %v1272_v52 = vsel %vm917_vm11, %v1271_v25, 0.0 }
 0x64e   :  { %v1702_v29 = vadd.f32 %v1701_v48, %v1700_v58  ;;  %v1273_v54 = vrot.slane %v1272_v52, 4 }
 0x64f   :  { %v1301_v40 = vpop.permute.xlu1 %1300 }
 0x650   :  { %v1703_v43 = vrot.slane %v1702_v29, 1  ;;  %v1274_v47 = vadd.f32 %v1273_v54, %v1272_v52  ;;  %v1303_v38 = vmul.f32 %v1301_v40, %v4950_v8 }
 0x652   :  { %v1704_v39 = vadd.f32 %v1703_v43, %v1702_v29  ;;  %v1275_v31 = vrot.slane %v1274_v47, 2  ;;  %v1304_v33 = vsel %vm917_vm11, %v1303_v38, 0.0 }
 0x653   :  { %v1305_v55 = vrot.slane %v1304_v33, 4 }
 0x654   :  { %1705 = vst.msk [vmem:[#allocation2 + $0xe] sm:$0x1] %vm1279_vm0, %v1704_v39  ;;  %v1276_v26 = vadd.f32 %v1275_v31, %v1274_v47  ;;  %v1363_v57 = vpop.permute.xlu1 %1362 }
 0x655   :  { %v1306_v49 = vadd.f32 %v1305_v55, %v1304_v33  ;;  %v1365_v59 = vmul.f32 %v1363_v57, %v4991_v46  ;;  %v4283_v31 = vpop.eup %4282 }
 0x656   :  { %v1277_v22 = vrot.slane %v1276_v26, 1 }
 0x657   :  { %v1307_v53 = vrot.slane %v1306_v49, 2  ;;  %v1366_v60 = vsel %vm917_vm11, %v1365_v59, 0.0 }
 0x658   :  { %v1278_v20 = vadd.f32 %v1277_v22, %v1276_v26  ;;  %v1367_v8 = vrot.slane %v1366_v60, 4  ;;  %v1745_v22 = vadd.f32 1.0, %v4283_v31 }
 0x659   :  { %v1308_v14 = vadd.f32 %v1307_v53, %v1306_v49  ;;  %v1394_v58 = vpop.permute.xlu1 %1393 }
 0x65a   :  { %1280 = vst.msk [vmem:[#allocation2] sm:$0x1] %vm1279_vm0, %v1278_v20  ;;  %v1368_v37 = vadd.f32 %v1367_v8, %v1366_v60  ;;  %v1396_v25 = vmul.f32 %v1394_v58, %v5001_v9  ;;  %v5052_v9 = vadd.f32 %v4738_v5, %v3672_v61  ;;  %4284 = vrcp.f32 %v1745_v22 }
 0x65b   :  { %v1309_v48 = vrot.slane %v1308_v14, 1 }
 0x65c   :  { %v1369_v44 = vrot.slane %v1368_v37, 2  ;;  %v1397_v52 = vsel %vm917_vm11, %v1396_v25, 0.0 }
 0x65d   :  { %v1310_v29 = vadd.f32 %v1309_v48, %v1308_v14  ;;  %v1398_v54 = vrot.slane %v1397_v52, 4 }
 0x65e   :  { %v1370_v46 = vadd.f32 %v1369_v44, %v1368_v37  ;;  %v1456_v40 = vpop.permute.xlu1 %1455 }
 0x65f   :  { %1311 = vst.msk [vmem:[#allocation2 + $0x1] sm:$0x1] %vm1279_vm0, %v1310_v29  ;;  %v1399_v43 = vadd.f32 %v1398_v54, %v1397_v52  ;;  %v1458_v47 = vmul.f32 %v1456_v40, %v5017_v35  ;;  %v1740_v35 = vsub.f32 0.0, %v5052_v9 }
 0x660   :  { %v1371_v38 = vrot.slane %v1370_v46, 1 }
 0x661   :  { %v1400_v10 = vrot.slane %v1399_v43, 2  ;;  %v1459_v39 = vsel %vm917_vm11, %v1458_v47, 0.0  ;;  %v1743_v25 = vmul.f32 1.442695, %v1740_v35 }
 0x662   :  { %v1372_v33 = vadd.f32 %v1371_v38, %v1370_v46  ;;  %v1460_v55 = vrot.slane %v1459_v39, 4 }
 0x663   :  { %v1401_v26 = vadd.f32 %v1400_v10, %v1399_v43  ;;  %v1487_v57 = vpop.permute.xlu1 %1486  ;;  %4286 = vpow2.f32 %v1743_v25 }
 0x664   :  { %1373 = vst.msk [vmem:[#allocation2 + $0x3] sm:$0x1] %vm1279_vm0, %v1372_v33  ;;  %v1461_v49 = vadd.f32 %v1460_v55, %v1459_v39  ;;  %v1489_v59 = vmul.f32 %v1487_v57, %v1484_v27 }
 0x665   :  { %v1402_v53 = vrot.slane %v1401_v26, 1 }
 0x666   :  { %v1462_v60 = vrot.slane %v1461_v49, 2  ;;  %v1490_v20 = vsel %vm917_vm11, %v1489_v59, 0.0 }
 0x667   :  { %v1403_v8 = vadd.f32 %v1402_v53, %v1401_v26  ;;  %v1491_v14 = vrot.slane %v1490_v20, 4  ;;  %v4285_v22 = vpop.eup %4284 }
 0x668   :  { %v1463_v58 = vadd.f32 %v1462_v60, %v1461_v49  ;;  %v1540_v5 = vpop.permute.xlu1 %1539 }
 0x669   :  { %1404 = vst.msk [vmem:[#allocation2 + $0x4] sm:$0x1] %vm1279_vm0, %v1403_v8  ;;  %v1492_v61 = vadd.f32 %v1491_v14, %v1490_v20  ;;  %v1542_v37 = vmul.f32 %v1540_v5, %v4970_v15  ;;  %v1751_v14 = vmul.f32 %v4285_v22, %v5034_v11  ;;  %v4354_v22 = vld [vmem:[%s4454_s17] sm:$0xff] }
 0x66a   :  { %v1464_v48 = vrot.slane %v1463_v58, 1 }
 0x66b   :  { %v1493_v27 = vrot.slane %v1492_v61, 2  ;;  %v1543_v44 = vsel %vm917_vm11, %v1542_v37, 0.0 }
 0x66c   :  { %v1465_v52 = vadd.f32 %v1464_v48, %v1463_v58  ;;  %v1544_v29 = vrot.slane %v1543_v44, 4 }
 0x66d   :  { %v1494_v54 = vadd.f32 %v1493_v27, %v1492_v61  ;;  %v1571_v46 = vpop.permute.xlu1 %1570 }
 0x66e   :  { %1466 = vst.msk [vmem:[#allocation2 + $0x6] sm:$0x1] %vm1279_vm0, %v1465_v52  ;;  %v1545_v40 = vadd.f32 %v1544_v29, %v1543_v44  ;;  %v1573_v43 = vmul.f32 %v1571_v46, %v4984_v51 }
 0x66f   :  { %v1495_v47 = vrot.slane %v1494_v54, 1 }
 0x670   :  { %v1546_v38 = vrot.slane %v1545_v40, 2  ;;  %v1574_v10 = vsel %vm917_vm11, %v1573_v43, 0.0  ;;  %v4287_v37 = vpop.eup %4286 }
 0x671   :  { %v1496_v15 = vadd.f32 %v1495_v47, %v1494_v54  ;;  %v1575_v39 = vrot.slane %v1574_v10, 4 }
 0x672   :  { %v1547_v31 = vadd.f32 %v1546_v38, %v1545_v40  ;;  %v1633_v33 = vpop.permute.xlu1 %1632 }
 0x673   :  { %1497 = vst.msk [vmem:[#allocation2 + $0x7] sm:$0x1] %vm1279_vm0, %v1496_v15  ;;  %v1576_v55 = vadd.f32 %v1575_v39, %v1574_v10  ;;  %v1635_v26 = vmul.f32 %v1633_v33, %v5008_v41 }
 0x674   :  { %v1548_v57 = vrot.slane %v1547_v31, 1 }
 0x675   :  { %v1577_v49 = vrot.slane %v1576_v55, 2  ;;  %v1636_v59 = vsel %vm917_vm11, %v1635_v26, 0.0 }
 0x676   :  { %v1549_v53 = vadd.f32 %v1548_v57, %v1547_v31  ;;  %v1637_v51 = vrot.slane %v1636_v59, 4 }
 0x677   :  { %v1578_v35 = vadd.f32 %v1577_v49, %v1576_v55  ;;  %v1664_v60 = vpop.permute.xlu1 %1663 }
 0x678   :  { %1550 = vst.msk [vmem:[#allocation2 + $0x9] sm:$0x1] %vm1279_vm0, %v1549_v53  ;;  %v1638_v20 = vadd.f32 %v1637_v51, %v1636_v59  ;;  %v1666_v8 = vmul.f32 %v1664_v60, %v5019_v56  ;;  %v1746_v56 = vadd.f32 1.0, %v4287_v37  ;;  %v3691_v53 = vld [vmem:[%s5509_s1] ss:$0 sm:$0xff]  ;;  %v3697_v37 = vld [vmem:[%s4474_s3 + $0x28] sm:$0xff] }
 0x679   :  { %v1579_v58 = vrot.slane %v1578_v35, 1 }
 0x67a   :  { %v1639_v5 = vrot.slane %v1638_v20, 2  ;;  %v1667_v41 = vsel %vm917_vm11, %v1666_v8, 0.0  ;;  %v1737_v61 = vld [vmem:[#allocation2] sm:$0xff]  ;;  %4288 = vrcp.f32 %v1746_v56 }
 0x67b   :  { %v1580_v25 = vadd.f32 %v1579_v58, %v1578_v35  ;;  %v1668_v48 = vrot.slane %v1667_v41, 4  ;;  %v1753_v27 = vmul.f32 %v1751_v14, %v1737_v61  ;;  %v3698_v61 = vld [vmem:[%s4474_s3 + $0x30] sm:$0xff] }
 0x67c   :  { %v1640_v44 = vadd.f32 %v1639_v5, %v1638_v20  ;;  %v1726_v52 = vpop.permute.xlu1 %1725 }
 0x67d   :  { %1581 = vst.msk [vmem:[#allocation2 + $0xa] sm:$0x1] %vm1279_vm0, %v1580_v25  ;;  %v1669_v29 = vadd.f32 %v1668_v48, %v1667_v41  ;;  %v1728_v54 = vmul.f32 %v1726_v52, %v5030_v42  ;;  %3976 = vmatprep.mubr.msk.f32.mxu1 %vm917_vm11, %v1753_v27  ;;  %v3707_v25 = vld [vmem:[%s4484_s14 + $0x38] sm:$0xff] }
 0x67e   :  { %v1641_v11 = vrot.slane %v1640_v44, 1 }
 0x67f   :  { %v1670_v46 = vrot.slane %v1669_v29, 2  ;;  %v1729_v40 = vsel %vm917_vm11, %v1728_v54, 0.0 }
 0x680   :  { %v1642_v43 = vadd.f32 %v1641_v11, %v1640_v44  ;;  %v1730_v47 = vrot.slane %v1729_v40, 4 }
 0x681   :  { %v1671_v38 = vadd.f32 %v1670_v46, %v1669_v29 }
 0x682   :  { %1643 = vst.msk [vmem:[#allocation2 + $0xc] sm:$0x1] %vm1279_vm0, %v1642_v43  ;;  %v1731_v10 = vadd.f32 %v1730_v47, %v1729_v40  ;;  %v3695_v43 = vld [vmem:[%s4469_s29 + $0x1] ss:$0 sm:$0xff]  ;;  %s5514_s29 = sld [smem:[#allocation14_spill]] }
 0x683   :  { %v1672_v15 = vrot.slane %v1671_v38, 1 }
 0x684   :  { %v1732_v39 = vrot.slane %v1731_v10, 2 }
 0x685   :  { %v1673_v31 = vadd.f32 %v1672_v15, %v1671_v38  ;;  %v3705_v15 = vld [vmem:[%s4484_s14 + $0x28] sm:$0xff] }
 0x686   :  { %v1733_v42 = vadd.f32 %v1732_v39, %v1731_v10  ;;  %v3706_v10 = vld [vmem:[%s4484_s14 + $0x30] sm:$0xff]  ;;  %v3704_v39 = vld [vmem:[%s4484_s14 + $0x20] sm:$0xff]  ;;  %s5517_s14 = sld [smem:[#allocation16_spill]] }
 0x687   :  { %1674 = vst.msk [vmem:[#allocation2 + $0xd] sm:$0x1] %vm1279_vm0, %v1673_v31  ;;  %v4289_v26 = vpop.eup %4288  ;;  %v3701_v31 = vld [vmem:[%s4479_s8 + $0x1] ss:$0 sm:$0xff]  ;;  %s5516_s8 = sld [smem:[#allocation18_spill]] }
 0x688   :  { %v1734_v33 = vrot.slane %v1733_v42, 1  ;;  %v1752_v57 = vmul.f32 %v4289_v26, %v5052_v9 }
 0x68a   :  { %v1735_v55 = vadd.f32 %v1734_v33, %v1733_v42 }
 0x68c   :  { %1736 = vst.msk [vmem:[#allocation2 + $0xf] sm:$0x1] %vm1279_vm0, %v1735_v55 }
 0x693   :  { %v1738_v49 = vld [vmem:[#allocation2 + $0x8] sm:$0xff] }
 0x694   :  { %v1754_v59 = vmul.f32 %v1752_v57, %v1738_v49  ;;  %v4355_v57 = vld [vmem:[%s4454_s17 + $0x8] sm:$0xff]  ;;  %v4356_v49 = vld [vmem:[%s4459_s21] sm:$0xff]  ;;  %s5512_s17 = sld [smem:[#allocation13_spill]] }
 0x696   :  { %3977 = vmatmul.mubr.msk.f32.vlgmr.msra.gmra.mxu1 %vm917_vm11, %v1754_v59  ;;  %v4357_v59 = vld [vmem:[%s4459_s21 + $0x8] sm:$0xff]  ;;  %s5513_s21 = sld [smem:[#allocation6_spill]] }
 0x697   :  { %4005 = vmatprep.mubr.msk.f32.mxu1 %vm700_vm10, %v4354_v22  ;;  %v3726_v22 = vld [vmem:[%s4504_s6 + $0x78] sm:$0xff] }
 0x756   :  { %v3978_v51 = vpop.f32.mrf.mxu1 }
 0x757   :  { %v1848_v35 = vadd.f32 %v3978_v51, %v3691_v53  ;;  %v3724_v51 = vld [vmem:[%s4504_s6 + $0x68] sm:$0xff] }
 0x758   :  { %v1842_v60 = vpop.f32.mrf.mxu1 }
 0x759   :  { %v5083_v20 = vadd.f32 %v1848_v35, %v4690_v21  ;;  %v1843_v8 = vadd.f32 %v3691_v53, %v1842_v60  ;;  %v3699_v21 = vld [vmem:[%s4474_s3 + $0x38] sm:$0xff]  ;;  %v3725_v53 = vld [vmem:[%s4504_s6 + $0x70] sm:$0xff]  ;;  %v3723_v35 = vld [vmem:[%s4504_s6 + $0x60] sm:$0xff] }
 0x75a   :  { %3979 = vmatprep.subr.mxu0 %v3699_v21  ;;  %v3722_v60 = vld [vmem:[%s4504_s6 + $0x58] sm:$0xff] }
 0x75b   :  { %v5086_v9 = vadd.f32 %v1843_v8, %v4692_v23  ;;  %v1854_v14 = vmul.f32 %v5083_v20, %v5083_v20  ;;  %3980 = vmatpush3.msra.mxu0 %v3699_v21  ;;  %v3696_v23 = vld [vmem:[%s4474_s3 + $0x20] sm:$0xff]  ;;  %v3721_v8 = vld [vmem:[%s4504_s6 + $0x50] sm:$0xff]  ;;  %s5515_s3 = sld [smem:[#allocation15_spill]] }
 0x75c   :  { %3981 = vmatprep.subr.mxu0 %v3698_v61 }
 0x75d   :  { %v1858_v58 = vsel %vm497_vm9, %v1854_v14, 0.0  ;;  %v1853_v5 = vmul.f32 %v5086_v9, %v5086_v9  ;;  %3982 = vmatpush3.msra.mxu0 %v3698_v61  ;;  %v3720_v14 = vld [vmem:[%s4504_s6 + $0x48] sm:$0xff] }
 0x75e   :  { %1859 = vadd.xlane.f32.xlu0 %v1858_v58  ;;  %3983 = vmatprep.subr.mxu0 %v3697_v37  ;;  %v3719_v58 = vld [vmem:[%s4504_s6 + $0x40] sm:$0xff]  ;;  %s5520_s6 = sld [smem:[#allocation20_spill]] }
 0x75f   :  { %v1855_v41 = vsel %vm497_vm9, %v1853_v5, 0.0  ;;  %3984 = vmatpush3.msra.mxu0 %v3697_v37 }
 0x760   :  { %1856 = vadd.xlane.f32.xlu1 %v1855_v41  ;;  %3985 = vmatprep.subr.mxu0 %v3696_v23  ;;  %v3716_v41 = vld [vmem:[%s4494_s24 + $0x4] sm:$0x7]  ;;  %s5518_s24 = sld [smem:[#allocation17_spill]] }
 0x761   :  { %3986 = vmatpush3.msra.mxu0 %v3696_v23  ;;  %v2222_v21 = vrot.slane %v3716_v41, %v4733_v3  ;;  %v2216_v61 = vrot.slane %v3716_v41, %v4736_v4  ;;  %v2230_v23 = vrot.slane %v3716_v41, %v4741_v6  ;;  %v3731_v41 = vld [vmem:[%s5505_s5 + $0x1] ss:$0 sm:$0xff] }
 0x762   :  { %3990 = vmatprep.subr.mxu0 %v3707_v25 }
 0x7e7   :  { %v1860_v48 = vpop.xlane.xlu0 %1859 }
 0x7e8   :  { %v1862_v27 = vmul.f32 0.03125, %v1860_v48 }
 0x7e9   :  { %v1857_v44 = vpop.xlane.xlu1 %1856 }
 0x7ea   :  { %v1864_v52 = vadd.f32 1e-05, %v1862_v27  ;;  %v1861_v29 = vmul.f32 0.03125, %v1857_v44 }
 0x7ec   :  { %4290 = vrsqrt.f32 %v1864_v52  ;;  %v1863_v54 = vadd.f32 1e-05, %v1861_v29 }
 0x7ee   :  { %4292 = vrsqrt.f32 %v1863_v54 }
 0x7f9   :  { %v4291_v56 = vpop.eup %4290 }
 0x7fa   :  { %v1868_v46 = vmul.f32 %v4291_v56, %v5083_v20 }
 0x7fb   :  { %v4293_v11 = vpop.eup %4292 }
 0x7fc   :  { %v1867_v40 = vmul.f32 %v4293_v11, %v5086_v9  ;;  %v1878_v38 = vmul.f32 %v3695_v43, %v1868_v46  ;;  %v3718_v11 = vld [vmem:[%s4499_s30 + $0x1] ss:$0 sm:$0xff]  ;;  %s5519_s30 = sld [smem:[#allocation19_spill]] }
 0x7fe   :  { %v1877_v47 = vmul.f32 %v3695_v43, %v1867_v40 }
 0x800   :  { %3987 = vmatprep.mubr.msk.f32.mxu0 %vm497_vm9, %v1877_v47 }
 0x801   :  { %3988 = vmatmul.mubr.msk.f32.vlgmr.msra.gmra.mxu0 %vm497_vm9, %v1878_v38 }
 0x802   :  { %3991 = vmatpush3.msra.mxu0 %v3707_v25  ;;  %3998 = vmatprep.mubr.msk.f32.mxu0 %vm497_vm9, %v1877_v47 }
 0x803   :  { %3992 = vmatprep.subr.mxu0 %v3706_v10 }
 0x804   :  { %3993 = vmatpush3.msra.mxu0 %v3706_v10 }
 0x805   :  { %3994 = vmatprep.subr.mxu0 %v3705_v15 }
 0x806   :  { %3995 = vmatpush3.msra.mxu0 %v3705_v15 }
 0x807   :  { %3996 = vmatprep.subr.mxu0 %v3704_v39 }
 0x808   :  { %3997 = vmatpush3.msra.mxu0 %v3704_v39 }
 0x809   :  { %3999 = vmatmul.mubr.msk.f32.vlgmr.msra.gmra.mxu0 %vm497_vm9, %v1878_v38  ;;  %4015 = vmatprep.subr.mxu0 %v3726_v22 }
 0x80a   :  { %4016 = vmatpush3.msra.mxu0 %v3726_v22 }
 0x80b   :  { %4017 = vmatprep.subr.mxu0 %v3725_v53 }
 0x80c   :  { %4018 = vmatpush3.msra.mxu0 %v3725_v53 }
 0x80d   :  { %4019 = vmatprep.subr.mxu0 %v3724_v51 }
 0x80e   :  { %4020 = vmatpush3.msra.mxu0 %v3724_v51  ;;  %v3729_v51 = vld [vmem:[%s4519_s27 + $0x8] sm:$0xff] }
 0x80f   :  { %4021 = vmatprep.subr.mxu0 %v3723_v35 }
 0x810   :  { %4022 = vmatpush3.msra.mxu0 %v3723_v35 }
 0x811   :  { %4023 = vmatprep.subr.mxu0 %v3722_v60 }
 0x812   :  { %4024 = vmatpush3.msra.mxu0 %v3722_v60 }
 0x813   :  { %4025 = vmatprep.subr.mxu0 %v3721_v8 }
 0x814   :  { %4026 = vmatpush3.msra.mxu0 %v3721_v8 }
 0x815   :  { %4027 = vmatprep.subr.mxu0 %v3720_v14 }
 0x816   :  { %4028 = vmatpush3.msra.mxu0 %v3720_v14 }
 0x817   :  { %4029 = vmatprep.subr.mxu0 %v3719_v58 }
 0x818   :  { %4030 = vmatpush3.msra.mxu0 %v3719_v58  ;;  %v3734_v58 = vld [vmem:[%s4509_s12 + $0x8] sm:$0xff]  ;;  %s4430_s12 = smov [#allocation3]  }
 0x819   :  { %s3624_s27 = sshll.u32 %s4430_s12, 4  ;;  %s3625_s27 = int_to_ptr.vmem [resolvable:$true] %s3624_s27 }
 0x81a   :  { %p4363_p1 = scmp.lt.s32.totalorder %s3625_s27, %s3625_s27 }
 0x8c1   :  { %v3989_v42 = vpop.f32.mrf.mxu0 }
 0x8c2   :  { %v1970_v33 = vadd.f32 %v3989_v42, %v3701_v31 }
 0x8c3   :  { %v1964_v55 = vpop.f32.mrf.mxu0 }
 0x8c4   :  { %v1965_v26 = vadd.f32 %v3701_v31, %v1964_v55  ;;  %4001 = vmatprep.subr.mxu1 %v1970_v33  ;;  %v2232_v54 = vmul.f32 %v2230_v23, %v1970_v33 }
 0x8c5   :  { %4002 = vmatpush3.msra.mxu1 %v1970_v33 }
 0x8c6   :  { %4003 = vmatprep.subr.mxu1 %v1965_v26  ;;  %v2231_v43 = vmul.f32 %v2230_v23, %v1965_v26 }
 0x8c7   :  { %4004 = vmatpush3.msra.mxu1 %v1965_v26 }
 0x8c8   :  { %4006 = vmatmul.mubr.msk.f32.vlgmr.msra.gmra.mxu1 %vm700_vm10, %v4355_v57  ;;  %4008 = vmatprep.subr.mxu1 %v1970_v33 }
 0x8c9   :  { %4009 = vmatpush3.msra.mxu1 %v1970_v33  ;;  %4012 = vmatprep.mubr.msk.f32.mxu1 %vm700_vm10, %v4356_v49  ;;  %v5139_v35 = vpop.f32.mrf.mxu0 }
 0x8ca   :  { %4010 = vmatprep.subr.mxu1 %v1965_v26 }
 0x8cb   :  { %4011 = vmatpush3.msra.mxu1 %v1965_v26  ;;  %v5141_v60 = vpop.f32.mrf.mxu0 }
 0x8cc   :  { %4013 = vmatmul.mubr.msk.f32.vlgmr.msra.gmra.mxu1 %vm700_vm10, %v4357_v59  ;;  %4034 = vmatprep.subr.mxu1 %v3729_v51 }
 0x8cd   :  { %4035 = vmatpush3.msra.mxu1 %v3729_v51 }
 0x8ce   :  { %4039 = vmatprep.subr.mxu1 %v4412_v45 }
 0x988   :  { %v4007_v5 = vpop.f32.mrf.mxu1 }
 0x989   :  { %v2224_v48 = vmul.f32 %v4007_v5, %v2222_v21  ;;  %v3738_v5 = vld [vmem:[%s5504_s0 + $0x8] sm:$0xff] }
 0x98a   :  { %v2127_v37 = vpop.f32.mrf.mxu1 }
 0x98b   :  { %v2223_v52 = vmul.f32 %v2222_v21, %v2127_v37 }
 0x98c   :  { %v4014_v25 = vpop.f32.mrf.mxu1 }
 0x98d   :  { %v2218_v27 = vmul.f32 %v4014_v25, %v2216_v61 }
 0x98e   :  { %v2202_v44 = vpop.f32.mrf.mxu1 }
 0x98f   :  { %v2226_v29 = vadd.f32 %v2224_v48, %v2218_v27  ;;  %v2217_v56 = vmul.f32 %v2216_v61, %v2202_v44 }
 0x991   :  { %v2234_v46 = vadd.f32 %v2232_v54, %v2226_v29  ;;  %v2225_v40 = vadd.f32 %v2223_v52, %v2217_v56 }
 0x993   :  { %v2244_v47 = vadd.f32 %v3718_v11, %v2234_v46  ;;  %v2233_v38 = vadd.f32 %v2231_v43, %v2225_v40 }
 0x995   :  { %v2246_v10 = vsub.f32 0.0, %v2244_v47  ;;  %v2243_v15 = vadd.f32 %v3718_v11, %v2233_v38 }
 0x997   :  { %v2249_v39 = vmul.f32 1.442695, %v2246_v10  ;;  %v2245_v31 = vsub.f32 0.0, %v2243_v15 }
 0x999   :  { %4294 = vpow2.f32 %v2249_v39  ;;  %v2247_v42 = vmul.f32 1.442695, %v2245_v31 }
 0x99b   :  { %4296 = vpow2.f32 %v2247_v42 }
 0x9a6   :  { %v4295_v55 = vpop.eup %4294 }
 0x9a7   :  { %v2252_v57 = vadd.f32 1.0, %v4295_v55 }
 0x9a8   :  { %v4297_v49 = vpop.eup %4296 }
 0x9a9   :  { %v2251_v59 = vadd.f32 1.0, %v4297_v49  ;;  %4298 = vrcp.f32 %v2252_v57  ;;  %v5510_v49 = vmov 7  }
 0x9ab   :  { %4300 = vrcp.f32 %v2251_v59  ;;  %v5511_v59 = vmov 0  }
 0x9b6   :  { %v4299_v33 = vpop.eup %4298 }
 0x9b7   :  { %v5131_v26 = vmul.f32 %v4299_v33, %v2244_v47 }
 0x9b8   :  { %v4301_v22 = vpop.eup %4300 }
 0x9b9   :  { %v5129_v53 = vmul.f32 %v4301_v22, %v2243_v15 }
 0x9bb   :  { %4031 = vmatprep.mubr.msk.f32.mxu0 %vm917_vm11, %v5129_v53 }
 0x9bc   :  { %4032 = vmatmul.mubr.msk.f32.vlgmr.msra.gmra.mxu0 %vm917_vm11, %v5131_v26 }
 0xa7c   :  { %v4033_v8 = vpop.f32.mrf.mxu0 }
 0xa7e   :  { %v2340_v14 = vpop.f32.mrf.mxu0 }
 0xa7f   :  { %4036 = vmatprep.mubr.msk.f32.mxu1 %vm1007_vm12, %v2340_v14  ;;  %v3748_v14 = vld [vmem:[%s5507_s13 + $0x68] sm:$0xff] }
 0xa80   :  { %4037 = vmatmul.mubr.msk.f32.vlgmr.msra.gmra.mxu1 %vm1007_vm12, %v4033_v8 }
 0xa81   :  { %4040 = vmatpush3.xpose.msk.msra.mxu1 %vm917_vm11, %v5131_v26  ;;  %4043 = vmatprep.mubr.msk.f32.mxu1 %vm4413_vm13, %v4412_v45 }
 0xa82   :  { %4041 = vmatprep.subr.mxu1 %v4412_v45 }
 0xa85   :  { %4042 = vmatpush3.xpose.msk.msra.mxu1 %vm917_vm11, %v5129_v53 }
 0xa86   :  { %4046 = vmatprep.subr.mxu1 %v4412_v45 }
 0xa88   :  { %4044 = vmatmul.mubr.msk.f32.vlgmr.msra.gmra.mxu1 %vm917_vm11, %v3734_v58 }
 0xa89   :  { %4047 = vmatpush3.xpose.msk.msra.mxu1 %vm917_vm11, %v5131_v26  ;;  %4050 = vmatprep.mubr.msk.f32.mxu1 %vm4413_vm13, %v4412_v45 }
 0xa8a   :  { %4048 = vmatprep.subr.mxu1 %v4412_v45 }
 0xa8d   :  { %4049 = vmatpush3.xpose.msk.msra.mxu1 %vm917_vm11, %v5129_v53 }
 0xa8e   :  { %4072 = vmatprep.subr.mxu1 %v4412_v45 }
 0xa90   :  { %4051 = vmatmul.mubr.msk.f32.vlgmr.msra.gmra.mxu1 %vm917_vm11, %v3738_v5  ;;  %v3747_v5 = vld [vmem:[%s5507_s13 + $0x60] sm:$0xff] }
 0xa91   :  { %4076 = vmatprep.mubr.msk.f32.mxu1 %vm4413_vm13, %v4412_v45 }
 0xb40   :  { %v4038_v21 = vpop.f32.mrf.mxu1 }
 0xb41   :  { %v2437_v61 = vadd.f32 %v4038_v21, %v3731_v41 }
 0xb42   :  { %v2431_v37 = vpop.f32.mrf.mxu1 }
 0xb43   :  { %v2443_v23 = vmin.f32 %v2437_v61, 20.0  ;;  %v2432_v25 = vadd.f32 %v3731_v41, %v2431_v37  ;;  %vm2441_vm2 = vcmp.gt.f32.partialorder %v2437_v61, 20.0 }
 0xb45   :  { %v2446_v48 = vmul.f32 1.442695, %v2443_v23  ;;  %v2442_v27 = vmin.f32 %v2432_v25, 20.0  ;;  %vm2440_vm1 = vcmp.gt.f32.partialorder %v2432_v25, 20.0 }
 0xb47   :  { %v2444_v44 = vmul.f32 1.442695, %v2442_v27  ;;  %4302 = vpow2.f32 %v2446_v48 }
 0xb48   :  { %v5168_v52 = vpop.f32.mrf.mxu1 }
 0xb49   :  { %4304 = vpow2.f32 %v2444_v44  ;;  %2852 = vperm.xlu1 %4186, %v5168_v52   ;;  %2612 = vperm.xlu0 %4185, %v5168_v52   ;;  %v3745_v44 = vld [vmem:[%s5507_s13 + $0x50] sm:$0xff] }
 0xb4a   :  { %v4045_v29 = vpop.f32.mrf.mxu1 }
 0xb4d   :  { %4187 = vset.pattern.permute.xlu1 %v4416_v63  ;;  %4194 = vset.pattern.permute.xlu0 %v4417_v0 }
 0xb4e   :  { %2635 = vperm.xlu1 %4187, %v5168_v52   ;;  %2967 = vperm.xlu0 %4194, %v5168_v52  }
 0xb50   :  { %v5176_v54 = vpop.f32.mrf.mxu1 }
 0xb52   :  { %4188 = vset.pattern.permute.xlu1 %v4418_v2  ;;  %4197 = vset.pattern.permute.xlu0 %v4419_v7  ;;  %v4052_v56 = vpop.f32.mrf.mxu1 }
 0xb53   :  { %2874 = vperm.xlu1 %4188, %v5168_v52   ;;  %2790 = vperm.xlu0 %4197, %v5168_v52   ;;  %v3744_v56 = vld [vmem:[%s5507_s13 + $0x48] sm:$0xff] }
 0xb54   :  { %v4303_v11 = vpop.eup %4302 }
 0xb55   :  { %v2449_v43 = vadd.f32 1.0, %v4303_v11 }
 0xb56   :  { %v4305_v46 = vpop.eup %4304 }
 0xb57   :  { %4189 = vset.pattern.permute.xlu1 %v4420_v12  ;;  %4200 = vset.pattern.permute.xlu0 %v4421_v13  ;;  %v2448_v40 = vadd.f32 1.0, %v4305_v46 }
 0xb58   :  { %2666 = vperm.xlu1 %4189, %v5168_v52   ;;  %3060 = vperm.xlu0 %4200, %v5168_v52  }
 0xb59   :  { %4306 = vlog2.f32 %v2448_v40 }
 0xb5a   :  { %4308 = vlog2.f32 %v2449_v43 }
 0xb5c   :  { %4190 = vset.pattern.permute.xlu1 %v4422_v16  ;;  %4203 = vset.pattern.permute.xlu0 %v4420_v12 }
 0xb5d   :  { %2905 = vperm.xlu1 %4190, %v5168_v52   ;;  %2684 = vperm.xlu0 %4203, %v5176_v54  }
 0xb61   :  { %4191 = vset.pattern.permute.xlu1 %v4423_v17  ;;  %4206 = vset.pattern.permute.xlu0 %v4424_v18 }
 0xb62   :  { %2697 = vperm.xlu1 %4191, %v5168_v52   ;;  %2777 = vperm.xlu0 %4206, %v5176_v54  }
 0xb66   :  { %4192 = vset.pattern.permute.xlu1 %v4425_v19  ;;  %4209 = vset.pattern.permute.xlu0 %v4414_v50  ;;  %v4307_v12 = vpop.eup %4306 }
 0xb67   :  { %2936 = vperm.xlu1 %4192, %v5168_v52   ;;  %2861 = vperm.xlu0 %4209, %v5176_v54   ;;  %v4309_v47 = vpop.eup %4308  ;;  %v2451_v38 = vmul.f32 0.6931472, %v4307_v12 }
 0xb68   :  { %v2453_v10 = vmul.f32 0.6931472, %v4309_v47 }
 0xb69   :  { %v5202_v50 = vsel %vm2440_vm1, %v2432_v25, %v2451_v38 }
 0xb6a   :  { %v5206_v15 = vsel %vm2441_vm2, %v2437_v61, %v2453_v10  ;;  %v2832_v39 = vrot.slane %v5202_v50, %v4827_v28  ;;  %v5272_v22 = vmul.f32 %v5202_v50, %v5129_v53  ;;  %v2708_v21 = vrot.slane %v5202_v50, %v4909_v62  ;;  %v3746_v61 = vld [vmem:[%s5507_s13 + $0x58] sm:$0xff] }
 0xb6b   :  { %4193 = vset.pattern.permute.xlu1 %v4426_v24  ;;  %4212 = vset.pattern.permute.xlu0 %v4425_v19  ;;  %v2801_v19 = vrot.slane %v5202_v50, %v4838_v32  ;;  %v3071_v31 = vrot.slane %v5206_v15, %v4827_v28  ;;  %v2916_v33 = vrot.slane %v5206_v15, %v4741_v6 }
 0xb6c   :  { %2728 = vperm.xlu1 %4193, %v5168_v52   ;;  %2954 = vperm.xlu0 %4212, %v5176_v54   ;;  %v2618_v53 = vrot.slane %v5272_v22, %v4736_v4  ;;  %v2947_v37 = vrot.slane %v5206_v15, %v4909_v62  ;;  %v2641_v27 = vrot.slane %v5272_v22, %v4733_v3 }
 0xb6d   :  { %v5295_v46 = vmul.f32 %v5206_v15, %v5131_v26  ;;  %v2796_v40 = vrot.slane %v5272_v22, %v4838_v32  ;;  %v2739_v12 = vrot.slane %v5202_v50, %v4928_v34 }
 0xb70   :  { %4195 = vset.pattern.permute.xlu1 %v4424_v18  ;;  %4215 = vset.pattern.permute.xlu0 %v4427_v30  ;;  %v5218_v18 = vld [vmem:[%s5506_s9 + $0x8] sm:$0xff] }
 0xb71   :  { %2759 = vperm.xlu1 %4195, %v5168_v52   ;;  %3047 = vperm.xlu0 %4215, %v5176_v54   ;;  %v5223_v42 = vmul.f32 %v5218_v18, %v2801_v19  ;;  %v5226_v55 = vmul.f32 %v5218_v18, %v2832_v39  ;;  %v5229_v57 = vmul.f32 %v5218_v18, %v3071_v31  ;;  %v3743_v19 = vld [vmem:[%s5507_s13 + $0x40] sm:$0xff] }
 0xb72   :  { %v2917_v41 = vmul.f32 %v5218_v18, %v2916_v33  ;;  %v2948_v43 = vmul.f32 %v5218_v18, %v2947_v37  ;;  %v2978_v39 = vrot.slane %v5206_v15, %v4928_v34 }
 0xb75   :  { %4196 = vset.pattern.permute.xlu1 %v4428_v36  ;;  %4217 = vset.pattern.permute.xlu0 %v4421_v13 }
 0xb76   :  { %2998 = vperm.xlu1 %4196, %v5168_v52  }
 0xb7a   :  { %4198 = vset.pattern.permute.xlu1 %v4427_v30 }
 0xb7b   :  { %3029 = vperm.xlu1 %4198, %v5168_v52  }
 0xb7f   :  { %4199 = vset.pattern.permute.xlu1 %v5510_v49 }
 0xb80   :  { %2821 = vperm.xlu1 %4199, %v5168_v52   ;;  %v2918_v52 = vmul.f32 1.442695, %v2917_v41 }
 0xb84   :  { %4201 = vset.pattern.permute.xlu1 %v5511_v59  ;;  %v2858_v59 = vrot.slane %v5295_v46, %v4736_v4 }
 0xb85   :  { %2622 = vperm.xlu1 %4201, %v5176_v54  }
 0xb89   :  { %4202 = vset.pattern.permute.xlu1 %v4416_v63  ;;  %v2646_v63 = vrot.slane %v5202_v50, %v4733_v3 }
 0xb8a   :  { %2653 = vperm.xlu1 %4202, %v5176_v54  }
 0xb8e   :  { %4204 = vset.pattern.permute.xlu1 %v4423_v17 }
 0xb8f   :  { %2715 = vperm.xlu1 %4204, %v5176_v54  }
 0xb93   :  { %4205 = vset.pattern.permute.xlu1 %v4426_v24 }
 0xb94   :  { %2746 = vperm.xlu1 %4205, %v5176_v54  }
 0xb98   :  { %4207 = vset.pattern.permute.xlu1 %v4419_v7 }
 0xb99   :  { %2808 = vperm.xlu1 %4207, %v5176_v54  }
 0xb9d   :  { %4208 = vset.pattern.permute.xlu1 %v5510_v49 }
 0xb9e   :  { %2839 = vperm.xlu1 %4208, %v5176_v54  }
 0xba2   :  { %4210 = vset.pattern.permute.xlu1 %v4418_v2  ;;  %v2647_v2 = vmul.f32 %v5218_v18, %v2646_v63  ;;  %v2949_v63 = vmul.f32 1.442695, %v2948_v43 }
 0xba3   :  { %2892 = vperm.xlu1 %4210, %v5176_v54  }
 0xba4   :  { %v2648_v7 = vmul.f32 1.442695, %v2647_v2  ;;  %v2770_v2 = vrot.slane %v5202_v50, %v4948_v1 }
 0xba6   :  { %4310 = vpow2.f32 %v2648_v7  ;;  %v3066_v7 = vrot.slane %v5295_v46, %v4827_v28  ;;  %v2771_v41 = vmul.f32 %v5218_v18, %v2770_v2 }
 0xba7   :  { %4211 = vset.pattern.permute.xlu1 %v4422_v16  ;;  %v2885_v16 = vrot.slane %v5206_v15, %v4733_v3 }
 0xba8   :  { %2923 = vperm.xlu1 %4211, %v5176_v54  }
 0xba9   :  { %v2886_v24 = vmul.f32 %v5218_v18, %v2885_v16  ;;  %v2740_v16 = vmul.f32 %v5218_v18, %v2739_v12 }
 0xbab   :  { %v2887_v58 = vmul.f32 1.442695, %v2886_v24 }
 0xbac   :  { %4213 = vset.pattern.permute.xlu1 %v4417_v0  ;;  %v2677_v0 = vrot.slane %v5202_v50, %v4741_v6 }
 0xbad   :  { %2985 = vperm.xlu1 %4213, %v5176_v54  }
 0xbae   :  { %v2678_v17 = vmul.f32 %v5218_v18, %v2677_v0  ;;  %v2672_v0 = vrot.slane %v5272_v22, %v4741_v6 }
 0xbb0   :  { %v2679_v30 = vmul.f32 1.442695, %v2678_v17 }
 0xbb1   :  { %4214 = vset.pattern.permute.xlu1 %v4428_v36  ;;  %v3749_v36 = vld [vmem:[%s5507_s13 + $0x70] sm:$0xff] }
 0xbb2   :  { %3016 = vperm.xlu1 %4214, %v5176_v54   ;;  %4312 = vpow2.f32 %v2679_v30  ;;  %v2880_v30 = vrot.slane %v5295_v46, %v4733_v3 }
 0xbb3   :  { %4314 = vpow2.f32 %v2887_v58  ;;  %v4311_v11 = vpop.eup %4310 }
 0xbb4   :  { %4316 = vpow2.f32 %v2918_v52  ;;  %v3040_v52 = vrot.slane %v5206_v15, %v4838_v32 }
 0xbb6   :  { %4216 = vset.pattern.permute.xlu1 %v4421_v13  ;;  %v3750_v13 = vld [vmem:[%s5507_s13 + $0x78] sm:$0xff] }
 0xbb7   :  { %3078 = vperm.xlu1 %4216, %v5176_v54   ;;  %4053 = vmatprep.subr.mxu0 %v3750_v13  ;;  %v2709_v54 = vmul.f32 %v5218_v18, %v2708_v21  ;;  %v3009_v21 = vrot.slane %v5206_v15, %v4948_v1  ;;  %v3041_v15 = vmul.f32 %v5218_v18, %v3040_v52  ;;  %v3073_v52 = vmul.f32 1.442695, %v5229_v57 }
 0xbb8   :  { %4054 = vmatpush3.msra.mxu0 %v3750_v13 }
 0xbb9   :  { %4055 = vmatprep.subr.mxu0 %v3749_v36  ;;  %v2710_v49 = vmul.f32 1.442695, %v2709_v54  ;;  %v3010_v43 = vmul.f32 %v5218_v18, %v3009_v21 }
 0xbba   :  { %4056 = vmatpush3.msra.mxu0 %v3749_v36  ;;  %v2979_v36 = vmul.f32 %v5218_v18, %v2978_v39  ;;  %v2803_v39 = vmul.f32 1.442695, %v5223_v42 }
 0xbbb   :  { %4057 = vmatprep.subr.mxu0 %v3748_v14  ;;  %4318 = vpow2.f32 %v2710_v49 }
 0xbbc   :  { %4058 = vmatpush3.msra.mxu0 %v3748_v14  ;;  %4320 = vpow2.f32 %v2949_v63  ;;  %v2980_v37 = vmul.f32 1.442695, %v2979_v36  ;;  %v3011_v63 = vmul.f32 1.442695, %v3010_v43  ;;  %v2834_v36 = vmul.f32 1.442695, %v5226_v55 }
 0xbbd   :  { %4059 = vmatprep.subr.mxu0 %v3747_v5 }
 0xbbe   :  { %4060 = vmatpush3.msra.mxu0 %v3747_v5 }
 0xbbf   :  { %4061 = vmatprep.subr.mxu0 %v3746_v61  ;;  %v4313_v17 = vpop.eup %4312 }
 0xbc0   :  { %4062 = vmatpush3.msra.mxu0 %v3746_v61  ;;  %v4315_v58 = vpop.eup %4314 }
 0xbc1   :  { %4063 = vmatprep.subr.mxu0 %v3745_v44 }
 0xbc2   :  { %4064 = vmatpush3.msra.mxu0 %v3745_v44 }
 0xbc3   :  { %4065 = vmatprep.subr.mxu0 %v3744_v56 }
 0xbc4   :  { %v2853_v51 = vpop.permute.xlu1 %2852  ;;  %v2613_v8 = vpop.permute.xlu0 %2612  ;;  %4066 = vmatpush3.msra.mxu0 %v3744_v56 }
 0xbc5   :  { %v5286_v48 = vmul.f32 %v2618_v53, %v2613_v8  ;;  %4067 = vmatprep.subr.mxu0 %v3743_v19  ;;  %v2859_v24 = vmul.f32 %v2858_v59, %v2853_v51  ;;  %v2741_v51 = vmul.f32 1.442695, %v2740_v16 }
 0xbc6   :  { %4068 = vmatpush3.msra.mxu0 %v3743_v19 }
 0xbc7   :  { %v2650_v47 = vmul.f32 %v4311_v11, %v5286_v48  ;;  %4090 = vmatprep.subr.mxu0 %v4412_v45  ;;  %v2889_v3 = vmul.f32 %v4315_v58, %v2859_v24  ;;  %4322 = vpow2.f32 %v2741_v51  ;;  %v4317_v11 = vpop.eup %4316 }
 0xbc8   :  { %4324 = vpow2.f32 %v2980_v37  ;;  %v4319_v2 = vpop.eup %4318 }
 0xbc9   :  { %v2636_v23 = vpop.permute.xlu1 %2635  ;;  %v5284_v25 = vpop.permute.xlu0 %2967 }
 0xbca   :  { %v2642_v29 = vmul.f32 %v2641_v27, %v2636_v23  ;;  %v2911_v27 = vrot.slane %v5295_v46, %v4741_v6 }
 0xbcc   :  { %v5308_v31 = vadd.f32 %v2650_v47, %v2642_v29  ;;  %v2772_v29 = vmul.f32 1.442695, %v2771_v41 }
 0xbce   :  { %v2875_v38 = vpop.permute.xlu1 %2874  ;;  %v2791_v10 = vpop.permute.xlu0 %2790  ;;  %v2681_v8 = vmul.f32 %v4313_v17, %v5308_v31  ;;  %4326 = vpow2.f32 %v2772_v29 }
 0xbcf   :  { %v5306_v26 = vmul.f32 %v2796_v40, %v2791_v10  ;;  %v2881_v14 = vmul.f32 %v2880_v30, %v2875_v38  ;;  %v2703_v10 = vrot.slane %v5272_v22, %v4909_v62  ;;  %4328 = vpow2.f32 %v2803_v39 }
 0xbd0   :  { %4330 = vpow2.f32 %v3011_v63 }
 0xbd1   :  { %v5329_v23 = vadd.f32 %v2889_v3, %v2881_v14 }
 0xbd3   :  { %v2667_v4 = vpop.permute.xlu1 %2666  ;;  %v3061_v13 = vpop.permute.xlu0 %3060  ;;  %v2920_v12 = vmul.f32 %v4317_v11, %v5329_v23 }
 0xbd4   :  { %v2673_v50 = vmul.f32 %v2672_v0, %v2667_v4  ;;  %v5323_v33 = vmul.f32 %v3066_v7, %v3061_v13  ;;  %v2942_v0 = vrot.slane %v5295_v46, %v4909_v62  ;;  %v4321_v7 = vpop.eup %4320  ;;  %v3042_v13 = vmul.f32 1.442695, %v3041_v15 }
 0xbd5   :  { %v4323_v3 = vpop.eup %4322 }
 0xbd6   :  { %v2682_v5 = vadd.f32 %v2681_v8, %v2673_v50  ;;  %4332 = vpow2.f32 %v3042_v13 }
 0xbd7   :  { %4334 = vpow2.f32 %v2834_v36 }
 0xbd8   :  { %v2906_v53 = vpop.permute.xlu1 %2905  ;;  %v2685_v61 = vpop.permute.xlu0 %2684  ;;  %v2712_v17 = vmul.f32 %v4319_v2, %v2682_v5  ;;  %4336 = vpow2.f32 %v3073_v52 }
 0xbd9   :  { %v2687_v44 = vmul.f32 %v2685_v61, %v2682_v5  ;;  %v2912_v54 = vmul.f32 %v2911_v27, %v2906_v53  ;;  %v2734_v5 = vrot.slane %v5272_v22, %v4928_v34  ;;  %v4325_v27 = vpop.eup %4324 }
 0xbdb   :  { %v2688_v56 = vsel %vm917_vm11, %v2687_v44, 0.0  ;;  %v5343_v19 = vadd.f32 %v2920_v12, %v2912_v54  ;;  %v2973_v44 = vrot.slane %v5295_v46, %v4928_v34  ;;  %v2765_v12 = vrot.slane %v5272_v22, %v4948_v1 }
 0xbdc   :  { %v2689_v40 = vrot.slane %v2688_v56, 4 }
 0xbdd   :  { %v2698_v47 = vpop.permute.xlu1 %2697  ;;  %v5338_v38 = vpop.permute.xlu0 %2777  ;;  %v2951_v8 = vmul.f32 %v4321_v7, %v5343_v19  ;;  %v3004_v7 = vrot.slane %v5295_v46, %v4948_v1 }
 0xbde   :  { %v2690_v6 = vadd.f32 %v2689_v40, %v2688_v56  ;;  %v2704_v59 = vmul.f32 %v2703_v10, %v2698_v47  ;;  %v4327_v40 = vpop.eup %4326  ;;  %v2974_v47 = vmul.f32 %v2973_v44, %v5284_v25 }
 0xbdf   :  { %v4329_v2 = vpop.eup %4328 }
 0xbe0   :  { %v2691_v49 = vrot.slane %v2690_v6, 2  ;;  %v5350_v14 = vadd.f32 %v2712_v17, %v2704_v59 }
 0xbe2   :  { %v2692_v16 = vadd.f32 %v2691_v49, %v2690_v6  ;;  %v2937_v30 = vpop.permute.xlu1 %2936  ;;  %v2862_v4 = vpop.permute.xlu0 %2861  ;;  %v2743_v61 = vmul.f32 %v4323_v3, %v5350_v14 }
 0xbe3   :  { %v2943_v18 = vmul.f32 %v2942_v0, %v2937_v30  ;;  %v2864_v50 = vmul.f32 %v2862_v4, %v2859_v24 }
 0xbe4   :  { %v2693_v42 = vrot.slane %v2692_v16, 1 }
 0xbe5   :  { %v2865_v58 = vsel %vm917_vm11, %v2864_v50, 0.0  ;;  %v2952_v62 = vadd.f32 %v2951_v8, %v2943_v18 }
 0xbe6   :  { %v2694_v51 = vadd.f32 %v2693_v42, %v2692_v16  ;;  %v2866_v41 = vrot.slane %v2865_v58, 4  ;;  %v4331_v16 = vpop.eup %4330 }
 0xbe7   :  { %v2729_v55 = vpop.permute.xlu1 %2728  ;;  %v2955_v21 = vpop.permute.xlu0 %2954  ;;  %v2982_v56 = vmul.f32 %v4325_v27, %v2952_v62  ;;  %v2827_v27 = vrot.slane %v5272_v22, %v4827_v28 }
 0xbe8   :  { %2695 = vst.msk [vmem:[#allocation2 + $0x2] sm:$0x1] %vm1279_vm0, %v2694_v51  ;;  %v2867_v24 = vadd.f32 %v2866_v41, %v2865_v58  ;;  %v2735_v53 = vmul.f32 %v2734_v5, %v2729_v55  ;;  %v2957_v37 = vmul.f32 %v2955_v21, %v2952_v62  ;;  %v4333_v18 = vpop.eup %4332 }
 0xbe9   :  { %v5367_v49 = vadd.f32 %v2982_v56, %v2974_v47  ;;  %v4335_v58 = vpop.eup %4334 }
 0xbea   :  { %v2868_v29 = vrot.slane %v2867_v24, 2  ;;  %v5360_v54 = vadd.f32 %v2743_v61, %v2735_v53  ;;  %v2958_v11 = vsel %vm917_vm11, %v2957_v37, 0.0  ;;  %v4337_v61 = vpop.eup %4336 }
 0xbeb   :  { %v2959_v43 = vrot.slane %v2958_v11, 4  ;;  %v3013_v36 = vmul.f32 %v4331_v16, %v5367_v49 }
 0xbec   :  { %v2869_v6 = vadd.f32 %v2868_v29, %v2867_v24  ;;  %v2760_v10 = vpop.permute.xlu1 %2759  ;;  %v2774_v15 = vmul.f32 %v4327_v40, %v5360_v54  ;;  %v3048_v24 = vpop.permute.xlu0 %3047  ;;  %v3709_v40 = vld [vmem:[%s5508_s28 + $0x1] ss:$0 sm:$0xff] }
 0xbed   :  { %v2960_v34 = vadd.f32 %v2959_v43, %v2958_v11  ;;  %v2766_v39 = vmul.f32 %v2765_v12, %v2760_v10 }
 0xbee   :  { %v2870_v57 = vrot.slane %v2869_v6, 1 }
 0xbef   :  { %v2961_v59 = vrot.slane %v2960_v34, 2  ;;  %v2775_v63 = vadd.f32 %v2774_v15, %v2766_v39 }
 0xbf0   :  { %v2871_v0 = vadd.f32 %v2870_v57, %v2869_v6  ;;  %v5393_v6 = vadd.f32 %v3709_v40, %v5141_v60 }
 0xbf1   :  { %v2962_v17 = vadd.f32 %v2961_v59, %v2960_v34  ;;  %v2780_v25 = vmul.f32 %v5338_v38, %v2775_v63  ;;  %v2999_v30 = vpop.permute.xlu1 %2998  ;;  %v2805_v4 = vmul.f32 %v4329_v2, %v2775_v63  ;;  %v3035_v38 = vrot.slane %v5295_v46, %v4838_v32 }
 0xbf2   :  { %2872 = vst.msk [vmem:[#allocation2 + $0x8] sm:$0x1] %vm1279_vm0, %v2871_v0  ;;  %v3005_v13 = vmul.f32 %v3004_v7, %v2999_v30  ;;  %v3092_v34 = vsub.f32 0.0, %v5393_v6 }
 0xbf3   :  { %v2963_v50 = vrot.slane %v2962_v17, 1  ;;  %v2781_v8 = vsel %vm917_vm11, %v2780_v25, 0.0  ;;  %v5376_v42 = vadd.f32 %v2805_v4, %v5306_v26 }
 0xbf4   :  { %v2782_v1 = vrot.slane %v2781_v8, 4  ;;  %v5378_v62 = vadd.f32 %v3013_v36, %v3005_v13  ;;  %v3094_v60 = vmul.f32 1.442695, %v3092_v34 }
 0xbf5   :  { %v2964_v51 = vadd.f32 %v2963_v50, %v2962_v17  ;;  %v2836_v41 = vmul.f32 %v4335_v58, %v5376_v42 }
 0xbf6   :  { %v2783_v5 = vadd.f32 %v2782_v1, %v2781_v8  ;;  %v3030_v3 = vpop.permute.xlu1 %3029  ;;  %v3044_v55 = vmul.f32 %v4333_v18, %v5378_v62  ;;  %4338 = vpow2.f32 %v3094_v60 }
 0xbf7   :  { %2965 = vst.msk [vmem:[#allocation2 + $0xb] sm:$0x1] %vm1279_vm0, %v2964_v51  ;;  %v3036_v21 = vmul.f32 %v3035_v38, %v3030_v3 }
 0xbf8   :  { %v2784_v26 = vrot.slane %v2783_v5, 2 }
 0xbf9   :  { %v3045_v53 = vadd.f32 %v3044_v55, %v3036_v21 }
 0xbfa   :  { %v2785_v37 = vadd.f32 %v2784_v26, %v2783_v5 }
 0xbfb   :  { %v3050_v44 = vmul.f32 %v3048_v24, %v3045_v53  ;;  %v2822_v32 = vpop.permute.xlu1 %2821  ;;  %v3075_v46 = vmul.f32 %v4337_v61, %v3045_v53 }
 0xbfc   :  { %v2786_v52 = vrot.slane %v2785_v37, 1  ;;  %v2828_v29 = vmul.f32 %v2827_v27, %v2822_v32 }
 0xbfd   :  { %v3051_v56 = vsel %vm917_vm11, %v3050_v44, 0.0  ;;  %v5389_v11 = vadd.f32 %v3075_v46, %v5323_v33 }
 0xbfe   :  { %v2787_v43 = vadd.f32 %v2786_v52, %v2785_v37  ;;  %v3052_v12 = vrot.slane %v3051_v56, 4  ;;  %v2837_v47 = vadd.f32 %v2836_v41, %v2828_v29 }
 0xc00   :  { %2788 = vst.msk [vmem:[#allocation2 + $0x5] sm:$0x1] %vm1279_vm0, %v2787_v43  ;;  %v3053_v28 = vadd.f32 %v3052_v12, %v3051_v56  ;;  %v2623_v22 = vpop.permute.xlu1 %2622 }
 0xc01   :  { %v2625_v10 = vmul.f32 %v2623_v22, %v5286_v48 }
 0xc02   :  { %v3054_v15 = vrot.slane %v3053_v28, 2 }
 0xc03   :  { %v2626_v39 = vsel %vm917_vm11, %v2625_v10, 0.0  ;;  %v4339_v44 = vpop.eup %4338 }
 0xc04   :  { %v3055_v33 = vadd.f32 %v3054_v15, %v3053_v28  ;;  %v2627_v57 = vrot.slane %v2626_v39, 4  ;;  %v3098_v12 = vadd.f32 1.0, %v4339_v44 }
 0xc05   :  { %v2654_v59 = vpop.permute.xlu1 %2653 }
 0xc06   :  { %v3056_v63 = vrot.slane %v3055_v33, 1  ;;  %v2628_v2 = vadd.f32 %v2627_v57, %v2626_v39  ;;  %v2656_v0 = vmul.f32 %v2654_v59, %v5308_v31  ;;  %4340 = vrcp.f32 %v3098_v12 }
 0xc08   :  { %v3057_v7 = vadd.f32 %v3056_v63, %v3055_v33  ;;  %v2629_v16 = vrot.slane %v2628_v2, 2  ;;  %v2657_v17 = vsel %vm917_vm11, %v2656_v0, 0.0 }
 0xc09   :  { %v2658_v25 = vrot.slane %v2657_v17, 4 }
 0xc0a   :  { %3058 = vst.msk [vmem:[#allocation2 + $0xe] sm:$0x1] %vm1279_vm0, %v3057_v7  ;;  %v2630_v48 = vadd.f32 %v2629_v16, %v2628_v2  ;;  %v2716_v30 = vpop.permute.xlu1 %2715 }
 0xc0b   :  { %v2659_v4 = vadd.f32 %v2658_v25, %v2657_v17  ;;  %v2718_v13 = vmul.f32 %v2716_v30, %v5350_v14 }
 0xc0c   :  { %v2631_v36 = vrot.slane %v2630_v48, 1 }
 0xc0d   :  { %v2660_v18 = vrot.slane %v2659_v4, 2  ;;  %v2719_v50 = vsel %vm917_vm11, %v2718_v13, 0.0 }
 0xc0e   :  { %v2632_v8 = vadd.f32 %v2631_v36, %v2630_v48  ;;  %v2720_v31 = vrot.slane %v2719_v50, 4 }
 0xc0f   :  { %v2661_v58 = vadd.f32 %v2660_v18, %v2659_v4  ;;  %v2747_v1 = vpop.permute.xlu1 %2746 }
 0xc10   :  { %2633 = vst.msk [vmem:[#allocation2] sm:$0x1] %vm1279_vm0, %v2632_v8  ;;  %v2721_v51 = vadd.f32 %v2720_v31, %v2719_v50  ;;  %v2749_v38 = vmul.f32 %v2747_v1, %v5360_v54  ;;  %v5411_v54 = vadd.f32 %v5139_v35, %v3709_v40 }
 0xc11   :  { %v2662_v41 = vrot.slane %v2661_v58, 1 }
 0xc12   :  { %v2722_v5 = vrot.slane %v2721_v51, 2  ;;  %v2750_v3 = vsel %vm917_vm11, %v2749_v38, 0.0 }
 0xc13   :  { %v2663_v55 = vadd.f32 %v2662_v41, %v2661_v58  ;;  %v2751_v21 = vrot.slane %v2750_v3, 4  ;;  %v4341_v1 = vpop.eup %4340 }
 0xc14   :  { %v2723_v14 = vadd.f32 %v2722_v5, %v2721_v51  ;;  %v2809_v26 = vpop.permute.xlu1 %2808 }
 0xc15   :  { %2664 = vst.msk [vmem:[#allocation2 + $0x1] sm:$0x1] %vm1279_vm0, %v2663_v55  ;;  %v2752_v24 = vadd.f32 %v2751_v21, %v2750_v3  ;;  %v2811_v53 = vmul.f32 %v2809_v26, %v5376_v42  ;;  %v3093_v42 = vsub.f32 0.0, %v5411_v54  ;;  %v3104_v55 = vmul.f32 %v4341_v1, %v5393_v6  ;;  %v3310_v1 = vld [vmem:[%s5514_s29 + $0x18] sm:$0xff] }
 0xc16   :  { %v2724_v61 = vrot.slane %v2723_v14, 1 }
 0xc17   :  { %v2753_v37 = vrot.slane %v2752_v24, 2  ;;  %v2812_v27 = vsel %vm917_vm11, %v2811_v53, 0.0  ;;  %v3096_v57 = vmul.f32 1.442695, %v3093_v42 }
 0xc18   :  { %v2725_v32 = vadd.f32 %v2724_v61, %v2723_v14  ;;  %v2813_v46 = vrot.slane %v2812_v27, 4 }
 0xc19   :  { %v2754_v52 = vadd.f32 %v2753_v37, %v2752_v24  ;;  %v2840_v29 = vpop.permute.xlu1 %2839  ;;  %4342 = vpow2.f32 %v3096_v57  ;;  %v3752_v57 = vld [vmem:[%s5509_s1 + $0x1] ss:$0 sm:$0xff] }
 0xc1a   :  { %2726 = vst.msk [vmem:[#allocation2 + $0x3] sm:$0x1] %vm1279_vm0, %v2725_v32  ;;  %v2814_v56 = vadd.f32 %v2813_v46, %v2812_v27  ;;  %v2842_v43 = vmul.f32 %v2840_v29, %v2837_v47 }
 0xc1b   :  { %v2755_v28 = vrot.slane %v2754_v52, 1 }
 0xc1c   :  { %v2815_v22 = vrot.slane %v2814_v56, 2  ;;  %v2843_v10 = vsel %vm917_vm11, %v2842_v43, 0.0 }
 0xc1d   :  { %v2756_v15 = vadd.f32 %v2755_v28, %v2754_v52  ;;  %v2844_v34 = vrot.slane %v2843_v10, 4 }
 0xc1e   :  { %v2816_v39 = vadd.f32 %v2815_v22, %v2814_v56  ;;  %v2893_v35 = vpop.permute.xlu1 %2892 }
 0xc1f   :  { %2757 = vst.msk [vmem:[#allocation2 + $0x4] sm:$0x1] %vm1279_vm0, %v2756_v15  ;;  %v2845_v40 = vadd.f32 %v2844_v34, %v2843_v10  ;;  %v2895_v33 = vmul.f32 %v2893_v35, %v5329_v23 }
 0xc20   :  { %v2817_v59 = vrot.slane %v2816_v39, 1 }
 0xc21   :  { %v2846_v47 = vrot.slane %v2845_v40, 2  ;;  %v2896_v63 = vsel %vm917_vm11, %v2895_v33, 0.0 }
 0xc22   :  { %v2818_v2 = vadd.f32 %v2817_v59, %v2816_v39  ;;  %v2897_v0 = vrot.slane %v2896_v63, 4 }
 0xc23   :  { %v2847_v60 = vadd.f32 %v2846_v47, %v2845_v40  ;;  %v2924_v7 = vpop.permute.xlu1 %2923 }
 0xc24   :  { %2819 = vst.msk [vmem:[#allocation2 + $0x6] sm:$0x1] %vm1279_vm0, %v2818_v2  ;;  %v2898_v16 = vadd.f32 %v2897_v0, %v2896_v63  ;;  %v2926_v17 = vmul.f32 %v2924_v7, %v5343_v19 }
 0xc25   :  { %v2848_v25 = vrot.slane %v2847_v60, 1 }
 0xc26   :  { %v2899_v48 = vrot.slane %v2898_v16, 2  ;;  %v2927_v30 = vsel %vm917_vm11, %v2926_v17, 0.0  ;;  %v4343_v24 = vpop.eup %4342 }
 0xc27   :  { %v2849_v23 = vadd.f32 %v2848_v25, %v2847_v60  ;;  %v2928_v4 = vrot.slane %v2927_v30, 4 }
 0xc28   :  { %v2900_v13 = vadd.f32 %v2899_v48, %v2898_v16  ;;  %v2986_v36 = vpop.permute.xlu1 %2985 }
 0xc29   :  { %2850 = vst.msk [vmem:[#allocation2 + $0x7] sm:$0x1] %vm1279_vm0, %v2849_v23  ;;  %v2929_v18 = vadd.f32 %v2928_v4, %v2927_v30  ;;  %v2988_v50 = vmul.f32 %v2986_v36, %v5367_v49 }
 0xc2a   :  { %v2901_v8 = vrot.slane %v2900_v13, 1 }
 0xc2b   :  { %v2930_v31 = vrot.slane %v2929_v18, 2  ;;  %v2989_v58 = vsel %vm917_vm11, %v2988_v50, 0.0 }
 0xc2c   :  { %v2902_v51 = vadd.f32 %v2901_v8, %v2900_v13  ;;  %v2990_v19 = vrot.slane %v2989_v58, 4  ;;  %v3755_v13 = vld [vmem:[%s5512_s17] ss:$0 sm:$0xff] }
 0xc2d   :  { %v2931_v38 = vadd.f32 %v2930_v31, %v2929_v18  ;;  %v3017_v41 = vpop.permute.xlu1 %3016 }
 0xc2e   :  { %2903 = vst.msk [vmem:[#allocation2 + $0x9] sm:$0x1] %vm1279_vm0, %v2902_v51  ;;  %v2991_v5 = vadd.f32 %v2990_v19, %v2989_v58  ;;  %v3019_v3 = vmul.f32 %v3017_v41, %v5378_v62  ;;  %v3099_v62 = vadd.f32 1.0, %v4343_v24  ;;  %v3233_v58 = vld [vmem:[%s5513_s21] sm:$0x3]  ;;  %v3309_v51 = vld [vmem:[%s5514_s29 + $0x10] sm:$0xff] }
 0xc2f   :  { %v2932_v21 = vrot.slane %v2931_v38, 1  ;;  %v3308_v19 = vld [vmem:[%s5514_s29 + $0x8] sm:$0xff] }
 0xc30   :  { %v2992_v14 = vrot.slane %v2991_v5, 2  ;;  %v3020_v49 = vsel %vm917_vm11, %v3019_v3, 0.0  ;;  %v3090_v26 = vld [vmem:[#allocation2] sm:$0xff]  ;;  %4344 = vrcp.f32 %v3099_v62 }
 0xc31   :  { %v2933_v53 = vadd.f32 %v2932_v21, %v2931_v38  ;;  %v3021_v61 = vrot.slane %v3020_v49, 4  ;;  %v3106_v37 = vmul.f32 %v3104_v55, %v3090_v26  ;;  %v3307_v38 = vld [vmem:[%s5514_s29] sm:$0xff] }
 0xc32   :  { %v2993_v27 = vadd.f32 %v2992_v14, %v2991_v5  ;;  %v3079_v44 = vpop.permute.xlu1 %3078  ;;  %v3757_v3 = vld [vmem:[%s5515_s3] ss:$0 sm:$0xff] }
 0xc33   :  { %2934 = vst.msk [vmem:[#allocation2 + $0xa] sm:$0x1] %vm1279_vm0, %v2933_v53  ;;  %v3022_v32 = vadd.f32 %v3021_v61, %v3020_v49  ;;  %v3081_v46 = vmul.f32 %v3079_v44, %v5389_v11  ;;  %4069 = vmatprep.mubr.msk.f32.mxu0 %vm917_vm11, %v3106_v37  ;;  %v3422_v44 = vld [vmem:[%s5516_s8] sm:$0xff] }
 0xc34   :  { %v2994_v6 = vrot.slane %v2993_v27, 1 }
 0xc35   :  { %v3023_v52 = vrot.slane %v3022_v32, 2  ;;  %v3082_v29 = vsel %vm917_vm11, %v3081_v46, 0.0 }
 0xc36   :  { %v2995_v56 = vadd.f32 %v2994_v6, %v2993_v27  ;;  %v3083_v43 = vrot.slane %v3082_v29, 4  ;;  %v3423_v27 = vld [vmem:[%s5516_s8 + $0x8] sm:$0xff] }
 0xc37   :  { %v3024_v12 = vadd.f32 %v3023_v52, %v3022_v32  ;;  %v3759_v52 = vld [vmem:[%s5517_s14] ss:$0 sm:$0xff] }
 0xc38   :  { %2996 = vst.msk [vmem:[#allocation2 + $0xc] sm:$0x1] %vm1279_vm0, %v2995_v56  ;;  %v3084_v28 = vadd.f32 %v3083_v43, %v3082_v29  ;;  %v3760_v56 = vld [vmem:[%s5518_s24] ss:$0 sm:$0xff] }
 0xc39   :  { %v3025_v42 = vrot.slane %v3024_v12, 1 }
 0xc3a   :  { %v3085_v22 = vrot.slane %v3084_v28, 2 }
 0xc3b   :  { %v3026_v10 = vadd.f32 %v3025_v42, %v3024_v12 }
 0xc3c   :  { %v3086_v15 = vadd.f32 %v3085_v22, %v3084_v28  ;;  %v3761_v28 = vld [vmem:[%s5519_s30] ss:$0 sm:$0xff] }
 0xc3d   :  { %3027 = vst.msk [vmem:[#allocation2 + $0xd] sm:$0x1] %vm1279_vm0, %v3026_v10  ;;  %v4345_v39 = vpop.eup %4344 }
 0xc3e   :  { %v3087_v11 = vrot.slane %v3086_v15, 1  ;;  %v3105_v35 = vmul.f32 %v4345_v39, %v5411_v54 }
 0xc40   :  { %v3088_v34 = vadd.f32 %v3087_v11, %v3086_v15 }
 0xc42   :  { %3089 = vst.msk [vmem:[#allocation2 + $0xf] sm:$0x1] %vm1279_vm0, %v3088_v34 }
 0xc49   :  { %v3091_v40 = vld [vmem:[#allocation2 + $0x8] sm:$0xff] }
 0xc4a   :  { %v3107_v33 = vmul.f32 %v3105_v35, %v3091_v40  ;;  %v3535_v40 = vld [vmem:[%s4589_s25] sm:$0xff]  ;;  %s4358_s25 = scalar_lea.vmem %s3625_s27, 32 }
 0xc4b   :  { %p4359_p0 = scmp.ne.s32.totalorder %s3625_s27, %s4358_s25  ;;  %p4364_p2 = scmp.lt.s32.totalorder %s4358_s25, %s4358_s25 }
 0xc4c   :  { %4070 = vmatmul.mubr.msk.f32.vlgmr.msra.gmra.mxu0 %vm917_vm11, %v3107_v33 }
 0xc4d   :  { %4094 = vmatprep.mubr.msk.f32.mxu0 %vm4413_vm13, %v4412_v45  ;;  %4091 = vmatpush3.msra.mxu0 %v3423_v27  ;;  %p4365_p3 = por %p4364_p2, %p4363_p1 }
 0xc4e   :  { %4092 = vmatprep.subr.mxu0 %v4412_v45 }
 0xc4f   :  { %4093 = vmatpush3.msra.mxu0 %v3422_v44  ;;  %p4366_p4 = pnand %p4365_p3, %p4359_p0 }
 0xd0c   :  { %v4071_v59 = vpop.f32.mrf.mxu0 }
 0xd0d   :  { %v3203_v47 = vadd.f32 %v4071_v59, %v3752_v57 }
 0xd0e   :  { %v3197_v63 = vpop.f32.mrf.mxu0 }
 0xd0f   :  { %v3207_v2 = vadd.f32 %v3203_v47, %v5083_v20  ;;  %v3198_v0 = vadd.f32 %v3752_v57, %v3197_v63  ;;  %v3763_v63 = vld [vmem:[%s5520_s6] ss:$0 sm:$0xff] }
 0xd11   :  { %v3206_v60 = vadd.f32 %v3198_v0, %v5086_v9  ;;  %v3209_v7 = vmul.f32 %v3207_v2, %v3207_v2  ;;  %v3764_v0 = vld [vmem:[%s4584_s4] ss:$0 sm:$0xff] }
 0xd13   :  { %v3213_v54 = vsel %vm497_vm9, %v3209_v7, 0.0  ;;  %v3208_v16 = vmul.f32 %v3206_v60, %v3206_v60 }
 0xd14   :  { %3214 = vadd.xlane.f32.xlu1 %v3213_v54  ;;  %v3765_v54 = vld [vmem:[%s4594_s19] ss:$0 sm:$0xff] }
 0xd15   :  { %v3210_v17 = vsel %vm497_vm9, %v3208_v16, 0.0 }
 0xd16   :  { %3211 = vadd.xlane.f32.xlu0 %v3210_v17 }
 0xd9d   :  { %v3215_v25 = vpop.xlane.xlu1 %3214 }
 0xd9e   :  { %v3217_v48 = vmul.f32 0.03125, %v3215_v25 }
 0xd9f   :  { %v3212_v30 = vpop.xlane.xlu0 %3211 }
 0xda0   :  { %v3219_v23 = vadd.f32 1e-05, %v3217_v48  ;;  %v3216_v4 = vmul.f32 0.03125, %v3212_v30 }
 0xda2   :  { %4346 = vrsqrt.f32 %v3219_v23  ;;  %v3218_v20 = vadd.f32 1e-05, %v3216_v4 }
 0xda4   :  { %4348 = vrsqrt.f32 %v3218_v20 }
 0xdaf   :  { %v4347_v9 = vpop.eup %4346 }
 0xdb0   :  { %v3223_v36 = vmul.f32 %v4347_v9, %v3207_v2 }
 0xdb1   :  { %v4349_v18 = vpop.eup %4348 }
 0xdb2   :  { %v3232_v50 = vmul.f32 %v3755_v13, %v3223_v36  ;;  %v3222_v8 = vmul.f32 %v4349_v18, %v3206_v60 }
 0xdb4   :  { %4073 = vmatpush3.msra.mxu1 %v3232_v50  ;;  %v3231_v31 = vmul.f32 %v3755_v13, %v3222_v8 }
 0xdb5   :  { %4074 = vmatprep.subr.mxu1 %v4412_v45 }
 0xdb6   :  { %4075 = vmatpush3.msra.mxu1 %v3231_v31 }
 0xdb7   :  { %4077 = vmatmul.mubr.msk.f32.vlgmr.msra.gmra.mxu1 %vm700_vm10, %v3233_v58  ;;  %4079 = vmatprep.subr.mxu1 %v4412_v45 }
 0xdb8   :  { %4080 = vmatpush3.msra.mxu1 %v3310_v1  ;;  %4087 = vmatprep.mubr.msk.f32.mxu1 %vm4413_vm13, %v4412_v45 }
 0xdb9   :  { %4081 = vmatprep.subr.mxu1 %v4412_v45 }
 0xdba   :  { %4082 = vmatpush3.msra.mxu1 %v3309_v51 }
 0xdbb   :  { %4083 = vmatprep.subr.mxu1 %v4412_v45 }
 0xdbc   :  { %4084 = vmatpush3.msra.mxu1 %v3308_v19 }
 0xdbd   :  { %4085 = vmatprep.subr.mxu1 %v4412_v45 }
 0xdbe   :  { %4086 = vmatpush3.msra.mxu1 %v3307_v38 }
 0xdbf   :  { %4097 = vmatprep.subr.mxu1 %v4412_v45 }
 0xe77   :  { %v3303_v41 = vpop.f32.mrf.mxu1 }
 0xe78   :  { %4088 = vmatmul.mubr.msk.f32.vlgmr.msra.gmra.mxu1 %vm497_vm9, %v3303_v41 }
 0xe79   :  { %v4078_v5 = vpop.f32.mrf.mxu1  ;;  %4099 = vmatprep.mubr.msk.f32.mxu1 %vm4413_vm13, %v4412_v45  ;;  %4098 = vmatpush3.msra.mxu1 %v3535_v40 }
 0xf38   :  { %v3387_v55 = vpop.f32.mrf.mxu1 }
 0xf39   :  { %v3388_v21 = vadd.f32 %v3757_v3, %v3387_v55 }
 0xf3a   :  { %v4089_v14 = vpop.f32.mrf.mxu1 }
 0xf3b   :  { %v3394_v49 = vsel %vm3393_vm3, %v3388_v21, 0.0 }
 0xf3c   :  { %3395 = vadd.xlane.f32.xlu0 %v3394_v49 }
 0xfc5   :  { %v3396_v26 = vpop.xlane.xlu0 %3395 }
 0xfc6   :  { %v3398_v24 = vmul.f32 0.0625, %v3396_v26 }
 0xfc8   :  { %v3399_v53 = vsub.f32 %v3388_v21, %v3398_v24 }
 0xfca   :  { %v3400_v61 = vmul.f32 %v3399_v53, %v3399_v53 }
 0xfcc   :  { %v3401_v37 = vsel %vm3393_vm3, %v3400_v61, 0.0 }
 0xfcd   :  { %3402 = vadd.xlane.f32.xlu0 %v3401_v37 }
0x1056   :  { %v3403_v32 = vpop.xlane.xlu0 %3402 }
0x1057   :  { %v3404_v46 = vmul.f32 0.0625, %v3403_v32 }
0x1059   :  { %v3405_v62 = vadd.f32 1e-05, %v3404_v46 }
0x105b   :  { %4350 = vrsqrt.f32 %v3405_v62 }
0x1068   :  { %v4351_v6 = vpop.eup %4350 }
0x1069   :  { %v3407_v29 = vmul.f32 %v4351_v6, %v3399_v53 }
0x106b   :  { %v3414_v43 = vmul.f32 %v3759_v52, %v3407_v29 }
0x106d   :  { %v3421_v12 = vadd.f32 %v3760_v56, %v3414_v43 }
0x106f   :  { %4095 = vmatmul.mubr.msk.f32.vlgmr.msra.gmra.mxu0 %vm700_vm10, %v3421_v12 }
0x112f   :  { %v3500_v42 = vpop.f32.mrf.mxu0 }
0x1130   :  { %v3501_v22 = vadd.f32 %v3761_v28, %v3500_v42 }
0x1131   :  { %v4096_v10 = vpop.f32.mrf.mxu0 }
0x1132   :  { %v3507_v45 = vsel %vm3506_vm4, %v3501_v22, 0.0 }
0x1133   :  { %3508 = vadd.xlane.f32.xlu1 %v3507_v45 }
0x11bc   :  { %v3509_v15 = vpop.xlane.xlu1 %3508 }
0x11bd   :  { %v3511_v11 = vmul.f32 0.125, %v3509_v15 }
0x11bf   :  { %v3512_v34 = vsub.f32 %v3501_v22, %v3511_v11 }
0x11c1   :  { %v3513_v39 = vmul.f32 %v3512_v34, %v3512_v34 }
0x11c3   :  { %v3514_v35 = vsel %vm3506_vm4, %v3513_v39, 0.0 }
0x11c4   :  { %3515 = vadd.xlane.f32.xlu0 %v3514_v35 }
0x124d   :  { %v3516_v33 = vpop.xlane.xlu0 %3515 }
0x124e   :  { %v3517_v57 = vmul.f32 0.125, %v3516_v33 }
0x1250   :  { %v3518_v59 = vadd.f32 1e-05, %v3517_v57 }
0x1252   :  { %4352 = vrsqrt.f32 %v3518_v59 }
0x125f   :  { %v4353_v47 = vpop.eup %4352 }
0x1260   :  { %v3520_v2 = vmul.f32 %v4353_v47, %v3512_v34 }
0x1262   :  { %v3527_v60 = vmul.f32 %v3763_v63, %v3520_v2 }
0x1264   :  { %v3534_v7 = vadd.f32 %v3764_v0, %v3527_v60 }
0x1266   :  { %4100 = vmatmul.mubr.msk.f32.vlgmr.msra.gmra.mxu1 %vm1007_vm12, %v3534_v7 }
0x1326   :  { %v3612_v16 = vpop.f32.mrf.mxu1 }
0x1327   :  { %v3613_v17 = vadd.f32 %v3765_v54, %v3612_v16 }
0x1328   :  { %v4101_v25 = vpop.f32.mrf.mxu1 }
0x1329   :  { %3617 = vst.msk [vmem:[#allocation3] sm:$0x3] %vm3616_vm5, %v3613_v17 }
0x132a   :  { %4369 = shalt.err (!%p4366_p4)
}
0x132b   :  { %3627 = dma.vmem_to_hbm [thread:$0]  %s3625_s27, 32, %s4599_s20, [#allocation4]  }
0x132c   :  { %4378 = dma.done.wait [#allocation4], 32  }
0x132d   :  { %4379 = vsyncadd [#allocation4], 4294967264 }
0x132e   :  { %3631 = vsyncpa [#allocation4], 1 }

</bundles_post_ra>
